<compile_context>
chip_gen: v6e
topology: v6e:2x2x1
jax: 0.10.0
libtpu: 0.0.40
codegen_flags: <defaults>
</compile_context>

<pallas_src>
import functools

import jax
import jax.numpy as jnp
from jax.experimental import pallas as pl
from jax.experimental.pallas import tpu as pltpu

LRELU_SLOPE = 0.01   # nn.LeakyReLU default
GN_EPS = 1e-5        # nn.GroupNorm default


# ----------------------------------------------------------------------------
# Fused BodyGBlock kernel: one grid step = one batch sample, activations are
# channel-last (L, C) tiles (time on sublanes, channels on lanes).
# ----------------------------------------------------------------------------
def _body_gblock_kernel(x_ref, h0_ref, w1_ref, wih_ref, whh_ref, wrc_ref,
                        w2_ref, vec_ref, out_ref, r_sc, *, L, H, G, OUT):
    f32 = jnp.float32
    cg = H // G
    H2, H4, H6 = 2 * H, 4 * H, 6 * H

    def mm(a, b):
        # Default MXU precision (bf16 passes); switch to
        # precision=jax.lax.Precision.HIGHEST if bit-parity with torch matters.
        return jnp.dot(a, b, preferred_element_type=f32)

    def leaky(y):
        return jnp.where(y >= 0, y, LRELU_SLOPE * y)

    def conv_taps(a):
        # a: (L, c), rows = time -> (L, 3c) im2col for k=3, pad=1.
        # Built from 1-row shifted slices + a zero row (no padded copy).
        # pltpu.roll(a, +/-1, axis=0) + row mask is the XLU-slot alternative.
        c = a.shape[1]
        zrow = jnp.zeros((1, c), f32)
        prev = jnp.concatenate([zrow, a[:L - 1, :]], axis=0)     # x[l-1]
        nxt = jnp.concatenate([a[1:, :], zrow], axis=0)          # x[l+1]
        return jnp.concatenate([prev, a, nxt], axis=1)

    def group_norm(y, gamma, beta):
        # One sample per grid step -> per-group stats are plain reductions over
        # the whole (L, cg) slab. Pure VPU/XLU, exact f32 (no MXU on the path).
        inv_n = 1.0 / (L * cg)
        parts = []
        for g in range(G):
            yg = y[:, g * cg:(g + 1) * cg]
            mu = jnp.sum(yg, keepdims=True) * inv_n              # (1, 1)
            yc = yg - mu
            var = jnp.sum(yc * yc, keepdims=True) * inv_n
            parts.append(yc * jax.lax.rsqrt(var + GN_EPS))
        return jnp.concatenate(parts, axis=1) * gamma + beta

    # Packed 1-D parameters (single DMA'd buffer, static slices below).
    vec = vec_ref[...]
    b1, g1, be1 = vec[0:1, 0:H], vec[1:2, 0:H], vec[2:3, 0:H]
    brc, g2, be2 = vec[3:4, 0:H], vec[4:5, 0:H], vec[5:6, 0:H]
    b2 = vec[6:7, 0:OUT]
    bih = vec[7:8, :]                                            # (1, 12H)
    bhh = vec[8:9, 0:H6]                                         # (1, 6H)

    # ---- Conv1d(input_dim -> mfd, k=3, pad=1) + GroupNorm + LeakyReLU ----
    x = x_ref[0].astype(f32)                                     # (L, C_in)
    h1 = leaky(group_norm(mm(conv_taps(x), w1_ref[...]) + b1, g1, be1))

    # ---- RCBlock: merged bidirectional GRU ----
    # One hoisted input projection for BOTH directions and all timesteps.
    # Gate columns pre-interleaved [r_f|r_b|z_f|z_b|n_f|n_b] at pack time.
    xp = mm(h1, wih_ref[...]) + bih                              # (L, 12H)
    xpf = xp[:, 0:H6]          # forward-dir projections (zeros in bwd columns)
    xpb = xp[:, H6:]           # backward-dir projections (zeros in fwd columns)
    whh = whh_ref[...]         # block-diagonal (2H, 6H)
    h = h0_ref[0].astype(f32)  # (1, 2H) = [h0_fwd | h0_bwd]
    for s in range(L):         # static unroll; L is small
        gi = xpf[s:s + 1, :] + xpb[L - 1 - s:L - s, :]           # (1, 6H)
        gh = jnp.dot(h, whh, preferred_element_type=f32) + bhh   # (1, 6H)
        rz = jax.nn.sigmoid(gi[:, 0:H4] + gh[:, 0:H4])
        r_ = rz[:, 0:H2]
        z_ = rz[:, H2:H4]
        n_ = jnp.tanh(gi[:, H4:H6] + r_ * gh[:, H4:H6])
        h = (1.0 - z_) * n_ + z_ * h
        r_sc[s:s + 1, 0:H] = h[:, 0:H]                 # fwd output at time s
        r_sc[L - 1 - s:L - s, H:H2] = h[:, H:H2]       # bwd output at L-1-s
    rs = r_sc[...]
    r = rs[:, 0:H] + rs[:, H:H2]                                 # (L, H)

    # ---- RCBlock: grouped Conv1d + GroupNorm + LeakyReLU + residual ----
    c = leaky(group_norm(mm(conv_taps(r), wrc_ref[...]) + brc, g2, be2))
    h2 = h1 + r + c                                              # x + r + c

    # ---- final Conv1d(mfd -> output_dim, k=3, pad=1) ----
    y3 = mm(conv_taps(h2), w2_ref[...]) + b2                     # (L, OUT)
    out_ref[0] = y3.astype(out_ref.dtype)


# ----------------------------------------------------------------------------
# Wrapper: one pallas_call, grid over batch samples, weights VMEM-resident.
# ----------------------------------------------------------------------------
def body_gblock(x, kp, hidden):
    """x: (B, C_in, L); kp: packed params; hidden: (2, B, mfd) -> (B, out, L)."""
    B, c_in, L = x.shape
    H = kp["whh"].shape[0] // 2
    out_dim = kp["w2"].shape[1]
    G = kp["num_groups"]

    # Tiny host-side layout ops; the per-sample tiles seen by the kernel are
    # already lane-dense channel-last.
    x_t = jnp.transpose(x, (0, 2, 1))                            # (B, L, C_in)
    h0 = jnp.concatenate([hidden[0], hidden[1]], axis=1)[:, None, :]  # (B,1,2H)

    kernel = functools.partial(_body_gblock_kernel, L=L, H=H, G=G, OUT=out_dim)
    const2 = lambda shape: pl.BlockSpec(shape, lambda b: (0, 0))
    out = pl.pallas_call(
        kernel,
        grid=(B,),
        out_shape=jax.ShapeDtypeStruct((B, L, out_dim), x.dtype),
        in_specs=[
            pl.BlockSpec((1, L, c_in), lambda b: (b, 0, 0)),     # per-sample x
            pl.BlockSpec((1, 1, 2 * H), lambda b: (b, 0, 0)),    # per-sample h0
            const2(kp["w1"].shape),      # constant index maps: weights are
            const2(kp["wih"].shape),     # fetched once and reused across
            const2(kp["whh"].shape),     # all grid steps
            const2(kp["wrc"].shape),
            const2(kp["w2"].shape),
            const2(kp["vecs"].shape),
        ],
        out_specs=pl.BlockSpec((1, L, out_dim), lambda b: (b, 0, 0)),
        scratch_shapes=[pltpu.VMEM((L, 2 * H), jnp.float32)],
        compiler_params=pltpu.CompilerParams(
            dimension_semantics=("parallel",)),
    )(x_t, h0, kp["w1"], kp["wih"], kp["whh"], kp["wrc"], kp["w2"], kp["vecs"])

    return jnp.transpose(out, (0, 2, 1))                         # (B, out, L)


# ----------------------------------------------------------------------------
# Parameter setup (deterministic, synthetic) and one-time packing.
# ----------------------------------------------------------------------------
def stack_conv_weight(w):
    """(C_out, C_in, 3) Conv1d weight -> (3*C_in, C_out), tap-major rows."""
    return jnp.concatenate([w[:, :, k].T for k in range(w.shape[2])], axis=0)


def expand_grouped_weight(wg, groups):
    """(C_out, C_in//G, 3) grouped weight -> dense block-diag (C_out, C_in, 3)."""
    c_out, cin_g, k = wg.shape
    out_g = c_out // groups
    w = jnp.zeros((c_out, cin_g * groups, k), wg.dtype)
    for g in range(groups):
        w = w.at[g * out_g:(g + 1) * out_g,
                 g * cin_g:(g + 1) * cin_g, :].set(wg[g * out_g:(g + 1) * out_g])
    return w


def init_params(key, input_dim, output_dim, mfd, num_groups):
    keys = jax.random.split(key, 16)

    def w(k, shape, scale=0.1):
        return scale * jax.random.normal(k, shape, jnp.float32)

    return {
        "conv1_w": w(keys[0], (mfd, input_dim, 3)),
        "conv1_b": w(keys[1], (mfd,)),
        "gn1_g": jnp.ones((mfd,), jnp.float32),
        "gn1_b": jnp.zeros((mfd,), jnp.float32),
        "gru": {
            "w_ih_f": w(keys[2], (3 * mfd, mfd)),
            "w_hh_f": w(keys[3], (3 * mfd, mfd)),
            "b_ih_f": w(keys[4], (3 * mfd,)),
            "b_hh_f": w(keys[5], (3 * mfd,)),
            "w_ih_b": w(keys[6], (3 * mfd, mfd)),
            "w_hh_b": w(keys[7], (3 * mfd, mfd)),
            "b_ih_b": w(keys[8], (3 * mfd,)),
            "b_hh_b": w(keys[9], (3 * mfd,)),
        },
        "rc_conv_w": w(keys[10], (mfd, mfd // num_groups, 3)),
        "rc_conv_b": w(keys[11], (mfd,)),
        "rc_gn_g": jnp.ones((mfd,), jnp.float32),
        "rc_gn_b": jnp.zeros((mfd,), jnp.float32),
        "conv2_w": w(keys[12], (output_dim, mfd, 3)),
        "conv2_b": w(keys[13], (output_dim,)),
    }


def pack_params(p, num_groups):
    """Reshape weights into kernel-friendly form ONCE, outside the forward."""
    mfd = p["conv1_w"].shape[0]
    H = mfd
    gru = p["gru"]

    # Merged-gate column layout: [r_f | r_b | z_f | z_b | n_f | n_b], H each.
    def widen_f(w3):   # (rows, 3H) forward -> (rows, 6H), zeros in bwd columns
        z = jnp.zeros((w3.shape[0], H), w3.dtype)
        return jnp.concatenate(
            [w3[:, 0:H], z, w3[:, H:2 * H], z, w3[:, 2 * H:], z], axis=1)

    def widen_b(w3):   # (rows, 3H) backward -> (rows, 6H), zeros in fwd columns
        z = jnp.zeros((w3.shape[0], H), w3.dtype)
        return jnp.concatenate(
            [z, w3[:, 0:H], z, w3[:, H:2 * H], z, w3[:, 2 * H:]], axis=1)

    wih = jnp.concatenate(
        [widen_f(gru["w_ih_f"].T), widen_b(gru["w_ih_b"].T)], axis=1)   # (H,12H)
    whh = jnp.concatenate(
        [widen_f(gru["w_hh_f"].T), widen_b(gru["w_hh_b"].T)], axis=0)   # (2H,6H)
    bih = jnp.concatenate([widen_f(gru["b_ih_f"][None, :]),
                           widen_b(gru["b_ih_b"][None, :])], axis=1)[0]  # (12H,)
    bhh = (widen_f(gru["b_hh_f"][None, :]) +
           widen_b(gru["b_hh_b"][None, :]))[0]                           # (6H,)

    width = 12 * H

    def row(v):
        r = jnp.zeros((width,), jnp.float32)
        return r.at[:v.shape[0]].set(v.astype(jnp.float32))

    vecs = jnp.stack([row(p["conv1_b"]), row(p["gn1_g"]), row(p["gn1_b"]),
                      row(p["rc_conv_b"]), row(p["rc_gn_g"]), row(p["rc_gn_b"]),
                      row(p["conv2_b"]), row(bih), row(bhh)])            # (9,12H)

    return {
        "num_groups": num_groups,
        "w1": stack_conv_weight(p["conv1_w"]),
        "wih": wih,
        "whh": whh,
        "wrc": stack_conv_weight(expand_grouped_weight(p["rc_conv_w"],
                                                       num_groups)),
        "w2": stack_conv_weight(p["conv2_w"]),
        "vecs": vecs,
    }


if __name__ == "__main__":
    B, input_dim, output_dim, mfd, num_groups, L = 2, 4, 4, 32, 4, 16

    key = jax.random.PRNGKey(0)
    k_x, k_p, k_h = jax.random.split(key, 3)
    x = jax.random.normal(k_x, (B, input_dim, L), jnp.float32)
    params = init_params(k_p, input_dim, output_dim, mfd, num_groups)
    kp = pack_params(params, num_groups)
    # RCBlock.init_hidden draws N(0,1) at forward time; reproduced with jax PRNG.
    hidden = jax.random.normal(k_h, (2, B, mfd), jnp.float32)

    out = body_gblock(x, kp, hidden)
    jax.block_until_ready(out)
    assert out.shape == (B, output_dim, L) and out.dtype == jnp.float32
    print("KERNEL_OK")
</pallas_src>

<mosaic_0001>
module attributes {stable_mosaic.version = 11 : i64} {
  func.func @_body_gblock_kernel(%arg0: i32, %arg1: memref<1x16x4xf32, #tpu.memory_space<vmem>>, %arg2: memref<1x1x64xf32, #tpu.memory_space<vmem>>, %arg3: memref<12x32xf32, #tpu.memory_space<vmem>>, %arg4: memref<32x384xf32, #tpu.memory_space<vmem>>, %arg5: memref<64x192xf32, #tpu.memory_space<vmem>>, %arg6: memref<96x32xf32, #tpu.memory_space<vmem>>, %arg7: memref<96x4xf32, #tpu.memory_space<vmem>>, %arg8: memref<9x384xf32, #tpu.memory_space<vmem>>, %arg9: memref<1x16x4xf32, #tpu.memory_space<vmem>>, %arg10: memref<16x64xf32, #tpu.memory_space<vmem>>) attributes {dimension_semantics = [#tpu.dimension_semantics<parallel>], iteration_bounds = array<i64: 2>, scalar_prefetch = 0 : i64, scratch_operands = 1 : i64, tpu.core_type = #tpu.core_type<tc>, window_params = [{transform_indices = @transform_0, window_bounds = array<i64: 1, 16, 4>}, {transform_indices = @transform_1, window_bounds = array<i64: 1, 1, 64>}, {pipeline_mode = #tpu.pipeline_mode<synchronous>, transform_indices = @transform_2, window_bounds = array<i64: 12, 32>}, {pipeline_mode = #tpu.pipeline_mode<synchronous>, transform_indices = @transform_3, window_bounds = array<i64: 32, 384>}, {pipeline_mode = #tpu.pipeline_mode<synchronous>, transform_indices = @transform_4, window_bounds = array<i64: 64, 192>}, {pipeline_mode = #tpu.pipeline_mode<synchronous>, transform_indices = @transform_5, window_bounds = array<i64: 96, 32>}, {pipeline_mode = #tpu.pipeline_mode<synchronous>, transform_indices = @transform_6, window_bounds = array<i64: 96, 4>}, {pipeline_mode = #tpu.pipeline_mode<synchronous>, transform_indices = @transform_7, window_bounds = array<i64: 9, 384>}, {transform_indices = @transform_8, window_bounds = array<i64: 1, 16, 4>}]} {
    %c0 = arith.constant 0 : index
    %c0_0 = arith.constant 0 : index
    %0 = vector.load %arg8[%c0, %c0_0] : memref<9x384xf32, #tpu.memory_space<vmem>>, vector<9x384xf32>
    %1 = vector.extract_strided_slice %0 {offsets = [0, 0], sizes = [1, 32], strides = [1, 1]} : vector<9x384xf32> to vector<1x32xf32>
    %2 = vector.extract_strided_slice %0 {offsets = [1, 0], sizes = [1, 32], strides = [1, 1]} : vector<9x384xf32> to vector<1x32xf32>
    %3 = vector.extract_strided_slice %0 {offsets = [2, 0], sizes = [1, 32], strides = [1, 1]} : vector<9x384xf32> to vector<1x32xf32>
    %4 = vector.extract_strided_slice %0 {offsets = [3, 0], sizes = [1, 32], strides = [1, 1]} : vector<9x384xf32> to vector<1x32xf32>
    %5 = vector.extract_strided_slice %0 {offsets = [4, 0], sizes = [1, 32], strides = [1, 1]} : vector<9x384xf32> to vector<1x32xf32>
    %6 = vector.extract_strided_slice %0 {offsets = [5, 0], sizes = [1, 32], strides = [1, 1]} : vector<9x384xf32> to vector<1x32xf32>
    %7 = vector.extract_strided_slice %0 {offsets = [6, 0], sizes = [1, 4], strides = [1, 1]} : vector<9x384xf32> to vector<1x4xf32>
    %8 = vector.extract_strided_slice %0 {offsets = [7, 0], sizes = [1, 384], strides = [1, 1]} : vector<9x384xf32> to vector<1x384xf32>
    %9 = vector.extract_strided_slice %0 {offsets = [8, 0], sizes = [1, 192], strides = [1, 1]} : vector<9x384xf32> to vector<1x192xf32>
    %c0_1 = arith.constant 0 : index
    %c0_2 = arith.constant 0 : index
    %c0_3 = arith.constant 0 : index
    %10 = vector.load %arg1[%c0_1, %c0_2, %c0_3] : memref<1x16x4xf32, #tpu.memory_space<vmem>>, vector<1x16x4xf32>
    %11 = vector.shape_cast %10 : vector<1x16x4xf32> to vector<16x4xf32>
    %cst = arith.constant 0.000000e+00 : f32
    %12 = vector.broadcast %cst : f32 to vector<1x4xf32>
    %13 = vector.extract_strided_slice %11 {offsets = [0, 0], sizes = [15, 4], strides = [1, 1]} : vector<16x4xf32> to vector<15x4xf32>
    %14 = tpu.concatenate %12, %13 in 0 : vector<1x4xf32>, vector<15x4xf32> -> vector<16x4xf32>
    %15 = vector.extract_strided_slice %11 {offsets = [1, 0], sizes = [15, 4], strides = [1, 1]} : vector<16x4xf32> to vector<15x4xf32>
    %16 = tpu.concatenate %15, %12 in 0 : vector<15x4xf32>, vector<1x4xf32> -> vector<16x4xf32>
    %17 = tpu.concatenate %14, %11, %16 in 1 : vector<16x4xf32>, vector<16x4xf32>, vector<16x4xf32> -> vector<16x12xf32>
    %c0_4 = arith.constant 0 : index
    %c0_5 = arith.constant 0 : index
    %18 = vector.load %arg3[%c0_4, %c0_5] : memref<12x32xf32, #tpu.memory_space<vmem>>, vector<12x32xf32>
    %cst_6 = arith.constant dense<0.000000e+00> : vector<16x32xf32>
    %19 = tpu.matmul %17, %18, %cst_6 {dimension_numbers = #tpu.dot_dimension_numbers<[1], [0], [0], [1], [0, 0, 1, 1], [], []>} : vector<16x12xf32>, vector<12x32xf32>, vector<16x32xf32> -> vector<16x32xf32>
    %20 = vector.broadcast %1 : vector<1x32xf32> to vector<16x32xf32>
    %21 = arith.addf %19, %20 : vector<16x32xf32>
    %22 = vector.extract_strided_slice %21 {offsets = [0, 0], sizes = [16, 8], strides = [1, 1]} : vector<16x32xf32> to vector<16x8xf32>
    %23 = vector.shape_cast %22 : vector<16x8xf32> to vector<1x16x8xf32>
    %cst_7 = arith.constant dense<0.000000e+00> : vector<1xf32>
    %24 = vector.multi_reduction <add>, %23, %cst_7 [1, 2] : vector<1x16x8xf32> to vector<1xf32>
    %25 = vector.shape_cast %24 : vector<1xf32> to vector<1x1x1xf32>
    %26 = vector.extract %25[0, 0, 0] : f32 from vector<1x1x1xf32>
    %27 = vector.broadcast %26 : f32 to vector<1x1xf32>
    %cst_8 = arith.constant 7.812500e-03 : f32
    %28 = vector.broadcast %cst_8 : f32 to vector<1x1xf32>
    %29 = arith.mulf %27, %28 : vector<1x1xf32>
    %30 = vector.broadcast %29 : vector<1x1xf32> to vector<16x8xf32>
    %31 = arith.subf %22, %30 : vector<16x8xf32>
    %32 = arith.mulf %31, %31 : vector<16x8xf32>
    %33 = vector.shape_cast %32 : vector<16x8xf32> to vector<1x16x8xf32>
    %cst_9 = arith.constant dense<0.000000e+00> : vector<1xf32>
    %34 = vector.multi_reduction <add>, %33, %cst_9 [1, 2] : vector<1x16x8xf32> to vector<1xf32>
    %35 = vector.shape_cast %34 : vector<1xf32> to vector<1x1x1xf32>
    %36 = vector.extract %35[0, 0, 0] : f32 from vector<1x1x1xf32>
    %37 = vector.broadcast %36 : f32 to vector<1x1xf32>
    %cst_10 = arith.constant 7.812500e-03 : f32
    %38 = vector.broadcast %cst_10 : f32 to vector<1x1xf32>
    %39 = arith.mulf %37, %38 : vector<1x1xf32>
    %cst_11 = arith.constant 9.99999974E-6 : f32
    %40 = vector.broadcast %cst_11 : f32 to vector<1x1xf32>
    %41 = arith.addf %39, %40 : vector<1x1xf32>
    %42 = math.rsqrt %41 : vector<1x1xf32>
    %43 = vector.broadcast %42 : vector<1x1xf32> to vector<16x8xf32>
    %44 = arith.mulf %31, %43 : vector<16x8xf32>
    %45 = vector.extract_strided_slice %21 {offsets = [0, 8], sizes = [16, 8], strides = [1, 1]} : vector<16x32xf32> to vector<16x8xf32>
    %46 = vector.shape_cast %45 : vector<16x8xf32> to vector<1x16x8xf32>
    %cst_12 = arith.constant dense<0.000000e+00> : vector<1xf32>
    %47 = vector.multi_reduction <add>, %46, %cst_12 [1, 2] : vector<1x16x8xf32> to vector<1xf32>
    %48 = vector.shape_cast %47 : vector<1xf32> to vector<1x1x1xf32>
    %49 = vector.extract %48[0, 0, 0] : f32 from vector<1x1x1xf32>
    %50 = vector.broadcast %49 : f32 to vector<1x1xf32>
    %cst_13 = arith.constant 7.812500e-03 : f32
    %51 = vector.broadcast %cst_13 : f32 to vector<1x1xf32>
    %52 = arith.mulf %50, %51 : vector<1x1xf32>
    %53 = vector.broadcast %52 : vector<1x1xf32> to vector<16x8xf32>
    %54 = arith.subf %45, %53 : vector<16x8xf32>
    %55 = arith.mulf %54, %54 : vector<16x8xf32>
    %56 = vector.shape_cast %55 : vector<16x8xf32> to vector<1x16x8xf32>
    %cst_14 = arith.constant dense<0.000000e+00> : vector<1xf32>
    %57 = vector.multi_reduction <add>, %56, %cst_14 [1, 2] : vector<1x16x8xf32> to vector<1xf32>
    %58 = vector.shape_cast %57 : vector<1xf32> to vector<1x1x1xf32>
    %59 = vector.extract %58[0, 0, 0] : f32 from vector<1x1x1xf32>
    %60 = vector.broadcast %59 : f32 to vector<1x1xf32>
    %cst_15 = arith.constant 7.812500e-03 : f32
    %61 = vector.broadcast %cst_15 : f32 to vector<1x1xf32>
    %62 = arith.mulf %60, %61 : vector<1x1xf32>
    %cst_16 = arith.constant 9.99999974E-6 : f32
    %63 = vector.broadcast %cst_16 : f32 to vector<1x1xf32>
    %64 = arith.addf %62, %63 : vector<1x1xf32>
    %65 = math.rsqrt %64 : vector<1x1xf32>
    %66 = vector.broadcast %65 : vector<1x1xf32> to vector<16x8xf32>
    %67 = arith.mulf %54, %66 : vector<16x8xf32>
    %68 = vector.extract_strided_slice %21 {offsets = [0, 16], sizes = [16, 8], strides = [1, 1]} : vector<16x32xf32> to vector<16x8xf32>
    %69 = vector.shape_cast %68 : vector<16x8xf32> to vector<1x16x8xf32>
    %cst_17 = arith.constant dense<0.000000e+00> : vector<1xf32>
    %70 = vector.multi_reduction <add>, %69, %cst_17 [1, 2] : vector<1x16x8xf32> to vector<1xf32>
    %71 = vector.shape_cast %70 : vector<1xf32> to vector<1x1x1xf32>
    %72 = vector.extract %71[0, 0, 0] : f32 from vector<1x1x1xf32>
    %73 = vector.broadcast %72 : f32 to vector<1x1xf32>
    %cst_18 = arith.constant 7.812500e-03 : f32
    %74 = vector.broadcast %cst_18 : f32 to vector<1x1xf32>
    %75 = arith.mulf %73, %74 : vector<1x1xf32>
    %76 = vector.broadcast %75 : vector<1x1xf32> to vector<16x8xf32>
    %77 = arith.subf %68, %76 : vector<16x8xf32>
    %78 = arith.mulf %77, %77 : vector<16x8xf32>
    %79 = vector.shape_cast %78 : vector<16x8xf32> to vector<1x16x8xf32>
    %cst_19 = arith.constant dense<0.000000e+00> : vector<1xf32>
    %80 = vector.multi_reduction <add>, %79, %cst_19 [1, 2] : vector<1x16x8xf32> to vector<1xf32>
    %81 = vector.shape_cast %80 : vector<1xf32> to vector<1x1x1xf32>
    %82 = vector.extract %81[0, 0, 0] : f32 from vector<1x1x1xf32>
    %83 = vector.broadcast %82 : f32 to vector<1x1xf32>
    %cst_20 = arith.constant 7.812500e-03 : f32
    %84 = vector.broadcast %cst_20 : f32 to vector<1x1xf32>
    %85 = arith.mulf %83, %84 : vector<1x1xf32>
    %cst_21 = arith.constant 9.99999974E-6 : f32
    %86 = vector.broadcast %cst_21 : f32 to vector<1x1xf32>
    %87 = arith.addf %85, %86 : vector<1x1xf32>
    %88 = math.rsqrt %87 : vector<1x1xf32>
    %89 = vector.broadcast %88 : vector<1x1xf32> to vector<16x8xf32>
    %90 = arith.mulf %77, %89 : vector<16x8xf32>
    %91 = vector.extract_strided_slice %21 {offsets = [0, 24], sizes = [16, 8], strides = [1, 1]} : vector<16x32xf32> to vector<16x8xf32>
    %92 = vector.shape_cast %91 : vector<16x8xf32> to vector<1x16x8xf32>
    %cst_22 = arith.constant dense<0.000000e+00> : vector<1xf32>
    %93 = vector.multi_reduction <add>, %92, %cst_22 [1, 2] : vector<1x16x8xf32> to vector<1xf32>
    %94 = vector.shape_cast %93 : vector<1xf32> to vector<1x1x1xf32>
    %95 = vector.extract %94[0, 0, 0] : f32 from vector<1x1x1xf32>
    %96 = vector.broadcast %95 : f32 to vector<1x1xf32>
    %cst_23 = arith.constant 7.812500e-03 : f32
    %97 = vector.broadcast %cst_23 : f32 to vector<1x1xf32>
    %98 = arith.mulf %96, %97 : vector<1x1xf32>
    %99 = vector.broadcast %98 : vector<1x1xf32> to vector<16x8xf32>
    %100 = arith.subf %91, %99 : vector<16x8xf32>
    %101 = arith.mulf %100, %100 : vector<16x8xf32>
    %102 = vector.shape_cast %101 : vector<16x8xf32> to vector<1x16x8xf32>
    %cst_24 = arith.constant dense<0.000000e+00> : vector<1xf32>
    %103 = vector.multi_reduction <add>, %102, %cst_24 [1, 2] : vector<1x16x8xf32> to vector<1xf32>
    %104 = vector.shape_cast %103 : vector<1xf32> to vector<1x1x1xf32>
    %105 = vector.extract %104[0, 0, 0] : f32 from vector<1x1x1xf32>
    %106 = vector.broadcast %105 : f32 to vector<1x1xf32>
    %cst_25 = arith.constant 7.812500e-03 : f32
    %107 = vector.broadcast %cst_25 : f32 to vector<1x1xf32>
    %108 = arith.mulf %106, %107 : vector<1x1xf32>
    %cst_26 = arith.constant 9.99999974E-6 : f32
    %109 = vector.broadcast %cst_26 : f32 to vector<1x1xf32>
    %110 = arith.addf %108, %109 : vector<1x1xf32>
    %111 = math.rsqrt %110 : vector<1x1xf32>
    %112 = vector.broadcast %111 : vector<1x1xf32> to vector<16x8xf32>
    %113 = arith.mulf %100, %112 : vector<16x8xf32>
    %114 = tpu.concatenate %44, %67, %90, %113 in 1 : vector<16x8xf32>, vector<16x8xf32>, vector<16x8xf32>, vector<16x8xf32> -> vector<16x32xf32>
    %115 = vector.broadcast %2 : vector<1x32xf32> to vector<16x32xf32>
    %116 = arith.mulf %114, %115 : vector<16x32xf32>
    %117 = vector.broadcast %3 : vector<1x32xf32> to vector<16x32xf32>
    %118 = arith.addf %116, %117 : vector<16x32xf32>
    %cst_27 = arith.constant 0.000000e+00 : f32
    %119 = vector.broadcast %cst_27 : f32 to vector<16x32xf32>
    %120 = arith.cmpf oge, %118, %119 : vector<16x32xf32>
    %cst_28 = arith.constant 0.00999999977 : f32
    %121 = vector.broadcast %cst_28 : f32 to vector<16x32xf32>
    %122 = arith.mulf %121, %118 : vector<16x32xf32>
    %123 = arith.select %120, %118, %122 : vector<16x32xi1>, vector<16x32xf32>
    %c0_29 = arith.constant 0 : index
    %c0_30 = arith.constant 0 : index
    %124 = vector.load %arg4[%c0_29, %c0_30] : memref<32x384xf32, #tpu.memory_space<vmem>>, vector<32x384xf32>
    %cst_31 = arith.constant dense<0.000000e+00> : vector<16x384xf32>
    %125 = tpu.matmul %123, %124, %cst_31 {dimension_numbers = #tpu.dot_dimension_numbers<[1], [0], [0], [1], [0, 0, 1, 1], [], []>} : vector<16x32xf32>, vector<32x384xf32>, vector<16x384xf32> -> vector<16x384xf32>
    %126 = vector.broadcast %8 : vector<1x384xf32> to vector<16x384xf32>
    %127 = arith.addf %125, %126 : vector<16x384xf32>
    %128 = vector.extract_strided_slice %127 {offsets = [0, 0], sizes = [16, 192], strides = [1, 1]} : vector<16x384xf32> to vector<16x192xf32>
    %129 = vector.extract_strided_slice %127 {offsets = [0, 192], sizes = [16, 192], strides = [1, 1]} : vector<16x384xf32> to vector<16x192xf32>
    %c0_32 = arith.constant 0 : index
    %c0_33 = arith.constant 0 : index
    %130 = vector.load %arg5[%c0_32, %c0_33] : memref<64x192xf32, #tpu.memory_space<vmem>>, vector<64x192xf32>
    %c0_34 = arith.constant 0 : index
    %c0_35 = arith.constant 0 : index
    %c0_36 = arith.constant 0 : index
    %131 = vector.load %arg2[%c0_34, %c0_35, %c0_36] : memref<1x1x64xf32, #tpu.memory_space<vmem>>, vector<1x1x64xf32>
    %132 = vector.shape_cast %131 : vector<1x1x64xf32> to vector<1x64xf32>
    %133 = vector.extract_strided_slice %128 {offsets = [0, 0], sizes = [1, 192], strides = [1, 1]} : vector<16x192xf32> to vector<1x192xf32>
    %134 = vector.extract_strided_slice %129 {offsets = [15, 0], sizes = [1, 192], strides = [1, 1]} : vector<16x192xf32> to vector<1x192xf32>
    %135 = arith.addf %133, %134 : vector<1x192xf32>
    %cst_37 = arith.constant dense<0.000000e+00> : vector<1x192xf32>
    %136 = tpu.matmul %132, %130, %cst_37 {dimension_numbers = #tpu.dot_dimension_numbers<[1], [0], [0], [1], [0, 0, 1, 1], [], []>} : vector<1x64xf32>, vector<64x192xf32>, vector<1x192xf32> -> vector<1x192xf32>
    %137 = arith.addf %136, %9 : vector<1x192xf32>
    %138 = vector.extract_strided_slice %135 {offsets = [0, 0], sizes = [1, 128], strides = [1, 1]} : vector<1x192xf32> to vector<1x128xf32>
    %139 = vector.extract_strided_slice %137 {offsets = [0, 0], sizes = [1, 128], strides = [1, 1]} : vector<1x192xf32> to vector<1x128xf32>
    %140 = arith.addf %138, %139 : vector<1x128xf32>
    %141 = arith.negf %140 : vector<1x128xf32>
    %142 = math.exp %141 : vector<1x128xf32>
    %cst_38 = arith.constant 1.000000e+00 : f32
    %143 = vector.broadcast %cst_38 : f32 to vector<1x128xf32>
    %144 = arith.addf %143, %142 : vector<1x128xf32>
    %145 = arith.divf %143, %144 : vector<1x128xf32>
    %146 = vector.extract_strided_slice %145 {offsets = [0, 0], sizes = [1, 64], strides = [1, 1]} : vector<1x128xf32> to vector<1x64xf32>
    %147 = vector.extract_strided_slice %145 {offsets = [0, 64], sizes = [1, 64], strides = [1, 1]} : vector<1x128xf32> to vector<1x64xf32>
    %148 = vector.extract_strided_slice %135 {offsets = [0, 128], sizes = [1, 64], strides = [1, 1]} : vector<1x192xf32> to vector<1x64xf32>
    %149 = vector.extract_strided_slice %137 {offsets = [0, 128], sizes = [1, 64], strides = [1, 1]} : vector<1x192xf32> to vector<1x64xf32>
    %150 = arith.mulf %146, %149 : vector<1x64xf32>
    %151 = arith.addf %148, %150 : vector<1x64xf32>
    %152 = math.tanh %151 : vector<1x64xf32>
    %cst_39 = arith.constant 1.000000e+00 : f32
    %153 = vector.broadcast %cst_39 : f32 to vector<1x64xf32>
    %154 = arith.subf %153, %147 : vector<1x64xf32>
    %155 = arith.mulf %154, %152 : vector<1x64xf32>
    %156 = arith.mulf %147, %132 : vector<1x64xf32>
    %157 = arith.addf %155, %156 : vector<1x64xf32>
    %158 = vector.extract_strided_slice %157 {offsets = [0, 0], sizes = [1, 32], strides = [1, 1]} : vector<1x64xf32> to vector<1x32xf32>
    %c0_40 = arith.constant 0 : index
    %c0_41 = arith.constant 0 : index
    %159 = vector.load %arg10[%c0_40, %c0_41] : memref<16x64xf32, #tpu.memory_space<vmem>>, vector<1x32xf32>
    tpu.vector_store %arg10[%c0_40, %c0_41], %158 {strides = array<i32>} : memref<16x64xf32, #tpu.memory_space<vmem>>, vector<1x32xf32>,
    %160 = vector.extract_strided_slice %157 {offsets = [0, 32], sizes = [1, 32], strides = [1, 1]} : vector<1x64xf32> to vector<1x32xf32>
    %c15 = arith.constant 15 : index
    %c32 = arith.constant 32 : index
    %161 = vector.load %arg10[%c15, %c32] : memref<16x64xf32, #tpu.memory_space<vmem>>, vector<1x32xf32>
    tpu.vector_store %arg10[%c15, %c32], %160 {strides = array<i32>} : memref<16x64xf32, #tpu.memory_space<vmem>>, vector<1x32xf32>,
    %162 = vector.extract_strided_slice %128 {offsets = [1, 0], sizes = [1, 192], strides = [1, 1]} : vector<16x192xf32> to vector<1x192xf32>
    %163 = vector.extract_strided_slice %129 {offsets = [14, 0], sizes = [1, 192], strides = [1, 1]} : vector<16x192xf32> to vector<1x192xf32>
    %164 = arith.addf %162, %163 : vector<1x192xf32>
    %cst_42 = arith.constant dense<0.000000e+00> : vector<1x192xf32>
    %165 = tpu.matmul %157, %130, %cst_42 {dimension_numbers = #tpu.dot_dimension_numbers<[1], [0], [0], [1], [0, 0, 1, 1], [], []>} : vector<1x64xf32>, vector<64x192xf32>, vector<1x192xf32> -> vector<1x192xf32>
    %166 = arith.addf %165, %9 : vector<1x192xf32>
    %167 = vector.extract_strided_slice %164 {offsets = [0, 0], sizes = [1, 128], strides = [1, 1]} : vector<1x192xf32> to vector<1x128xf32>
    %168 = vector.extract_strided_slice %166 {offsets = [0, 0], sizes = [1, 128], strides = [1, 1]} : vector<1x192xf32> to vector<1x128xf32>
    %169 = arith.addf %167, %168 : vector<1x128xf32>
    %170 = arith.negf %169 : vector<1x128xf32>
    %171 = math.exp %170 : vector<1x128xf32>
    %cst_43 = arith.constant 1.000000e+00 : f32
    %172 = vector.broadcast %cst_43 : f32 to vector<1x128xf32>
    %173 = arith.addf %172, %171 : vector<1x128xf32>
    %174 = arith.divf %172, %173 : vector<1x128xf32>
    %175 = vector.extract_strided_slice %174 {offsets = [0, 0], sizes = [1, 64], strides = [1, 1]} : vector<1x128xf32> to vector<1x64xf32>
    %176 = vector.extract_strided_slice %174 {offsets = [0, 64], sizes = [1, 64], strides = [1, 1]} : vector<1x128xf32> to vector<1x64xf32>
    %177 = vector.extract_strided_slice %164 {offsets = [0, 128], sizes = [1, 64], strides = [1, 1]} : vector<1x192xf32> to vector<1x64xf32>
    %178 = vector.extract_strided_slice %166 {offsets = [0, 128], sizes = [1, 64], strides = [1, 1]} : vector<1x192xf32> to vector<1x64xf32>
    %179 = arith.mulf %175, %178 : vector<1x64xf32>
    %180 = arith.addf %177, %179 : vector<1x64xf32>
    %181 = math.tanh %180 : vector<1x64xf32>
    %cst_44 = arith.constant 1.000000e+00 : f32
    %182 = vector.broadcast %cst_44 : f32 to vector<1x64xf32>
    %183 = arith.subf %182, %176 : vector<1x64xf32>
    %184 = arith.mulf %183, %181 : vector<1x64xf32>
    %185 = arith.mulf %176, %157 : vector<1x64xf32>
    %186 = arith.addf %184, %185 : vector<1x64xf32>
    %187 = vector.extract_strided_slice %186 {offsets = [0, 0], sizes = [1, 32], strides = [1, 1]} : vector<1x64xf32> to vector<1x32xf32>
    %c1 = arith.constant 1 : index
    %c0_45 = arith.constant 0 : index
    %188 = vector.load %arg10[%c1, %c0_45] : memref<16x64xf32, #tpu.memory_space<vmem>>, vector<1x32xf32>
    tpu.vector_store %arg10[%c1, %c0_45], %187 {strides = array<i32>} : memref<16x64xf32, #tpu.memory_space<vmem>>, vector<1x32xf32>,
    %189 = vector.extract_strided_slice %186 {offsets = [0, 32], sizes = [1, 32], strides = [1, 1]} : vector<1x64xf32> to vector<1x32xf32>
    %c14 = arith.constant 14 : index
    %c32_46 = arith.constant 32 : index
    %190 = vector.load %arg10[%c14, %c32_46] : memref<16x64xf32, #tpu.memory_space<vmem>>, vector<1x32xf32>
    tpu.vector_store %arg10[%c14, %c32_46], %189 {strides = array<i32>} : memref<16x64xf32, #tpu.memory_space<vmem>>, vector<1x32xf32>,
    %191 = vector.extract_strided_slice %128 {offsets = [2, 0], sizes = [1, 192], strides = [1, 1]} : vector<16x192xf32> to vector<1x192xf32>
    %192 = vector.extract_strided_slice %129 {offsets = [13, 0], sizes = [1, 192], strides = [1, 1]} : vector<16x192xf32> to vector<1x192xf32>
    %193 = arith.addf %191, %192 : vector<1x192xf32>
    %cst_47 = arith.constant dense<0.000000e+00> : vector<1x192xf32>
    %194 = tpu.matmul %186, %130, %cst_47 {dimension_numbers = #tpu.dot_dimension_numbers<[1], [0], [0], [1], [0, 0, 1, 1], [], []>} : vector<1x64xf32>, vector<64x192xf32>, vector<1x192xf32> -> vector<1x192xf32>
    %195 = arith.addf %194, %9 : vector<1x192xf32>
    %196 = vector.extract_strided_slice %193 {offsets = [0, 0], sizes = [1, 128], strides = [1, 1]} : vector<1x192xf32> to vector<1x128xf32>
    %197 = vector.extract_strided_slice %195 {offsets = [0, 0], sizes = [1, 128], strides = [1, 1]} : vector<1x192xf32> to vector<1x128xf32>
    %198 = arith.addf %196, %197 : vector<1x128xf32>
    %199 = arith.negf %198 : vector<1x128xf32>
    %200 = math.exp %199 : vector<1x128xf32>
    %cst_48 = arith.constant 1.000000e+00 : f32
    %201 = vector.broadcast %cst_48 : f32 to vector<1x128xf32>
    %202 = arith.addf %201, %200 : vector<1x128xf32>
    %203 = arith.divf %201, %202 : vector<1x128xf32>
    %204 = vector.extract_strided_slice %203 {offsets = [0, 0], sizes = [1, 64], strides = [1, 1]} : vector<1x128xf32> to vector<1x64xf32>
    %205 = vector.extract_strided_slice %203 {offsets = [0, 64], sizes = [1, 64], strides = [1, 1]} : vector<1x128xf32> to vector<1x64xf32>
    %206 = vector.extract_strided_slice %193 {offsets = [0, 128], sizes = [1, 64], strides = [1, 1]} : vector<1x192xf32> to vector<1x64xf32>
    %207 = vector.extract_strided_slice %195 {offsets = [0, 128], sizes = [1, 64], strides = [1, 1]} : vector<1x192xf32> to vector<1x64xf32>
    %208 = arith.mulf %204, %207 : vector<1x64xf32>
    %209 = arith.addf %206, %208 : vector<1x64xf32>
    %210 = math.tanh %209 : vector<1x64xf32>
    %cst_49 = arith.constant 1.000000e+00 : f32
    %211 = vector.broadcast %cst_49 : f32 to vector<1x64xf32>
    %212 = arith.subf %211, %205 : vector<1x64xf32>
    %213 = arith.mulf %212, %210 : vector<1x64xf32>
    %214 = arith.mulf %205, %186 : vector<1x64xf32>
    %215 = arith.addf %213, %214 : vector<1x64xf32>
    %216 = vector.extract_strided_slice %215 {offsets = [0, 0], sizes = [1, 32], strides = [1, 1]} : vector<1x64xf32> to vector<1x32xf32>
    %c2 = arith.constant 2 : index
    %c0_50 = arith.constant 0 : index
    %217 = vector.load %arg10[%c2, %c0_50] : memref<16x64xf32, #tpu.memory_space<vmem>>, vector<1x32xf32>
    tpu.vector_store %arg10[%c2, %c0_50], %216 {strides = array<i32>} : memref<16x64xf32, #tpu.memory_space<vmem>>, vector<1x32xf32>,
    %218 = vector.extract_strided_slice %215 {offsets = [0, 32], sizes = [1, 32], strides = [1, 1]} : vector<1x64xf32> to vector<1x32xf32>
    %c13 = arith.constant 13 : index
    %c32_51 = arith.constant 32 : index
    %219 = vector.load %arg10[%c13, %c32_51] : memref<16x64xf32, #tpu.memory_space<vmem>>, vector<1x32xf32>
    tpu.vector_store %arg10[%c13, %c32_51], %218 {strides = array<i32>} : memref<16x64xf32, #tpu.memory_space<vmem>>, vector<1x32xf32>,
    %220 = vector.extract_strided_slice %128 {offsets = [3, 0], sizes = [1, 192], strides = [1, 1]} : vector<16x192xf32> to vector<1x192xf32>
    %221 = vector.extract_strided_slice %129 {offsets = [12, 0], sizes = [1, 192], strides = [1, 1]} : vector<16x192xf32> to vector<1x192xf32>
    %222 = arith.addf %220, %221 : vector<1x192xf32>
    %cst_52 = arith.constant dense<0.000000e+00> : vector<1x192xf32>
    %223 = tpu.matmul %215, %130, %cst_52 {dimension_numbers = #tpu.dot_dimension_numbers<[1], [0], [0], [1], [0, 0, 1, 1], [], []>} : vector<1x64xf32>, vector<64x192xf32>, vector<1x192xf32> -> vector<1x192xf32>
    %224 = arith.addf %223, %9 : vector<1x192xf32>
    %225 = vector.extract_strided_slice %222 {offsets = [0, 0], sizes = [1, 128], strides = [1, 1]} : vector<1x192xf32> to vector<1x128xf32>
    %226 = vector.extract_strided_slice %224 {offsets = [0, 0], sizes = [1, 128], strides = [1, 1]} : vector<1x192xf32> to vector<1x128xf32>
    %227 = arith.addf %225, %226 : vector<1x128xf32>
    %228 = arith.negf %227 : vector<1x128xf32>
    %229 = math.exp %228 : vector<1x128xf32>
    %cst_53 = arith.constant 1.000000e+00 : f32
    %230 = vector.broadcast %cst_53 : f32 to vector<1x128xf32>
    %231 = arith.addf %230, %229 : vector<1x128xf32>
    %232 = arith.divf %230, %231 : vector<1x128xf32>
    %233 = vector.extract_strided_slice %232 {offsets = [0, 0], sizes = [1, 64], strides = [1, 1]} : vector<1x128xf32> to vector<1x64xf32>
    %234 = vector.extract_strided_slice %232 {offsets = [0, 64], sizes = [1, 64], strides = [1, 1]} : vector<1x128xf32> to vector<1x64xf32>
    %235 = vector.extract_strided_slice %222 {offsets = [0, 128], sizes = [1, 64], strides = [1, 1]} : vector<1x192xf32> to vector<1x64xf32>
    %236 = vector.extract_strided_slice %224 {offsets = [0, 128], sizes = [1, 64], strides = [1, 1]} : vector<1x192xf32> to vector<1x64xf32>
    %237 = arith.mulf %233, %236 : vector<1x64xf32>
    %238 = arith.addf %235, %237 : vector<1x64xf32>
    %239 = math.tanh %238 : vector<1x64xf32>
    %cst_54 = arith.constant 1.000000e+00 : f32
    %240 = vector.broadcast %cst_54 : f32 to vector<1x64xf32>
    %241 = arith.subf %240, %234 : vector<1x64xf32>
    %242 = arith.mulf %241, %239 : vector<1x64xf32>
    %243 = arith.mulf %234, %215 : vector<1x64xf32>
    %244 = arith.addf %242, %243 : vector<1x64xf32>
    %245 = vector.extract_strided_slice %244 {offsets = [0, 0], sizes = [1, 32], strides = [1, 1]} : vector<1x64xf32> to vector<1x32xf32>
    %c3 = arith.constant 3 : index
    %c0_55 = arith.constant 0 : index
    %246 = vector.load %arg10[%c3, %c0_55] : memref<16x64xf32, #tpu.memory_space<vmem>>, vector<1x32xf32>
    tpu.vector_store %arg10[%c3, %c0_55], %245 {strides = array<i32>} : memref<16x64xf32, #tpu.memory_space<vmem>>, vector<1x32xf32>,
    %247 = vector.extract_strided_slice %244 {offsets = [0, 32], sizes = [1, 32], strides = [1, 1]} : vector<1x64xf32> to vector<1x32xf32>
    %c12 = arith.constant 12 : index
    %c32_56 = arith.constant 32 : index
    %248 = vector.load %arg10[%c12, %c32_56] : memref<16x64xf32, #tpu.memory_space<vmem>>, vector<1x32xf32>
    tpu.vector_store %arg10[%c12, %c32_56], %247 {strides = array<i32>} : memref<16x64xf32, #tpu.memory_space<vmem>>, vector<1x32xf32>,
    %249 = vector.extract_strided_slice %128 {offsets = [4, 0], sizes = [1, 192], strides = [1, 1]} : vector<16x192xf32> to vector<1x192xf32>
    %250 = vector.extract_strided_slice %129 {offsets = [11, 0], sizes = [1, 192], strides = [1, 1]} : vector<16x192xf32> to vector<1x192xf32>
    %251 = arith.addf %249, %250 : vector<1x192xf32>
    %cst_57 = arith.constant dense<0.000000e+00> : vector<1x192xf32>
    %252 = tpu.matmul %244, %130, %cst_57 {dimension_numbers = #tpu.dot_dimension_numbers<[1], [0], [0], [1], [0, 0, 1, 1], [], []>} : vector<1x64xf32>, vector<64x192xf32>, vector<1x192xf32> -> vector<1x192xf32>
    %253 = arith.addf %252, %9 : vector<1x192xf32>
    %254 = vector.extract_strided_slice %251 {offsets = [0, 0], sizes = [1, 128], strides = [1, 1]} : vector<1x192xf32> to vector<1x128xf32>
    %255 = vector.extract_strided_slice %253 {offsets = [0, 0], sizes = [1, 128], strides = [1, 1]} : vector<1x192xf32> to vector<1x128xf32>
    %256 = arith.addf %254, %255 : vector<1x128xf32>
    %257 = arith.negf %256 : vector<1x128xf32>
    %258 = math.exp %257 : vector<1x128xf32>
    %cst_58 = arith.constant 1.000000e+00 : f32
    %259 = vector.broadcast %cst_58 : f32 to vector<1x128xf32>
    %260 = arith.addf %259, %258 : vector<1x128xf32>
    %261 = arith.divf %259, %260 : vector<1x128xf32>
    %262 = vector.extract_strided_slice %261 {offsets = [0, 0], sizes = [1, 64], strides = [1, 1]} : vector<1x128xf32> to vector<1x64xf32>
    %263 = vector.extract_strided_slice %261 {offsets = [0, 64], sizes = [1, 64], strides = [1, 1]} : vector<1x128xf32> to vector<1x64xf32>
    %264 = vector.extract_strided_slice %251 {offsets = [0, 128], sizes = [1, 64], strides = [1, 1]} : vector<1x192xf32> to vector<1x64xf32>
    %265 = vector.extract_strided_slice %253 {offsets = [0, 128], sizes = [1, 64], strides = [1, 1]} : vector<1x192xf32> to vector<1x64xf32>
    %266 = arith.mulf %262, %265 : vector<1x64xf32>
    %267 = arith.addf %264, %266 : vector<1x64xf32>
    %268 = math.tanh %267 : vector<1x64xf32>
    %cst_59 = arith.constant 1.000000e+00 : f32
    %269 = vector.broadcast %cst_59 : f32 to vector<1x64xf32>
    %270 = arith.subf %269, %263 : vector<1x64xf32>
    %271 = arith.mulf %270, %268 : vector<1x64xf32>
    %272 = arith.mulf %263, %244 : vector<1x64xf32>
    %273 = arith.addf %271, %272 : vector<1x64xf32>
    %274 = vector.extract_strided_slice %273 {offsets = [0, 0], sizes = [1, 32], strides = [1, 1]} : vector<1x64xf32> to vector<1x32xf32>
    %c4 = arith.constant 4 : index
    %c0_60 = arith.constant 0 : index
    %275 = vector.load %arg10[%c4, %c0_60] : memref<16x64xf32, #tpu.memory_space<vmem>>, vector<1x32xf32>
    tpu.vector_store %arg10[%c4, %c0_60], %274 {strides = array<i32>} : memref<16x64xf32, #tpu.memory_space<vmem>>, vector<1x32xf32>,
    %276 = vector.extract_strided_slice %273 {offsets = [0, 32], sizes = [1, 32], strides = [1, 1]} : vector<1x64xf32> to vector<1x32xf32>
    %c11 = arith.constant 11 : index
    %c32_61 = arith.constant 32 : index
    %277 = vector.load %arg10[%c11, %c32_61] : memref<16x64xf32, #tpu.memory_space<vmem>>, vector<1x32xf32>
    tpu.vector_store %arg10[%c11, %c32_61], %276 {strides = array<i32>} : memref<16x64xf32, #tpu.memory_space<vmem>>, vector<1x32xf32>,
    %278 = vector.extract_strided_slice %128 {offsets = [5, 0], sizes = [1, 192], strides = [1, 1]} : vector<16x192xf32> to vector<1x192xf32>
    %279 = vector.extract_strided_slice %129 {offsets = [10, 0], sizes = [1, 192], strides = [1, 1]} : vector<16x192xf32> to vector<1x192xf32>
    %280 = arith.addf %278, %279 : vector<1x192xf32>
    %cst_62 = arith.constant dense<0.000000e+00> : vector<1x192xf32>
    %281 = tpu.matmul %273, %130, %cst_62 {dimension_numbers = #tpu.dot_dimension_numbers<[1], [0], [0], [1], [0, 0, 1, 1], [], []>} : vector<1x64xf32>, vector<64x192xf32>, vector<1x192xf32> -> vector<1x192xf32>
    %282 = arith.addf %281, %9 : vector<1x192xf32>
    %283 = vector.extract_strided_slice %280 {offsets = [0, 0], sizes = [1, 128], strides = [1, 1]} : vector<1x192xf32> to vector<1x128xf32>
    %284 = vector.extract_strided_slice %282 {offsets = [0, 0], sizes = [1, 128], strides = [1, 1]} : vector<1x192xf32> to vector<1x128xf32>
    %285 = arith.addf %283, %284 : vector<1x128xf32>
    %286 = arith.negf %285 : vector<1x128xf32>
    %287 = math.exp %286 : vector<1x128xf32>
    %cst_63 = arith.constant 1.000000e+00 : f32
    %288 = vector.broadcast %cst_63 : f32 to vector<1x128xf32>
    %289 = arith.addf %288, %287 : vector<1x128xf32>
    %290 = arith.divf %288, %289 : vector<1x128xf32>
    %291 = vector.extract_strided_slice %290 {offsets = [0, 0], sizes = [1, 64], strides = [1, 1]} : vector<1x128xf32> to vector<1x64xf32>
    %292 = vector.extract_strided_slice %290 {offsets = [0, 64], sizes = [1, 64], strides = [1, 1]} : vector<1x128xf32> to vector<1x64xf32>
    %293 = vector.extract_strided_slice %280 {offsets = [0, 128], sizes = [1, 64], strides = [1, 1]} : vector<1x192xf32> to vector<1x64xf32>
    %294 = vector.extract_strided_slice %282 {offsets = [0, 128], sizes = [1, 64], strides = [1, 1]} : vector<1x192xf32> to vector<1x64xf32>
    %295 = arith.mulf %291, %294 : vector<1x64xf32>
    %296 = arith.addf %293, %295 : vector<1x64xf32>
    %297 = math.tanh %296 : vector<1x64xf32>
    %cst_64 = arith.constant 1.000000e+00 : f32
    %298 = vector.broadcast %cst_64 : f32 to vector<1x64xf32>
    %299 = arith.subf %298, %292 : vector<1x64xf32>
    %300 = arith.mulf %299, %297 : vector<1x64xf32>
    %301 = arith.mulf %292, %273 : vector<1x64xf32>
    %302 = arith.addf %300, %301 : vector<1x64xf32>
    %303 = vector.extract_strided_slice %302 {offsets = [0, 0], sizes = [1, 32], strides = [1, 1]} : vector<1x64xf32> to vector<1x32xf32>
    %c5 = arith.constant 5 : index
    %c0_65 = arith.constant 0 : index
    %304 = vector.load %arg10[%c5, %c0_65] : memref<16x64xf32, #tpu.memory_space<vmem>>, vector<1x32xf32>
    tpu.vector_store %arg10[%c5, %c0_65], %303 {strides = array<i32>} : memref<16x64xf32, #tpu.memory_space<vmem>>, vector<1x32xf32>,
    %305 = vector.extract_strided_slice %302 {offsets = [0, 32], sizes = [1, 32], strides = [1, 1]} : vector<1x64xf32> to vector<1x32xf32>
    %c10 = arith.constant 10 : index
    %c32_66 = arith.constant 32 : index
    %306 = vector.load %arg10[%c10, %c32_66] : memref<16x64xf32, #tpu.memory_space<vmem>>, vector<1x32xf32>
    tpu.vector_store %arg10[%c10, %c32_66], %305 {strides = array<i32>} : memref<16x64xf32, #tpu.memory_space<vmem>>, vector<1x32xf32>,
    %307 = vector.extract_strided_slice %128 {offsets = [6, 0], sizes = [1, 192], strides = [1, 1]} : vector<16x192xf32> to vector<1x192xf32>
    %308 = vector.extract_strided_slice %129 {offsets = [9, 0], sizes = [1, 192], strides = [1, 1]} : vector<16x192xf32> to vector<1x192xf32>
    %309 = arith.addf %307, %308 : vector<1x192xf32>
    %cst_67 = arith.constant dense<0.000000e+00> : vector<1x192xf32>
    %310 = tpu.matmul %302, %130, %cst_67 {dimension_numbers = #tpu.dot_dimension_numbers<[1], [0], [0], [1], [0, 0, 1, 1], [], []>} : vector<1x64xf32>, vector<64x192xf32>, vector<1x192xf32> -> vector<1x192xf32>
    %311 = arith.addf %310, %9 : vector<1x192xf32>
    %312 = vector.extract_strided_slice %309 {offsets = [0, 0], sizes = [1, 128], strides = [1, 1]} : vector<1x192xf32> to vector<1x128xf32>
    %313 = vector.extract_strided_slice %311 {offsets = [0, 0], sizes = [1, 128], strides = [1, 1]} : vector<1x192xf32> to vector<1x128xf32>
    %314 = arith.addf %312, %313 : vector<1x128xf32>
    %315 = arith.negf %314 : vector<1x128xf32>
    %316 = math.exp %315 : vector<1x128xf32>
    %cst_68 = arith.constant 1.000000e+00 : f32
    %317 = vector.broadcast %cst_68 : f32 to vector<1x128xf32>
    %318 = arith.addf %317, %316 : vector<1x128xf32>
    %319 = arith.divf %317, %318 : vector<1x128xf32>
    %320 = vector.extract_strided_slice %319 {offsets = [0, 0], sizes = [1, 64], strides = [1, 1]} : vector<1x128xf32> to vector<1x64xf32>
    %321 = vector.extract_strided_slice %319 {offsets = [0, 64], sizes = [1, 64], strides = [1, 1]} : vector<1x128xf32> to vector<1x64xf32>
    %322 = vector.extract_strided_slice %309 {offsets = [0, 128], sizes = [1, 64], strides = [1, 1]} : vector<1x192xf32> to vector<1x64xf32>
    %323 = vector.extract_strided_slice %311 {offsets = [0, 128], sizes = [1, 64], strides = [1, 1]} : vector<1x192xf32> to vector<1x64xf32>
    %324 = arith.mulf %320, %323 : vector<1x64xf32>
    %325 = arith.addf %322, %324 : vector<1x64xf32>
    %326 = math.tanh %325 : vector<1x64xf32>
    %cst_69 = arith.constant 1.000000e+00 : f32
    %327 = vector.broadcast %cst_69 : f32 to vector<1x64xf32>
    %328 = arith.subf %327, %321 : vector<1x64xf32>
    %329 = arith.mulf %328, %326 : vector<1x64xf32>
    %330 = arith.mulf %321, %302 : vector<1x64xf32>
    %331 = arith.addf %329, %330 : vector<1x64xf32>
    %332 = vector.extract_strided_slice %331 {offsets = [0, 0], sizes = [1, 32], strides = [1, 1]} : vector<1x64xf32> to vector<1x32xf32>
    %c6 = arith.constant 6 : index
    %c0_70 = arith.constant 0 : index
    %333 = vector.load %arg10[%c6, %c0_70] : memref<16x64xf32, #tpu.memory_space<vmem>>, vector<1x32xf32>
    tpu.vector_store %arg10[%c6, %c0_70], %332 {strides = array<i32>} : memref<16x64xf32, #tpu.memory_space<vmem>>, vector<1x32xf32>,
    %334 = vector.extract_strided_slice %331 {offsets = [0, 32], sizes = [1, 32], strides = [1, 1]} : vector<1x64xf32> to vector<1x32xf32>
    %c9 = arith.constant 9 : index
    %c32_71 = arith.constant 32 : index
    %335 = vector.load %arg10[%c9, %c32_71] : memref<16x64xf32, #tpu.memory_space<vmem>>, vector<1x32xf32>
    tpu.vector_store %arg10[%c9, %c32_71], %334 {strides = array<i32>} : memref<16x64xf32, #tpu.memory_space<vmem>>, vector<1x32xf32>,
    %336 = vector.extract_strided_slice %128 {offsets = [7, 0], sizes = [1, 192], strides = [1, 1]} : vector<16x192xf32> to vector<1x192xf32>
    %337 = vector.extract_strided_slice %129 {offsets = [8, 0], sizes = [1, 192], strides = [1, 1]} : vector<16x192xf32> to vector<1x192xf32>
    %338 = arith.addf %336, %337 : vector<1x192xf32>
    %cst_72 = arith.constant dense<0.000000e+00> : vector<1x192xf32>
    %339 = tpu.matmul %331, %130, %cst_72 {dimension_numbers = #tpu.dot_dimension_numbers<[1], [0], [0], [1], [0, 0, 1, 1], [], []>} : vector<1x64xf32>, vector<64x192xf32>, vector<1x192xf32> -> vector<1x192xf32>
    %340 = arith.addf %339, %9 : vector<1x192xf32>
    %341 = vector.extract_strided_slice %338 {offsets = [0, 0], sizes = [1, 128], strides = [1, 1]} : vector<1x192xf32> to vector<1x128xf32>
    %342 = vector.extract_strided_slice %340 {offsets = [0, 0], sizes = [1, 128], strides = [1, 1]} : vector<1x192xf32> to vector<1x128xf32>
    %343 = arith.addf %341, %342 : vector<1x128xf32>
    %344 = arith.negf %343 : vector<1x128xf32>
    %345 = math.exp %344 : vector<1x128xf32>
    %cst_73 = arith.constant 1.000000e+00 : f32
    %346 = vector.broadcast %cst_73 : f32 to vector<1x128xf32>
    %347 = arith.addf %346, %345 : vector<1x128xf32>
    %348 = arith.divf %346, %347 : vector<1x128xf32>
    %349 = vector.extract_strided_slice %348 {offsets = [0, 0], sizes = [1, 64], strides = [1, 1]} : vector<1x128xf32> to vector<1x64xf32>
    %350 = vector.extract_strided_slice %348 {offsets = [0, 64], sizes = [1, 64], strides = [1, 1]} : vector<1x128xf32> to vector<1x64xf32>
    %351 = vector.extract_strided_slice %338 {offsets = [0, 128], sizes = [1, 64], strides = [1, 1]} : vector<1x192xf32> to vector<1x64xf32>
    %352 = vector.extract_strided_slice %340 {offsets = [0, 128], sizes = [1, 64], strides = [1, 1]} : vector<1x192xf32> to vector<1x64xf32>
    %353 = arith.mulf %349, %352 : vector<1x64xf32>
    %354 = arith.addf %351, %353 : vector<1x64xf32>
    %355 = math.tanh %354 : vector<1x64xf32>
    %cst_74 = arith.constant 1.000000e+00 : f32
    %356 = vector.broadcast %cst_74 : f32 to vector<1x64xf32>
    %357 = arith.subf %356, %350 : vector<1x64xf32>
    %358 = arith.mulf %357, %355 : vector<1x64xf32>
    %359 = arith.mulf %350, %331 : vector<1x64xf32>
    %360 = arith.addf %358, %359 : vector<1x64xf32>
    %361 = vector.extract_strided_slice %360 {offsets = [0, 0], sizes = [1, 32], strides = [1, 1]} : vector<1x64xf32> to vector<1x32xf32>
    %c7 = arith.constant 7 : index
    %c0_75 = arith.constant 0 : index
    %362 = vector.load %arg10[%c7, %c0_75] : memref<16x64xf32, #tpu.memory_space<vmem>>, vector<1x32xf32>
    tpu.vector_store %arg10[%c7, %c0_75], %361 {strides = array<i32>} : memref<16x64xf32, #tpu.memory_space<vmem>>, vector<1x32xf32>,
    %363 = vector.extract_strided_slice %360 {offsets = [0, 32], sizes = [1, 32], strides = [1, 1]} : vector<1x64xf32> to vector<1x32xf32>
    %c8 = arith.constant 8 : index
    %c32_76 = arith.constant 32 : index
    %364 = vector.load %arg10[%c8, %c32_76] : memref<16x64xf32, #tpu.memory_space<vmem>>, vector<1x32xf32>
    tpu.vector_store %arg10[%c8, %c32_76], %363 {strides = array<i32>} : memref<16x64xf32, #tpu.memory_space<vmem>>, vector<1x32xf32>,
    %365 = vector.extract_strided_slice %128 {offsets = [8, 0], sizes = [1, 192], strides = [1, 1]} : vector<16x192xf32> to vector<1x192xf32>
    %366 = vector.extract_strided_slice %129 {offsets = [7, 0], sizes = [1, 192], strides = [1, 1]} : vector<16x192xf32> to vector<1x192xf32>
    %367 = arith.addf %365, %366 : vector<1x192xf32>
    %cst_77 = arith.constant dense<0.000000e+00> : vector<1x192xf32>
    %368 = tpu.matmul %360, %130, %cst_77 {dimension_numbers = #tpu.dot_dimension_numbers<[1], [0], [0], [1], [0, 0, 1, 1], [], []>} : vector<1x64xf32>, vector<64x192xf32>, vector<1x192xf32> -> vector<1x192xf32>
    %369 = arith.addf %368, %9 : vector<1x192xf32>
    %370 = vector.extract_strided_slice %367 {offsets = [0, 0], sizes = [1, 128], strides = [1, 1]} : vector<1x192xf32> to vector<1x128xf32>
    %371 = vector.extract_strided_slice %369 {offsets = [0, 0], sizes = [1, 128], strides = [1, 1]} : vector<1x192xf32> to vector<1x128xf32>
    %372 = arith.addf %370, %371 : vector<1x128xf32>
    %373 = arith.negf %372 : vector<1x128xf32>
    %374 = math.exp %373 : vector<1x128xf32>
    %cst_78 = arith.constant 1.000000e+00 : f32
    %375 = vector.broadcast %cst_78 : f32 to vector<1x128xf32>
    %376 = arith.addf %375, %374 : vector<1x128xf32>
    %377 = arith.divf %375, %376 : vector<1x128xf32>
    %378 = vector.extract_strided_slice %377 {offsets = [0, 0], sizes = [1, 64], strides = [1, 1]} : vector<1x128xf32> to vector<1x64xf32>
    %379 = vector.extract_strided_slice %377 {offsets = [0, 64], sizes = [1, 64], strides = [1, 1]} : vector<1x128xf32> to vector<1x64xf32>
    %380 = vector.extract_strided_slice %367 {offsets = [0, 128], sizes = [1, 64], strides = [1, 1]} : vector<1x192xf32> to vector<1x64xf32>
    %381 = vector.extract_strided_slice %369 {offsets = [0, 128], sizes = [1, 64], strides = [1, 1]} : vector<1x192xf32> to vector<1x64xf32>
    %382 = arith.mulf %378, %381 : vector<1x64xf32>
    %383 = arith.addf %380, %382 : vector<1x64xf32>
    %384 = math.tanh %383 : vector<1x64xf32>
    %cst_79 = arith.constant 1.000000e+00 : f32
    %385 = vector.broadcast %cst_79 : f32 to vector<1x64xf32>
    %386 = arith.subf %385, %379 : vector<1x64xf32>
    %387 = arith.mulf %386, %384 : vector<1x64xf32>
    %388 = arith.mulf %379, %360 : vector<1x64xf32>
    %389 = arith.addf %387, %388 : vector<1x64xf32>
    %390 = vector.extract_strided_slice %389 {offsets = [0, 0], sizes = [1, 32], strides = [1, 1]} : vector<1x64xf32> to vector<1x32xf32>
    %c8_80 = arith.constant 8 : index
    %c0_81 = arith.constant 0 : index
    %391 = vector.load %arg10[%c8_80, %c0_81] : memref<16x64xf32, #tpu.memory_space<vmem>>, vector<1x32xf32>
    tpu.vector_store %arg10[%c8_80, %c0_81], %390 {strides = array<i32>} : memref<16x64xf32, #tpu.memory_space<vmem>>, vector<1x32xf32>,
    %392 = vector.extract_strided_slice %389 {offsets = [0, 32], sizes = [1, 32], strides = [1, 1]} : vector<1x64xf32> to vector<1x32xf32>
    %c7_82 = arith.constant 7 : index
    %c32_83 = arith.constant 32 : index
    %393 = vector.load %arg10[%c7_82, %c32_83] : memref<16x64xf32, #tpu.memory_space<vmem>>, vector<1x32xf32>
    tpu.vector_store %arg10[%c7_82, %c32_83], %392 {strides = array<i32>} : memref<16x64xf32, #tpu.memory_space<vmem>>, vector<1x32xf32>,
    %394 = vector.extract_strided_slice %128 {offsets = [9, 0], sizes = [1, 192], strides = [1, 1]} : vector<16x192xf32> to vector<1x192xf32>
    %395 = vector.extract_strided_slice %129 {offsets = [6, 0], sizes = [1, 192], strides = [1, 1]} : vector<16x192xf32> to vector<1x192xf32>
    %396 = arith.addf %394, %395 : vector<1x192xf32>
    %cst_84 = arith.constant dense<0.000000e+00> : vector<1x192xf32>
    %397 = tpu.matmul %389, %130, %cst_84 {dimension_numbers = #tpu.dot_dimension_numbers<[1], [0], [0], [1], [0, 0, 1, 1], [], []>} : vector<1x64xf32>, vector<64x192xf32>, vector<1x192xf32> -> vector<1x192xf32>
    %398 = arith.addf %397, %9 : vector<1x192xf32>
    %399 = vector.extract_strided_slice %396 {offsets = [0, 0], sizes = [1, 128], strides = [1, 1]} : vector<1x192xf32> to vector<1x128xf32>
    %400 = vector.extract_strided_slice %398 {offsets = [0, 0], sizes = [1, 128], strides = [1, 1]} : vector<1x192xf32> to vector<1x128xf32>
    %401 = arith.addf %399, %400 : vector<1x128xf32>
    %402 = arith.negf %401 : vector<1x128xf32>
    %403 = math.exp %402 : vector<1x128xf32>
    %cst_85 = arith.constant 1.000000e+00 : f32
    %404 = vector.broadcast %cst_85 : f32 to vector<1x128xf32>
    %405 = arith.addf %404, %403 : vector<1x128xf32>
    %406 = arith.divf %404, %405 : vector<1x128xf32>
    %407 = vector.extract_strided_slice %406 {offsets = [0, 0], sizes = [1, 64], strides = [1, 1]} : vector<1x128xf32> to vector<1x64xf32>
    %408 = vector.extract_strided_slice %406 {offsets = [0, 64], sizes = [1, 64], strides = [1, 1]} : vector<1x128xf32> to vector<1x64xf32>
    %409 = vector.extract_strided_slice %396 {offsets = [0, 128], sizes = [1, 64], strides = [1, 1]} : vector<1x192xf32> to vector<1x64xf32>
    %410 = vector.extract_strided_slice %398 {offsets = [0, 128], sizes = [1, 64], strides = [1, 1]} : vector<1x192xf32> to vector<1x64xf32>
    %411 = arith.mulf %407, %410 : vector<1x64xf32>
    %412 = arith.addf %409, %411 : vector<1x64xf32>
    %413 = math.tanh %412 : vector<1x64xf32>
    %cst_86 = arith.constant 1.000000e+00 : f32
    %414 = vector.broadcast %cst_86 : f32 to vector<1x64xf32>
    %415 = arith.subf %414, %408 : vector<1x64xf32>
    %416 = arith.mulf %415, %413 : vector<1x64xf32>
    %417 = arith.mulf %408, %389 : vector<1x64xf32>
    %418 = arith.addf %416, %417 : vector<1x64xf32>
    %419 = vector.extract_strided_slice %418 {offsets = [0, 0], sizes = [1, 32], strides = [1, 1]} : vector<1x64xf32> to vector<1x32xf32>
    %c9_87 = arith.constant 9 : index
    %c0_88 = arith.constant 0 : index
    %420 = vector.load %arg10[%c9_87, %c0_88] : memref<16x64xf32, #tpu.memory_space<vmem>>, vector<1x32xf32>
    tpu.vector_store %arg10[%c9_87, %c0_88], %419 {strides = array<i32>} : memref<16x64xf32, #tpu.memory_space<vmem>>, vector<1x32xf32>,
    %421 = vector.extract_strided_slice %418 {offsets = [0, 32], sizes = [1, 32], strides = [1, 1]} : vector<1x64xf32> to vector<1x32xf32>
    %c6_89 = arith.constant 6 : index
    %c32_90 = arith.constant 32 : index
    %422 = vector.load %arg10[%c6_89, %c32_90] : memref<16x64xf32, #tpu.memory_space<vmem>>, vector<1x32xf32>
    tpu.vector_store %arg10[%c6_89, %c32_90], %421 {strides = array<i32>} : memref<16x64xf32, #tpu.memory_space<vmem>>, vector<1x32xf32>,
    %423 = vector.extract_strided_slice %128 {offsets = [10, 0], sizes = [1, 192], strides = [1, 1]} : vector<16x192xf32> to vector<1x192xf32>
    %424 = vector.extract_strided_slice %129 {offsets = [5, 0], sizes = [1, 192], strides = [1, 1]} : vector<16x192xf32> to vector<1x192xf32>
    %425 = arith.addf %423, %424 : vector<1x192xf32>
    %cst_91 = arith.constant dense<0.000000e+00> : vector<1x192xf32>
    %426 = tpu.matmul %418, %130, %cst_91 {dimension_numbers = #tpu.dot_dimension_numbers<[1], [0], [0], [1], [0, 0, 1, 1], [], []>} : vector<1x64xf32>, vector<64x192xf32>, vector<1x192xf32> -> vector<1x192xf32>
    %427 = arith.addf %426, %9 : vector<1x192xf32>
    %428 = vector.extract_strided_slice %425 {offsets = [0, 0], sizes = [1, 128], strides = [1, 1]} : vector<1x192xf32> to vector<1x128xf32>
    %429 = vector.extract_strided_slice %427 {offsets = [0, 0], sizes = [1, 128], strides = [1, 1]} : vector<1x192xf32> to vector<1x128xf32>
    %430 = arith.addf %428, %429 : vector<1x128xf32>
    %431 = arith.negf %430 : vector<1x128xf32>
    %432 = math.exp %431 : vector<1x128xf32>
    %cst_92 = arith.constant 1.000000e+00 : f32
    %433 = vector.broadcast %cst_92 : f32 to vector<1x128xf32>
    %434 = arith.addf %433, %432 : vector<1x128xf32>
    %435 = arith.divf %433, %434 : vector<1x128xf32>
    %436 = vector.extract_strided_slice %435 {offsets = [0, 0], sizes = [1, 64], strides = [1, 1]} : vector<1x128xf32> to vector<1x64xf32>
    %437 = vector.extract_strided_slice %435 {offsets = [0, 64], sizes = [1, 64], strides = [1, 1]} : vector<1x128xf32> to vector<1x64xf32>
    %438 = vector.extract_strided_slice %425 {offsets = [0, 128], sizes = [1, 64], strides = [1, 1]} : vector<1x192xf32> to vector<1x64xf32>
    %439 = vector.extract_strided_slice %427 {offsets = [0, 128], sizes = [1, 64], strides = [1, 1]} : vector<1x192xf32> to vector<1x64xf32>
    %440 = arith.mulf %436, %439 : vector<1x64xf32>
    %441 = arith.addf %438, %440 : vector<1x64xf32>
    %442 = math.tanh %441 : vector<1x64xf32>
    %cst_93 = arith.constant 1.000000e+00 : f32
    %443 = vector.broadcast %cst_93 : f32 to vector<1x64xf32>
    %444 = arith.subf %443, %437 : vector<1x64xf32>
    %445 = arith.mulf %444, %442 : vector<1x64xf32>
    %446 = arith.mulf %437, %418 : vector<1x64xf32>
    %447 = arith.addf %445, %446 : vector<1x64xf32>
    %448 = vector.extract_strided_slice %447 {offsets = [0, 0], sizes = [1, 32], strides = [1, 1]} : vector<1x64xf32> to vector<1x32xf32>
    %c10_94 = arith.constant 10 : index
    %c0_95 = arith.constant 0 : index
    %449 = vector.load %arg10[%c10_94, %c0_95] : memref<16x64xf32, #tpu.memory_space<vmem>>, vector<1x32xf32>
    tpu.vector_store %arg10[%c10_94, %c0_95], %448 {strides = array<i32>} : memref<16x64xf32, #tpu.memory_space<vmem>>, vector<1x32xf32>,
    %450 = vector.extract_strided_slice %447 {offsets = [0, 32], sizes = [1, 32], strides = [1, 1]} : vector<1x64xf32> to vector<1x32xf32>
    %c5_96 = arith.constant 5 : index
    %c32_97 = arith.constant 32 : index
    %451 = vector.load %arg10[%c5_96, %c32_97] : memref<16x64xf32, #tpu.memory_space<vmem>>, vector<1x32xf32>
    tpu.vector_store %arg10[%c5_96, %c32_97], %450 {strides = array<i32>} : memref<16x64xf32, #tpu.memory_space<vmem>>, vector<1x32xf32>,
    %452 = vector.extract_strided_slice %128 {offsets = [11, 0], sizes = [1, 192], strides = [1, 1]} : vector<16x192xf32> to vector<1x192xf32>
    %453 = vector.extract_strided_slice %129 {offsets = [4, 0], sizes = [1, 192], strides = [1, 1]} : vector<16x192xf32> to vector<1x192xf32>
    %454 = arith.addf %452, %453 : vector<1x192xf32>
    %cst_98 = arith.constant dense<0.000000e+00> : vector<1x192xf32>
    %455 = tpu.matmul %447, %130, %cst_98 {dimension_numbers = #tpu.dot_dimension_numbers<[1], [0], [0], [1], [0, 0, 1, 1], [], []>} : vector<1x64xf32>, vector<64x192xf32>, vector<1x192xf32> -> vector<1x192xf32>
    %456 = arith.addf %455, %9 : vector<1x192xf32>
    %457 = vector.extract_strided_slice %454 {offsets = [0, 0], sizes = [1, 128], strides = [1, 1]} : vector<1x192xf32> to vector<1x128xf32>
    %458 = vector.extract_strided_slice %456 {offsets = [0, 0], sizes = [1, 128], strides = [1, 1]} : vector<1x192xf32> to vector<1x128xf32>
    %459 = arith.addf %457, %458 : vector<1x128xf32>
    %460 = arith.negf %459 : vector<1x128xf32>
    %461 = math.exp %460 : vector<1x128xf32>
    %cst_99 = arith.constant 1.000000e+00 : f32
    %462 = vector.broadcast %cst_99 : f32 to vector<1x128xf32>
    %463 = arith.addf %462, %461 : vector<1x128xf32>
    %464 = arith.divf %462, %463 : vector<1x128xf32>
    %465 = vector.extract_strided_slice %464 {offsets = [0, 0], sizes = [1, 64], strides = [1, 1]} : vector<1x128xf32> to vector<1x64xf32>
    %466 = vector.extract_strided_slice %464 {offsets = [0, 64], sizes = [1, 64], strides = [1, 1]} : vector<1x128xf32> to vector<1x64xf32>
    %467 = vector.extract_strided_slice %454 {offsets = [0, 128], sizes = [1, 64], strides = [1, 1]} : vector<1x192xf32> to vector<1x64xf32>
    %468 = vector.extract_strided_slice %456 {offsets = [0, 128], sizes = [1, 64], strides = [1, 1]} : vector<1x192xf32> to vector<1x64xf32>
    %469 = arith.mulf %465, %468 : vector<1x64xf32>
    %470 = arith.addf %467, %469 : vector<1x64xf32>
    %471 = math.tanh %470 : vector<1x64xf32>
    %cst_100 = arith.constant 1.000000e+00 : f32
    %472 = vector.broadcast %cst_100 : f32 to vector<1x64xf32>
    %473 = arith.subf %472, %466 : vector<1x64xf32>
    %474 = arith.mulf %473, %471 : vector<1x64xf32>
    %475 = arith.mulf %466, %447 : vector<1x64xf32>
    %476 = arith.addf %474, %475 : vector<1x64xf32>
    %477 = vector.extract_strided_slice %476 {offsets = [0, 0], sizes = [1, 32], strides = [1, 1]} : vector<1x64xf32> to vector<1x32xf32>
    %c11_101 = arith.constant 11 : index
    %c0_102 = arith.constant 0 : index
    %478 = vector.load %arg10[%c11_101, %c0_102] : memref<16x64xf32, #tpu.memory_space<vmem>>, vector<1x32xf32>
    tpu.vector_store %arg10[%c11_101, %c0_102], %477 {strides = array<i32>} : memref<16x64xf32, #tpu.memory_space<vmem>>, vector<1x32xf32>,
    %479 = vector.extract_strided_slice %476 {offsets = [0, 32], sizes = [1, 32], strides = [1, 1]} : vector<1x64xf32> to vector<1x32xf32>
    %c4_103 = arith.constant 4 : index
    %c32_104 = arith.constant 32 : index
    %480 = vector.load %arg10[%c4_103, %c32_104] : memref<16x64xf32, #tpu.memory_space<vmem>>, vector<1x32xf32>
    tpu.vector_store %arg10[%c4_103, %c32_104], %479 {strides = array<i32>} : memref<16x64xf32, #tpu.memory_space<vmem>>, vector<1x32xf32>,
    %481 = vector.extract_strided_slice %128 {offsets = [12, 0], sizes = [1, 192], strides = [1, 1]} : vector<16x192xf32> to vector<1x192xf32>
    %482 = vector.extract_strided_slice %129 {offsets = [3, 0], sizes = [1, 192], strides = [1, 1]} : vector<16x192xf32> to vector<1x192xf32>
    %483 = arith.addf %481, %482 : vector<1x192xf32>
    %cst_105 = arith.constant dense<0.000000e+00> : vector<1x192xf32>
    %484 = tpu.matmul %476, %130, %cst_105 {dimension_numbers = #tpu.dot_dimension_numbers<[1], [0], [0], [1], [0, 0, 1, 1], [], []>} : vector<1x64xf32>, vector<64x192xf32>, vector<1x192xf32> -> vector<1x192xf32>
    %485 = arith.addf %484, %9 : vector<1x192xf32>
    %486 = vector.extract_strided_slice %483 {offsets = [0, 0], sizes = [1, 128], strides = [1, 1]} : vector<1x192xf32> to vector<1x128xf32>
    %487 = vector.extract_strided_slice %485 {offsets = [0, 0], sizes = [1, 128], strides = [1, 1]} : vector<1x192xf32> to vector<1x128xf32>
    %488 = arith.addf %486, %487 : vector<1x128xf32>
    %489 = arith.negf %488 : vector<1x128xf32>
    %490 = math.exp %489 : vector<1x128xf32>
    %cst_106 = arith.constant 1.000000e+00 : f32
    %491 = vector.broadcast %cst_106 : f32 to vector<1x128xf32>
    %492 = arith.addf %491, %490 : vector<1x128xf32>
    %493 = arith.divf %491, %492 : vector<1x128xf32>
    %494 = vector.extract_strided_slice %493 {offsets = [0, 0], sizes = [1, 64], strides = [1, 1]} : vector<1x128xf32> to vector<1x64xf32>
    %495 = vector.extract_strided_slice %493 {offsets = [0, 64], sizes = [1, 64], strides = [1, 1]} : vector<1x128xf32> to vector<1x64xf32>
    %496 = vector.extract_strided_slice %483 {offsets = [0, 128], sizes = [1, 64], strides = [1, 1]} : vector<1x192xf32> to vector<1x64xf32>
    %497 = vector.extract_strided_slice %485 {offsets = [0, 128], sizes = [1, 64], strides = [1, 1]} : vector<1x192xf32> to vector<1x64xf32>
    %498 = arith.mulf %494, %497 : vector<1x64xf32>
    %499 = arith.addf %496, %498 : vector<1x64xf32>
    %500 = math.tanh %499 : vector<1x64xf32>
    %cst_107 = arith.constant 1.000000e+00 : f32
    %501 = vector.broadcast %cst_107 : f32 to vector<1x64xf32>
    %502 = arith.subf %501, %495 : vector<1x64xf32>
    %503 = arith.mulf %502, %500 : vector<1x64xf32>
    %504 = arith.mulf %495, %476 : vector<1x64xf32>
    %505 = arith.addf %503, %504 : vector<1x64xf32>
    %506 = vector.extract_strided_slice %505 {offsets = [0, 0], sizes = [1, 32], strides = [1, 1]} : vector<1x64xf32> to vector<1x32xf32>
    %c12_108 = arith.constant 12 : index
    %c0_109 = arith.constant 0 : index
    %507 = vector.load %arg10[%c12_108, %c0_109] : memref<16x64xf32, #tpu.memory_space<vmem>>, vector<1x32xf32>
    tpu.vector_store %arg10[%c12_108, %c0_109], %506 {strides = array<i32>} : memref<16x64xf32, #tpu.memory_space<vmem>>, vector<1x32xf32>,
    %508 = vector.extract_strided_slice %505 {offsets = [0, 32], sizes = [1, 32], strides = [1, 1]} : vector<1x64xf32> to vector<1x32xf32>
    %c3_110 = arith.constant 3 : index
    %c32_111 = arith.constant 32 : index
    %509 = vector.load %arg10[%c3_110, %c32_111] : memref<16x64xf32, #tpu.memory_space<vmem>>, vector<1x32xf32>
    tpu.vector_store %arg10[%c3_110, %c32_111], %508 {strides = array<i32>} : memref<16x64xf32, #tpu.memory_space<vmem>>, vector<1x32xf32>,
    %510 = vector.extract_strided_slice %128 {offsets = [13, 0], sizes = [1, 192], strides = [1, 1]} : vector<16x192xf32> to vector<1x192xf32>
    %511 = vector.extract_strided_slice %129 {offsets = [2, 0], sizes = [1, 192], strides = [1, 1]} : vector<16x192xf32> to vector<1x192xf32>
    %512 = arith.addf %510, %511 : vector<1x192xf32>
    %cst_112 = arith.constant dense<0.000000e+00> : vector<1x192xf32>
    %513 = tpu.matmul %505, %130, %cst_112 {dimension_numbers = #tpu.dot_dimension_numbers<[1], [0], [0], [1], [0, 0, 1, 1], [], []>} : vector<1x64xf32>, vector<64x192xf32>, vector<1x192xf32> -> vector<1x192xf32>
    %514 = arith.addf %513, %9 : vector<1x192xf32>
    %515 = vector.extract_strided_slice %512 {offsets = [0, 0], sizes = [1, 128], strides = [1, 1]} : vector<1x192xf32> to vector<1x128xf32>
    %516 = vector.extract_strided_slice %514 {offsets = [0, 0], sizes = [1, 128], strides = [1, 1]} : vector<1x192xf32> to vector<1x128xf32>
    %517 = arith.addf %515, %516 : vector<1x128xf32>
    %518 = arith.negf %517 : vector<1x128xf32>
    %519 = math.exp %518 : vector<1x128xf32>
    %cst_113 = arith.constant 1.000000e+00 : f32
    %520 = vector.broadcast %cst_113 : f32 to vector<1x128xf32>
    %521 = arith.addf %520, %519 : vector<1x128xf32>
    %522 = arith.divf %520, %521 : vector<1x128xf32>
    %523 = vector.extract_strided_slice %522 {offsets = [0, 0], sizes = [1, 64], strides = [1, 1]} : vector<1x128xf32> to vector<1x64xf32>
    %524 = vector.extract_strided_slice %522 {offsets = [0, 64], sizes = [1, 64], strides = [1, 1]} : vector<1x128xf32> to vector<1x64xf32>
    %525 = vector.extract_strided_slice %512 {offsets = [0, 128], sizes = [1, 64], strides = [1, 1]} : vector<1x192xf32> to vector<1x64xf32>
    %526 = vector.extract_strided_slice %514 {offsets = [0, 128], sizes = [1, 64], strides = [1, 1]} : vector<1x192xf32> to vector<1x64xf32>
    %527 = arith.mulf %523, %526 : vector<1x64xf32>
    %528 = arith.addf %525, %527 : vector<1x64xf32>
    %529 = math.tanh %528 : vector<1x64xf32>
    %cst_114 = arith.constant 1.000000e+00 : f32
    %530 = vector.broadcast %cst_114 : f32 to vector<1x64xf32>
    %531 = arith.subf %530, %524 : vector<1x64xf32>
    %532 = arith.mulf %531, %529 : vector<1x64xf32>
    %533 = arith.mulf %524, %505 : vector<1x64xf32>
    %534 = arith.addf %532, %533 : vector<1x64xf32>
    %535 = vector.extract_strided_slice %534 {offsets = [0, 0], sizes = [1, 32], strides = [1, 1]} : vector<1x64xf32> to vector<1x32xf32>
    %c13_115 = arith.constant 13 : index
    %c0_116 = arith.constant 0 : index
    %536 = vector.load %arg10[%c13_115, %c0_116] : memref<16x64xf32, #tpu.memory_space<vmem>>, vector<1x32xf32>
    tpu.vector_store %arg10[%c13_115, %c0_116], %535 {strides = array<i32>} : memref<16x64xf32, #tpu.memory_space<vmem>>, vector<1x32xf32>,
    %537 = vector.extract_strided_slice %534 {offsets = [0, 32], sizes = [1, 32], strides = [1, 1]} : vector<1x64xf32> to vector<1x32xf32>
    %c2_117 = arith.constant 2 : index
    %c32_118 = arith.constant 32 : index
    %538 = vector.load %arg10[%c2_117, %c32_118] : memref<16x64xf32, #tpu.memory_space<vmem>>, vector<1x32xf32>
    tpu.vector_store %arg10[%c2_117, %c32_118], %537 {strides = array<i32>} : memref<16x64xf32, #tpu.memory_space<vmem>>, vector<1x32xf32>,
    %539 = vector.extract_strided_slice %128 {offsets = [14, 0], sizes = [1, 192], strides = [1, 1]} : vector<16x192xf32> to vector<1x192xf32>
    %540 = vector.extract_strided_slice %129 {offsets = [1, 0], sizes = [1, 192], strides = [1, 1]} : vector<16x192xf32> to vector<1x192xf32>
    %541 = arith.addf %539, %540 : vector<1x192xf32>
    %cst_119 = arith.constant dense<0.000000e+00> : vector<1x192xf32>
    %542 = tpu.matmul %534, %130, %cst_119 {dimension_numbers = #tpu.dot_dimension_numbers<[1], [0], [0], [1], [0, 0, 1, 1], [], []>} : vector<1x64xf32>, vector<64x192xf32>, vector<1x192xf32> -> vector<1x192xf32>
    %543 = arith.addf %542, %9 : vector<1x192xf32>
    %544 = vector.extract_strided_slice %541 {offsets = [0, 0], sizes = [1, 128], strides = [1, 1]} : vector<1x192xf32> to vector<1x128xf32>
    %545 = vector.extract_strided_slice %543 {offsets = [0, 0], sizes = [1, 128], strides = [1, 1]} : vector<1x192xf32> to vector<1x128xf32>
    %546 = arith.addf %544, %545 : vector<1x128xf32>
    %547 = arith.negf %546 : vector<1x128xf32>
    %548 = math.exp %547 : vector<1x128xf32>
    %cst_120 = arith.constant 1.000000e+00 : f32
    %549 = vector.broadcast %cst_120 : f32 to vector<1x128xf32>
    %550 = arith.addf %549, %548 : vector<1x128xf32>
    %551 = arith.divf %549, %550 : vector<1x128xf32>
    %552 = vector.extract_strided_slice %551 {offsets = [0, 0], sizes = [1, 64], strides = [1, 1]} : vector<1x128xf32> to vector<1x64xf32>
    %553 = vector.extract_strided_slice %551 {offsets = [0, 64], sizes = [1, 64], strides = [1, 1]} : vector<1x128xf32> to vector<1x64xf32>
    %554 = vector.extract_strided_slice %541 {offsets = [0, 128], sizes = [1, 64], strides = [1, 1]} : vector<1x192xf32> to vector<1x64xf32>
    %555 = vector.extract_strided_slice %543 {offsets = [0, 128], sizes = [1, 64], strides = [1, 1]} : vector<1x192xf32> to vector<1x64xf32>
    %556 = arith.mulf %552, %555 : vector<1x64xf32>
    %557 = arith.addf %554, %556 : vector<1x64xf32>
    %558 = math.tanh %557 : vector<1x64xf32>
    %cst_121 = arith.constant 1.000000e+00 : f32
    %559 = vector.broadcast %cst_121 : f32 to vector<1x64xf32>
    %560 = arith.subf %559, %553 : vector<1x64xf32>
    %561 = arith.mulf %560, %558 : vector<1x64xf32>
    %562 = arith.mulf %553, %534 : vector<1x64xf32>
    %563 = arith.addf %561, %562 : vector<1x64xf32>
    %564 = vector.extract_strided_slice %563 {offsets = [0, 0], sizes = [1, 32], strides = [1, 1]} : vector<1x64xf32> to vector<1x32xf32>
    %c14_122 = arith.constant 14 : index
    %c0_123 = arith.constant 0 : index
    %565 = vector.load %arg10[%c14_122, %c0_123] : memref<16x64xf32, #tpu.memory_space<vmem>>, vector<1x32xf32>
    tpu.vector_store %arg10[%c14_122, %c0_123], %564 {strides = array<i32>} : memref<16x64xf32, #tpu.memory_space<vmem>>, vector<1x32xf32>,
    %566 = vector.extract_strided_slice %563 {offsets = [0, 32], sizes = [1, 32], strides = [1, 1]} : vector<1x64xf32> to vector<1x32xf32>
    %c1_124 = arith.constant 1 : index
    %c32_125 = arith.constant 32 : index
    %567 = vector.load %arg10[%c1_124, %c32_125] : memref<16x64xf32, #tpu.memory_space<vmem>>, vector<1x32xf32>
    tpu.vector_store %arg10[%c1_124, %c32_125], %566 {strides = array<i32>} : memref<16x64xf32, #tpu.memory_space<vmem>>, vector<1x32xf32>,
    %568 = vector.extract_strided_slice %128 {offsets = [15, 0], sizes = [1, 192], strides = [1, 1]} : vector<16x192xf32> to vector<1x192xf32>
    %569 = vector.extract_strided_slice %129 {offsets = [0, 0], sizes = [1, 192], strides = [1, 1]} : vector<16x192xf32> to vector<1x192xf32>
    %570 = arith.addf %568, %569 : vector<1x192xf32>
    %cst_126 = arith.constant dense<0.000000e+00> : vector<1x192xf32>
    %571 = tpu.matmul %563, %130, %cst_126 {dimension_numbers = #tpu.dot_dimension_numbers<[1], [0], [0], [1], [0, 0, 1, 1], [], []>} : vector<1x64xf32>, vector<64x192xf32>, vector<1x192xf32> -> vector<1x192xf32>
    %572 = arith.addf %571, %9 : vector<1x192xf32>
    %573 = vector.extract_strided_slice %570 {offsets = [0, 0], sizes = [1, 128], strides = [1, 1]} : vector<1x192xf32> to vector<1x128xf32>
    %574 = vector.extract_strided_slice %572 {offsets = [0, 0], sizes = [1, 128], strides = [1, 1]} : vector<1x192xf32> to vector<1x128xf32>
    %575 = arith.addf %573, %574 : vector<1x128xf32>
    %576 = arith.negf %575 : vector<1x128xf32>
    %577 = math.exp %576 : vector<1x128xf32>
    %cst_127 = arith.constant 1.000000e+00 : f32
    %578 = vector.broadcast %cst_127 : f32 to vector<1x128xf32>
    %579 = arith.addf %578, %577 : vector<1x128xf32>
    %580 = arith.divf %578, %579 : vector<1x128xf32>
    %581 = vector.extract_strided_slice %580 {offsets = [0, 0], sizes = [1, 64], strides = [1, 1]} : vector<1x128xf32> to vector<1x64xf32>
    %582 = vector.extract_strided_slice %580 {offsets = [0, 64], sizes = [1, 64], strides = [1, 1]} : vector<1x128xf32> to vector<1x64xf32>
    %583 = vector.extract_strided_slice %570 {offsets = [0, 128], sizes = [1, 64], strides = [1, 1]} : vector<1x192xf32> to vector<1x64xf32>
    %584 = vector.extract_strided_slice %572 {offsets = [0, 128], sizes = [1, 64], strides = [1, 1]} : vector<1x192xf32> to vector<1x64xf32>
    %585 = arith.mulf %581, %584 : vector<1x64xf32>
    %586 = arith.addf %583, %585 : vector<1x64xf32>
    %587 = math.tanh %586 : vector<1x64xf32>
    %cst_128 = arith.constant 1.000000e+00 : f32
    %588 = vector.broadcast %cst_128 : f32 to vector<1x64xf32>
    %589 = arith.subf %588, %582 : vector<1x64xf32>
    %590 = arith.mulf %589, %587 : vector<1x64xf32>
    %591 = arith.mulf %582, %563 : vector<1x64xf32>
    %592 = arith.addf %590, %591 : vector<1x64xf32>
    %593 = vector.extract_strided_slice %592 {offsets = [0, 0], sizes = [1, 32], strides = [1, 1]} : vector<1x64xf32> to vector<1x32xf32>
    %c15_129 = arith.constant 15 : index
    %c0_130 = arith.constant 0 : index
    %594 = vector.load %arg10[%c15_129, %c0_130] : memref<16x64xf32, #tpu.memory_space<vmem>>, vector<1x32xf32>
    tpu.vector_store %arg10[%c15_129, %c0_130], %593 {strides = array<i32>} : memref<16x64xf32, #tpu.memory_space<vmem>>, vector<1x32xf32>,
    %595 = vector.extract_strided_slice %592 {offsets = [0, 32], sizes = [1, 32], strides = [1, 1]} : vector<1x64xf32> to vector<1x32xf32>
    %c0_131 = arith.constant 0 : index
    %c32_132 = arith.constant 32 : index
    %596 = vector.load %arg10[%c0_131, %c32_132] : memref<16x64xf32, #tpu.memory_space<vmem>>, vector<1x32xf32>
    tpu.vector_store %arg10[%c0_131, %c32_132], %595 {strides = array<i32>} : memref<16x64xf32, #tpu.memory_space<vmem>>, vector<1x32xf32>,
    %c0_133 = arith.constant 0 : index
    %c0_134 = arith.constant 0 : index
    %597 = vector.load %arg10[%c0_133, %c0_134] : memref<16x64xf32, #tpu.memory_space<vmem>>, vector<16x64xf32>
    %598 = vector.extract_strided_slice %597 {offsets = [0, 0], sizes = [16, 32], strides = [1, 1]} : vector<16x64xf32> to vector<16x32xf32>
    %599 = vector.extract_strided_slice %597 {offsets = [0, 32], sizes = [16, 32], strides = [1, 1]} : vector<16x64xf32> to vector<16x32xf32>
    %600 = arith.addf %598, %599 : vector<16x32xf32>
    %cst_135 = arith.constant 0.000000e+00 : f32
    %601 = vector.broadcast %cst_135 : f32 to vector<1x32xf32>
    %602 = vector.extract_strided_slice %600 {offsets = [0, 0], sizes = [15, 32], strides = [1, 1]} : vector<16x32xf32> to vector<15x32xf32>
    %603 = tpu.concatenate %601, %602 in 0 : vector<1x32xf32>, vector<15x32xf32> -> vector<16x32xf32>
    %604 = vector.extract_strided_slice %600 {offsets = [1, 0], sizes = [15, 32], strides = [1, 1]} : vector<16x32xf32> to vector<15x32xf32>
    %605 = tpu.concatenate %604, %601 in 0 : vector<15x32xf32>, vector<1x32xf32> -> vector<16x32xf32>
    %606 = tpu.concatenate %603, %600, %605 in 1 : vector<16x32xf32>, vector<16x32xf32>, vector<16x32xf32> -> vector<16x96xf32>
    %c0_136 = arith.constant 0 : index
    %c0_137 = arith.constant 0 : index
    %607 = vector.load %arg6[%c0_136, %c0_137] : memref<96x32xf32, #tpu.memory_space<vmem>>, vector<96x32xf32>
    %cst_138 = arith.constant dense<0.000000e+00> : vector<16x32xf32>
    %608 = tpu.matmul %606, %607, %cst_138 {dimension_numbers = #tpu.dot_dimension_numbers<[1], [0], [0], [1], [0, 0, 1, 1], [], []>} : vector<16x96xf32>, vector<96x32xf32>, vector<16x32xf32> -> vector<16x32xf32>
    %609 = vector.broadcast %4 : vector<1x32xf32> to vector<16x32xf32>
    %610 = arith.addf %608, %609 : vector<16x32xf32>
    %611 = vector.extract_strided_slice %610 {offsets = [0, 0], sizes = [16, 8], strides = [1, 1]} : vector<16x32xf32> to vector<16x8xf32>
    %612 = vector.shape_cast %611 : vector<16x8xf32> to vector<1x16x8xf32>
    %cst_139 = arith.constant dense<0.000000e+00> : vector<1xf32>
    %613 = vector.multi_reduction <add>, %612, %cst_139 [1, 2] : vector<1x16x8xf32> to vector<1xf32>
    %614 = vector.shape_cast %613 : vector<1xf32> to vector<1x1x1xf32>
    %615 = vector.extract %614[0, 0, 0] : f32 from vector<1x1x1xf32>
    %616 = vector.broadcast %615 : f32 to vector<1x1xf32>
    %cst_140 = arith.constant 7.812500e-03 : f32
    %617 = vector.broadcast %cst_140 : f32 to vector<1x1xf32>
    %618 = arith.mulf %616, %617 : vector<1x1xf32>
    %619 = vector.broadcast %618 : vector<1x1xf32> to vector<16x8xf32>
    %620 = arith.subf %611, %619 : vector<16x8xf32>
    %621 = arith.mulf %620, %620 : vector<16x8xf32>
    %622 = vector.shape_cast %621 : vector<16x8xf32> to vector<1x16x8xf32>
    %cst_141 = arith.constant dense<0.000000e+00> : vector<1xf32>
    %623 = vector.multi_reduction <add>, %622, %cst_141 [1, 2] : vector<1x16x8xf32> to vector<1xf32>
    %624 = vector.shape_cast %623 : vector<1xf32> to vector<1x1x1xf32>
    %625 = vector.extract %624[0, 0, 0] : f32 from vector<1x1x1xf32>
    %626 = vector.broadcast %625 : f32 to vector<1x1xf32>
    %cst_142 = arith.constant 7.812500e-03 : f32
    %627 = vector.broadcast %cst_142 : f32 to vector<1x1xf32>
    %628 = arith.mulf %626, %627 : vector<1x1xf32>
    %cst_143 = arith.constant 9.99999974E-6 : f32
    %629 = vector.broadcast %cst_143 : f32 to vector<1x1xf32>
    %630 = arith.addf %628, %629 : vector<1x1xf32>
    %631 = math.rsqrt %630 : vector<1x1xf32>
    %632 = vector.broadcast %631 : vector<1x1xf32> to vector<16x8xf32>
    %633 = arith.mulf %620, %632 : vector<16x8xf32>
    %634 = vector.extract_strided_slice %610 {offsets = [0, 8], sizes = [16, 8], strides = [1, 1]} : vector<16x32xf32> to vector<16x8xf32>
    %635 = vector.shape_cast %634 : vector<16x8xf32> to vector<1x16x8xf32>
    %cst_144 = arith.constant dense<0.000000e+00> : vector<1xf32>
    %636 = vector.multi_reduction <add>, %635, %cst_144 [1, 2] : vector<1x16x8xf32> to vector<1xf32>
    %637 = vector.shape_cast %636 : vector<1xf32> to vector<1x1x1xf32>
    %638 = vector.extract %637[0, 0, 0] : f32 from vector<1x1x1xf32>
    %639 = vector.broadcast %638 : f32 to vector<1x1xf32>
    %cst_145 = arith.constant 7.812500e-03 : f32
    %640 = vector.broadcast %cst_145 : f32 to vector<1x1xf32>
    %641 = arith.mulf %639, %640 : vector<1x1xf32>
    %642 = vector.broadcast %641 : vector<1x1xf32> to vector<16x8xf32>
    %643 = arith.subf %634, %642 : vector<16x8xf32>
    %644 = arith.mulf %643, %643 : vector<16x8xf32>
    %645 = vector.shape_cast %644 : vector<16x8xf32> to vector<1x16x8xf32>
    %cst_146 = arith.constant dense<0.000000e+00> : vector<1xf32>
    %646 = vector.multi_reduction <add>, %645, %cst_146 [1, 2] : vector<1x16x8xf32> to vector<1xf32>
    %647 = vector.shape_cast %646 : vector<1xf32> to vector<1x1x1xf32>
    %648 = vector.extract %647[0, 0, 0] : f32 from vector<1x1x1xf32>
    %649 = vector.broadcast %648 : f32 to vector<1x1xf32>
    %cst_147 = arith.constant 7.812500e-03 : f32
    %650 = vector.broadcast %cst_147 : f32 to vector<1x1xf32>
    %651 = arith.mulf %649, %650 : vector<1x1xf32>
    %cst_148 = arith.constant 9.99999974E-6 : f32
    %652 = vector.broadcast %cst_148 : f32 to vector<1x1xf32>
    %653 = arith.addf %651, %652 : vector<1x1xf32>
    %654 = math.rsqrt %653 : vector<1x1xf32>
    %655 = vector.broadcast %654 : vector<1x1xf32> to vector<16x8xf32>
    %656 = arith.mulf %643, %655 : vector<16x8xf32>
    %657 = vector.extract_strided_slice %610 {offsets = [0, 16], sizes = [16, 8], strides = [1, 1]} : vector<16x32xf32> to vector<16x8xf32>
    %658 = vector.shape_cast %657 : vector<16x8xf32> to vector<1x16x8xf32>
    %cst_149 = arith.constant dense<0.000000e+00> : vector<1xf32>
    %659 = vector.multi_reduction <add>, %658, %cst_149 [1, 2] : vector<1x16x8xf32> to vector<1xf32>
    %660 = vector.shape_cast %659 : vector<1xf32> to vector<1x1x1xf32>
    %661 = vector.extract %660[0, 0, 0] : f32 from vector<1x1x1xf32>
    %662 = vector.broadcast %661 : f32 to vector<1x1xf32>
    %cst_150 = arith.constant 7.812500e-03 : f32
    %663 = vector.broadcast %cst_150 : f32 to vector<1x1xf32>
    %664 = arith.mulf %662, %663 : vector<1x1xf32>
    %665 = vector.broadcast %664 : vector<1x1xf32> to vector<16x8xf32>
    %666 = arith.subf %657, %665 : vector<16x8xf32>
    %667 = arith.mulf %666, %666 : vector<16x8xf32>
    %668 = vector.shape_cast %667 : vector<16x8xf32> to vector<1x16x8xf32>
    %cst_151 = arith.constant dense<0.000000e+00> : vector<1xf32>
    %669 = vector.multi_reduction <add>, %668, %cst_151 [1, 2] : vector<1x16x8xf32> to vector<1xf32>
    %670 = vector.shape_cast %669 : vector<1xf32> to vector<1x1x1xf32>
    %671 = vector.extract %670[0, 0, 0] : f32 from vector<1x1x1xf32>
    %672 = vector.broadcast %671 : f32 to vector<1x1xf32>
    %cst_152 = arith.constant 7.812500e-03 : f32
    %673 = vector.broadcast %cst_152 : f32 to vector<1x1xf32>
    %674 = arith.mulf %672, %673 : vector<1x1xf32>
    %cst_153 = arith.constant 9.99999974E-6 : f32
    %675 = vector.broadcast %cst_153 : f32 to vector<1x1xf32>
    %676 = arith.addf %674, %675 : vector<1x1xf32>
    %677 = math.rsqrt %676 : vector<1x1xf32>
    %678 = vector.broadcast %677 : vector<1x1xf32> to vector<16x8xf32>
    %679 = arith.mulf %666, %678 : vector<16x8xf32>
    %680 = vector.extract_strided_slice %610 {offsets = [0, 24], sizes = [16, 8], strides = [1, 1]} : vector<16x32xf32> to vector<16x8xf32>
    %681 = vector.shape_cast %680 : vector<16x8xf32> to vector<1x16x8xf32>
    %cst_154 = arith.constant dense<0.000000e+00> : vector<1xf32>
    %682 = vector.multi_reduction <add>, %681, %cst_154 [1, 2] : vector<1x16x8xf32> to vector<1xf32>
    %683 = vector.shape_cast %682 : vector<1xf32> to vector<1x1x1xf32>
    %684 = vector.extract %683[0, 0, 0] : f32 from vector<1x1x1xf32>
    %685 = vector.broadcast %684 : f32 to vector<1x1xf32>
    %cst_155 = arith.constant 7.812500e-03 : f32
    %686 = vector.broadcast %cst_155 : f32 to vector<1x1xf32>
    %687 = arith.mulf %685, %686 : vector<1x1xf32>
    %688 = vector.broadcast %687 : vector<1x1xf32> to vector<16x8xf32>
    %689 = arith.subf %680, %688 : vector<16x8xf32>
    %690 = arith.mulf %689, %689 : vector<16x8xf32>
    %691 = vector.shape_cast %690 : vector<16x8xf32> to vector<1x16x8xf32>
    %cst_156 = arith.constant dense<0.000000e+00> : vector<1xf32>
    %692 = vector.multi_reduction <add>, %691, %cst_156 [1, 2] : vector<1x16x8xf32> to vector<1xf32>
    %693 = vector.shape_cast %692 : vector<1xf32> to vector<1x1x1xf32>
    %694 = vector.extract %693[0, 0, 0] : f32 from vector<1x1x1xf32>
    %695 = vector.broadcast %694 : f32 to vector<1x1xf32>
    %cst_157 = arith.constant 7.812500e-03 : f32
    %696 = vector.broadcast %cst_157 : f32 to vector<1x1xf32>
    %697 = arith.mulf %695, %696 : vector<1x1xf32>
    %cst_158 = arith.constant 9.99999974E-6 : f32
    %698 = vector.broadcast %cst_158 : f32 to vector<1x1xf32>
    %699 = arith.addf %697, %698 : vector<1x1xf32>
    %700 = math.rsqrt %699 : vector<1x1xf32>
    %701 = vector.broadcast %700 : vector<1x1xf32> to vector<16x8xf32>
    %702 = arith.mulf %689, %701 : vector<16x8xf32>
    %703 = tpu.concatenate %633, %656, %679, %702 in 1 : vector<16x8xf32>, vector<16x8xf32>, vector<16x8xf32>, vector<16x8xf32> -> vector<16x32xf32>
    %704 = vector.broadcast %5 : vector<1x32xf32> to vector<16x32xf32>
    %705 = arith.mulf %703, %704 : vector<16x32xf32>
    %706 = vector.broadcast %6 : vector<1x32xf32> to vector<16x32xf32>
    %707 = arith.addf %705, %706 : vector<16x32xf32>
    %cst_159 = arith.constant 0.000000e+00 : f32
    %708 = vector.broadcast %cst_159 : f32 to vector<16x32xf32>
    %709 = arith.cmpf oge, %707, %708 : vector<16x32xf32>
    %cst_160 = arith.constant 0.00999999977 : f32
    %710 = vector.broadcast %cst_160 : f32 to vector<16x32xf32>
    %711 = arith.mulf %710, %707 : vector<16x32xf32>
    %712 = arith.select %709, %707, %711 : vector<16x32xi1>, vector<16x32xf32>
    %713 = arith.addf %123, %600 : vector<16x32xf32>
    %714 = arith.addf %713, %712 : vector<16x32xf32>
    %cst_161 = arith.constant 0.000000e+00 : f32
    %715 = vector.broadcast %cst_161 : f32 to vector<1x32xf32>
    %716 = vector.extract_strided_slice %714 {offsets = [0, 0], sizes = [15, 32], strides = [1, 1]} : vector<16x32xf32> to vector<15x32xf32>
    %717 = tpu.concatenate %715, %716 in 0 : vector<1x32xf32>, vector<15x32xf32> -> vector<16x32xf32>
    %718 = vector.extract_strided_slice %714 {offsets = [1, 0], sizes = [15, 32], strides = [1, 1]} : vector<16x32xf32> to vector<15x32xf32>
    %719 = tpu.concatenate %718, %715 in 0 : vector<15x32xf32>, vector<1x32xf32> -> vector<16x32xf32>
    %720 = tpu.concatenate %717, %714, %719 in 1 : vector<16x32xf32>, vector<16x32xf32>, vector<16x32xf32> -> vector<16x96xf32>
    %c0_162 = arith.constant 0 : index
    %c0_163 = arith.constant 0 : index
    %721 = vector.load %arg7[%c0_162, %c0_163] : memref<96x4xf32, #tpu.memory_space<vmem>>, vector<96x4xf32>
    %cst_164 = arith.constant dense<0.000000e+00> : vector<16x4xf32>
    %722 = tpu.matmul %720, %721, %cst_164 {dimension_numbers = #tpu.dot_dimension_numbers<[1], [0], [0], [1], [0, 0, 1, 1], [], []>} : vector<16x96xf32>, vector<96x4xf32>, vector<16x4xf32> -> vector<16x4xf32>
    %723 = vector.broadcast %7 : vector<1x4xf32> to vector<16x4xf32>
    %724 = arith.addf %722, %723 : vector<16x4xf32>
    %c0_165 = arith.constant 0 : index
    %c0_166 = arith.constant 0 : index
    %c0_167 = arith.constant 0 : index
    %725 = vector.load %arg9[%c0_165, %c0_166, %c0_167] : memref<1x16x4xf32, #tpu.memory_space<vmem>>, vector<1x16x4xf32>
    %726 = vector.shape_cast %725 : vector<1x16x4xf32> to vector<16x4xf32>
    %727 = vector.shape_cast %724 : vector<16x4xf32> to vector<1x16x4xf32>
    tpu.vector_store %arg9[%c0_165, %c0_166, %c0_167], %727 {strides = array<i32>} : memref<1x16x4xf32, #tpu.memory_space<vmem>>, vector<1x16x4xf32>,
    return
  }
  func.func @transform_0(%arg0: i32) -> (i32, i32, i32) {
    %c0_i32 = arith.constant 0 : i32
    %c0_i32_0 = arith.constant 0 : i32
    %c0_i32_1 = arith.constant 0 : i32
    return %arg0, %c0_i32, %c0_i32_0 : i32, i32, i32
  }
  func.func @transform_1(%arg0: i32) -> (i32, i32, i32) {
    %c0_i32 = arith.constant 0 : i32
    %c0_i32_0 = arith.constant 0 : i32
    %c0_i32_1 = arith.constant 0 : i32
    return %arg0, %c0_i32, %c0_i32_0 : i32, i32, i32
  }
  func.func @transform_2(%arg0: i32) -> (i32, i32) {
    %c0_i32 = arith.constant 0 : i32
    %c0_i32_0 = arith.constant 0 : i32
    %c0_i32_1 = arith.constant 0 : i32
    return %c0_i32, %c0_i32_0 : i32, i32
  }
  func.func @transform_3(%arg0: i32) -> (i32, i32) {
    %c0_i32 = arith.constant 0 : i32
    %c0_i32_0 = arith.constant 0 : i32
    %c0_i32_1 = arith.constant 0 : i32
    return %c0_i32, %c0_i32_0 : i32, i32
  }
  func.func @transform_4(%arg0: i32) -> (i32, i32) {
    %c0_i32 = arith.constant 0 : i32
    %c0_i32_0 = arith.constant 0 : i32
    %c0_i32_1 = arith.constant 0 : i32
    return %c0_i32, %c0_i32_0 : i32, i32
  }
  func.func @transform_5(%arg0: i32) -> (i32, i32) {
    %c0_i32 = arith.constant 0 : i32
    %c0_i32_0 = arith.constant 0 : i32
    %c0_i32_1 = arith.constant 0 : i32
    return %c0_i32, %c0_i32_0 : i32, i32
  }
  func.func @transform_6(%arg0: i32) -> (i32, i32) {
    %c0_i32 = arith.constant 0 : i32
    %c0_i32_0 = arith.constant 0 : i32
    %c0_i32_1 = arith.constant 0 : i32
    return %c0_i32, %c0_i32_0 : i32, i32
  }
  func.func @transform_7(%arg0: i32) -> (i32, i32) {
    %c0_i32 = arith.constant 0 : i32
    %c0_i32_0 = arith.constant 0 : i32
    %c0_i32_1 = arith.constant 0 : i32
    return %c0_i32, %c0_i32_0 : i32, i32
  }
  func.func @transform_8(%arg0: i32) -> (i32, i32, i32) {
    %c0_i32 = arith.constant 0 : i32
    %c0_i32_0 = arith.constant 0 : i32
    %c0_i32_1 = arith.constant 0 : i32
    return %arg0, %c0_i32, %c0_i32_0 : i32, i32, i32
  }
}

</mosaic_0001>

<bundles_post_ra>
// kernel: tpu_custom_call.1
= control target key start
LH: loop header
LB: loop body
LE: loop exit
PB: predicated region body
PF: predicated region fallthrough
CT: control target
= control target key end

     0   :  { %13 = vsyncpa [#allocation4], 0  ;;  %s5120_s0 = inlined_call_operand.vmem [shape: f32[2,16,4], index: 0, kind: input, shape index: {}]   ;;  %s5121_s1 = inlined_call_operand.hbm [shape: f32[2,1,64], index: 1, kind: input, shape index: {}]   ;;  %s5122_s2 = inlined_call_operand.hbm [shape: f32[12,32], index: 2, kind: input, shape index: {}]   ;;  %s5123_s3 = inlined_call_operand.vmem [shape: f32[32,384], index: 3, kind: input, shape index: {}]   ;;  %s5124_s4 = inlined_call_operand.vmem [shape: f32[64,192], index: 4, kind: input, shape index: {}]   ;;  %s5125_s5 = inlined_call_operand.vmem [shape: f32[96,32], index: 5, kind: input, shape index: {}]   ;;  %s5126_s6 = inlined_call_operand.vmem [shape: f32[96,4], index: 6, kind: input, shape index: {}]   ;;  %s5127_s7 = inlined_call_operand.vmem [shape: f32[9,384], index: 7, kind: input, shape index: {}]   ;;  %s5128_s8 = inlined_call_operand.vmem [shape: f32[2,16,4], index: 8, kind: output, shape index: {}]  }
   0x1   :  { %15 = vsyncpa [#allocation4 + $0x1], 0 }
   0x2   :  { %16 = vsyncpa [#allocation6], 0  ;;  %s3838_s27 = smov 0   ;;  %s3840_s28 = smov 0  }
   0x3   :  { %s3842_s29 = smov 0   ;;  %s3844_s30 = smov 0  }
   0x4 LB: > { %s3857_s9 = sadd.s32 4294967295, %s3778_s30   ;;  %p68_p0 = scmp.ne.s32.totalorder %s3770_s28, %s3766_s27  ;;  %s3778_s30 = sphi %s3844_s30, %s5190_s30   ;;  %s3774_s29 = sphi %s3842_s29, %s5193_s29   ;;  %s3770_s28 = sphi %s3840_s28, %s5192_s28   ;;  %s3766_s27 = sphi %s3838_s27, %s5191_s27  }
   0x5   : > { %p5131_p1 = scmp.eq.s32.totalorder %s3857_s9, 0  ;;  %p3295_p2 = scmp.ge.s32.totalorder %s3778_s30, 1 }
   0x6   : > { %p231_p3 = scmp.lt.s32.totalorder %s3778_s30, 3  ;;  %s3780_s12 = smov [#allocation5]  }
   0x7   : > { %p3865_p4 = por %p5131_p1, %p68_p0  ;;  %s243_s13 = sshll.u32 %s3780_s12, 4  ;;  %s244_s13 = int_to_ptr.vmem [resolvable:$true] %s243_s13 }
   0x8   : > { %p3869_p5 = pnand %p3295_p2, %p231_p3  ;;  %s3882_s15 = sadd.s32 1, %s3778_s30  }
   0x9   : > { %s5142_s10 = scalar_select %p3865_p4, 1, 0 }
   0xa   : > { %s5143_s11 = scalar_select %p3869_p5, 1, 0 }
   0xb   : > { %p3500_p6 = pneg %p3869_p5  ;;  %5145 = sst [smem:[#allocation9_spill]] %s3882_s15 }
   0xc   : > { %s55_s16 = sadd.s32 1, %s3774_s29  ;;  %s52_s17 = ssub.s32 %s3778_s30, %s3882_s15 }
   0xd   : > { %p3877_p7 = pnand %p3500_p6, %p5131_p1  ;;  %s3697_s18 = scalar_lea.vmem %s244_s13, 256 }
   0xe   : > { %p3698_p9 = scmp.ne.s32.totalorder %s244_s13, %s3697_s18  ;;  %p3705_p12 = scmp.lt.s32.totalorder %s244_s13, %s244_s13 }
   0xf   : > { %p3688_p8 = pneg %p3877_p7  ;;  %p3706_p13 = scmp.lt.s32.totalorder %s3697_s18, %s3697_s18 }
  0x11   : > { %p3700_p10 = pnand %p3698_p9, %p3688_p8  ;;  %p3707_p0 = por %p3706_p13, %p3705_p12 }
  0x13   : > { %p3701_p11 = pneg %p3700_p10 }
  0x15   : > { %p3708_p2 = pnand %p3707_p0, %p3701_p11 }
  0x17   : > { %3711 = shalt.err (!%p3708_p2)
}
  0x18   : > { %s3781_s19 = smov 128   ;;  %s3782_s20 = smov 8  }
  0x19   : > { %3503 = dma.hbm_to_vmem [thread:$0]  (!%p3877_p7), %s5122_s2, 256, %s244_s13, [#allocation6], %s3781_s19, %s3781_s19, %s3782_s20  }
  0x1a   : > { %p53_p3 = scmp.eq.s32.totalorder %s52_s17, 0  ;;  %p62_p6 = scmp.ne.s32.totalorder %s3774_s29, %s3770_s28 }
  0x1b   : > { %p63_p8 = scmp.eq.s32.totalorder %s3778_s30, 0  ;;  %p3509_p9 = scmp.lt.s32.totalorder %s3778_s30, 2 }
  0x1c   : > { %s3899_s23 = scalar_select %p53_p3, %s3774_s29, %s55_s16  }
  0x1d   : > { %p64_p10 = por %p63_p8, %p62_p6  ;;  %s280_s24 = sand.u32 1, %s3774_s29  }
  0x1e   : > { %s3298_s25 = sshll.u32 %s3778_s30, 4  ;;  %s283_s26 = scalar_lea.vmem [#allocation3], %s280_s24 }
  0x1f   : > { %s290_s27 = sshll.u32 %s283_s26, 4  ;;  %s3906_s15 = scalar_lea.hbm %s5121_s1, %s3298_s25  ;;  %s291_s27 = int_to_ptr.vmem [resolvable:$true] %s290_s27 }
  0x20   : > { %p3908_p7 = pnand %p3509_p9, %p64_p10  ;;  %s281_s14 = scalar_lea.sflag [#allocation4], %s280_s24 }
  0x21   : > { %s3712_s16 = scalar_lea.hbm %s3906_s15, 16  ;;  %s3717_s19 = scalar_lea.hbm %s5121_s1, 32 }
  0x22   : > { %p3713_p11 = scmp.ne.s32.totalorder %s3906_s15, %s3712_s16  ;;  %p3714_p12 = pneg %p3908_p7 }
  0x23   : > { %p3718_p2 = scmp.lt.s32.totalorder %s3906_s15, %s5121_s1  ;;  %p3719_p3 = scmp.lt.s32.totalorder %s3717_s19, %s3712_s16 }
  0x24   : > { %p3715_p13 = pnand %p3714_p12, %p3713_p11 }
  0x25   : > { %p3720_p6 = por %p3719_p3, %p3718_p2 }
  0x26   : > { %p3716_p0 = pneg %p3715_p13 }
  0x28   : > { %p3721_p8 = pnand %p3720_p6, %p3716_p0 }
  0x2a   : > { %3724 = shalt.err (!%p3721_p8)
}
  0x2b   : > { %s3725_s22 = scalar_lea.vmem %s291_s27, 16  ;;  %s3783_s24 = smov [#allocation3]  }
  0x2c   : > { %p3726_p9 = scmp.ne.s32.totalorder %s291_s27, %s3725_s22  ;;  %s3730_s25 = sshll.u32 %s3783_s24, 4  ;;  %s3731_s25 = int_to_ptr.vmem [resolvable:$false] %s3730_s25 }
  0x2d   : > { %s3732_s26 = scalar_lea.vmem %s3731_s25, 32  ;;  %p3733_p11 = scmp.lt.s32.totalorder %s291_s27, %s3731_s25 }
  0x2e   : > { %p3728_p10 = pnand %p3726_p9, %p3714_p12  ;;  %p3734_p13 = scmp.lt.s32.totalorder %s3732_s26, %s3725_s22 }
  0x30   : > { %p3729_p1 = pneg %p3728_p10  ;;  %p3735_p4 = por %p3734_p13, %p3733_p11 }
  0x32   : > { %p3736_p5 = pnand %p3735_p4, %p3729_p1 }
  0x34   : > { %3739 = shalt.err (!%p3736_p5)
}
  0x35   : > { %3507 = dma.hbm_to_vmem [thread:$0]  (!%p3908_p7), %s3906_s15, 16, %s291_s27, %s281_s14  }
  0x36   : > { %p5147_p0 = scmp.ne.s32.totalorder %s5143_s11, 0 }
  0x37   : > { %s301_s12 = sand.u32 (!%p5147_p0), 1, %s3770_s28   ;;  %p5148_p12 = scmp.ne.s32.totalorder (!%p5147_p0), %s5142_s10, 0 }
  0x38   : > { %299 = sbr.rel (%p5147_p0) target bundleno = 11907 (0x2e83), region = 52  ;;  %s302_s18 = scalar_lea.sflag (!%p5147_p0), [#allocation4], %s301_s12 }
  0x39   : > { %s3929_s16 = scalar_lea.vmem (!%p5147_p0), [#allocation3], %s301_s12 }
  0x3d   : > { %3757 = dma.done.wait (%p5148_p12), %s302_s18, 16  }
  0x3e   : > { %3759 = vsyncadd (%p5148_p12), %s302_s18, 4294967280  ;;  %p5149_p1 = scmp.eq.s32.totalorder %s3857_s9, 0 }
  0x40   : > { %3761 = dma.done.wait (%p5149_p1), [#allocation6], 256   ;;  %p5150_p4 = pmov %p5149_p1 }
  0x41   : > { %p345_p5 = scmp.lt.s32.totalorder %s3857_s9, 1  ;;  %vm409_vm0 = vcmask 1043456   ;;  %vm5141_vm1 = vcmask 1046528   ;;  %v397_v2 = vld [vmem:[#allocation5 + $0x8] sm:$0xf]  ;;  %s3784_s13 = smov 4   ;;  %v398_v20 = vlaneseq }
  0x42   : > { %3763 = vsyncadd (%p5150_p4), [#allocation6], 4294967040  ;;  %3390 = vmatprep.subr.msk.mxu0 %vm409_vm0, %v397_v2  ;;  %v396_v7 = vld [vmem:[#allocation5] sm:$0xff]  ;;  %vm5140_vm2 = vcmask 1040384   ;;  %s3785_s14 = smov 8   ;;  %vm5134_vm3 = vcmask 31744  }
  0x43   : > { %s5195_s9 = smov (!%p345_p5, %s3857_s9), 1  ;;  %3391 = vmatpush3.msk.msra.mxu0 %vm409_vm0, %v397_v2  ;;  %vm5137_vm4 = vcmask 64512   ;;  %vm402_vm5 = vcmask 97280   ;;  %v3957_v21 = vshrl.u32 %v398_v20, 7  ;;  %v3963_v23 = vld [vmem:[%s5127_s7] sm:$0xff]  ;;  %s3786_s19 = smov 120  }
  0x44   : > { %s3350_s11 = sshll.u32 %s5195_s9, 4  ;;  %3392 = vmatprep.subr.mxu0 %v396_v7  ;;  %s3787_s24 = smov 112   ;;  %vm5136_vm6 = vcmask 130048   ;;  %vm5135_vm7 = vcmask 195584   ;;  %vm5139_vm8 = vcmask 261120   ;;  %vm5138_vm11 = vcmask 523264  }
  0x45   : > { %s349_s10 = scalar_lea.vmem %s5120_s0, %s3350_s11  ;;  %3393 = vmatpush3.msra.mxu0 %v396_v7  ;;  %v400_v22 = vsub.s32 0, %v3957_v21  ;;  %s3788_s12 = smov 104   ;;  %vm1019_vm12 = vcmask 253952   ;;  %vm1021_vm13 = vcmask 516352   ;;  %vm1137_vm14 = vcmask 254977  }
  0x46   : > { %v360_v0 = vld [vmem:[%s349_s10] sm:$0xff]  ;;  %v361_v1 = vld [vmem:[%s349_s10 + $0x8] sm:$0xff]  ;;  %vm1139_vm15 = vcmask 517377   ;;  %vm1379_vm0 = vcmask 257027  }
  0x47   : > { %v366_v3 = vrot.slane %v361_v1, 7  ;;  %377 = vrot.lane.b32.xlu0 %v360_v0, %s3784_s13  ;;  %v365_v4 = vrot.slane %v360_v0, 7  ;;  %v372_v5 = vrot.slane %v360_v0, 1  ;;  %v373_v6 = vrot.slane %v361_v1, 1 }
  0x48   : > { %v401_v24 = vrot.slane %v3963_v23, %v400_v22 }
  0x49   : > { %v374_v8 = vsel %vm5141_vm1, %v372_v5, %v373_v6  ;;  %v367_v9 = vsel %vm5140_vm2, %v365_v4, %v366_v3  ;;  %v376_v10 = vsel %vm5141_vm1, %v373_v6, 0.0  ;;  %v370_v11 = vsel %vm5140_vm2, 0.0, %v365_v4 }
  0x4a   : > { %384 = vrot.lane.b32.xlu1 %v374_v8, %s3785_s14  ;;  %vm1709_vm2 = vcmask 260102   ;;  %vm1711_vm1 = vcmask 522502  }
  0x4b   : > { %379 = vrot.lane.b32.xlu0 %v361_v1, %s3784_s13 }
  0x4e   : > { %386 = vrot.lane.b32.xlu1 %v376_v10, %s3785_s14 }
  0xb9   : > { %v378_v12 = vpop.permute.xlu0 %377 }
  0xba   : > { %v391_v13 = vsel %vm5134_vm3, %v370_v11, %v378_v12 }
  0xbc   : > { %v385_v14 = vpop.permute.xlu1 %384 }
  0xbd   : > { %v394_v15 = vsel %vm5137_vm4, %v391_v13, %v385_v14  ;;  %v380_v16 = vpop.permute.xlu0 %379 }
  0xbe   : > { %3394 = vmatprep.mubr.msk.f32.mxu0 %vm402_vm5, %v394_v15  ;;  %v392_v17 = vsel %vm5134_vm3, %v367_v9, %v380_v16  ;;  %vm1819_vm3 = vcmask 261127  }
  0xc0   : > { %v387_v18 = vpop.permute.xlu1 %386 }
  0xc1   : > { %v395_v19 = vsel %vm5137_vm4, %v392_v17, %v387_v18 }
  0xc2   : > { %3395 = vmatmul.mubr.msk.f32.vlgmr.msra.gmra.mxu0 %vm402_vm5, %v395_v19  ;;  %vm1381_vm5 = vcmask 519427  }
 0x182   : > { %v3396_v25 = vpop.f32.mrf.mxu0 }
 0x183   : > { %v3968_v26 = vadd.f32 %v3396_v25, %v401_v24 }
 0x184   : > { %v479_v27 = vpop.f32.mrf.mxu0 }
 0x185   : > { %v3970_v28 = vadd.f32 %v479_v27, %v401_v24  ;;  %v489_v30 = vsel %vm5137_vm4, %v3968_v26, 0.0 }
 0x187   : > { %526 = vrot.lane.b32.xlu1 %v3970_v28, %s3786_s19  ;;  %v488_v29 = vsel %vm5137_vm4, %v3970_v28, 0.0 }
 0x188   : > { %v490_v31 = vadd.f32 %v489_v30, %v488_v29 }
 0x18a   : > { %491 = vadd.xlane.f32.xlu0 %v490_v31 }
 0x18b   : > { %528 = vrot.lane.b32.xlu1 %v3968_v26, %s3786_s19 }
 0x1f9   : > { %v527_v32 = vpop.permute.xlu1 %526 }
 0x1fa   : > { %v532_v34 = vsel %vm5137_vm4, %v527_v32, 0.0 }
 0x1fd   : > { %v529_v33 = vpop.permute.xlu1 %528 }
 0x1fe   : > { %v533_v35 = vsel %vm5137_vm4, %v529_v33, 0.0 }
 0x1ff   : > { %v534_v36 = vadd.f32 %v533_v35, %v532_v34 }
 0x201   : > { %535 = vadd.xlane.f32.xlu0 %v534_v36 }
 0x213   : > { %v492_v37 = vpop.xlane.xlu0 %491 }
 0x214   : > { %v493_v38 = vrot.slane %v492_v37, 4 }
 0x216   : > { %v494_v39 = vadd.f32 %v493_v38, %v492_v37 }
 0x218   : > { %v495_v40 = vrot.slane %v494_v39, 2 }
 0x21a   : > { %v496_v41 = vadd.f32 %v495_v40, %v494_v39 }
 0x21c   : > { %v497_v42 = vrot.slane %v496_v41, 1 }
 0x21e   : > { %v498_v43 = vadd.f32 %v497_v42, %v496_v41 }
 0x220   : > { %3462 = vpush %v498_v43 }
 0x251   : > { %s3463_s20 = spop %3462 }
 0x252   : > { %v500_v44 = vstv %s3463_s20 }
 0x253   : > { %v501_v45 = vmul.f32 0.0078125, %v500_v44 }
 0x255   : > { %v3983_v46 = vsub.f32 %v3970_v28, %v501_v45  ;;  %v3986_v47 = vsub.f32 %v3968_v26, %v501_v45 }
 0x257   : > { %v504_v48 = vmul.f32 %v3983_v46, %v3983_v46  ;;  %v505_v49 = vmul.f32 %v3986_v47, %v3986_v47 }
 0x259   : > { %v506_v50 = vsel %vm5137_vm4, %v504_v48, 0.0  ;;  %v507_v51 = vsel %vm5137_vm4, %v505_v49, 0.0 }
 0x25a   : > { %v508_v52 = vadd.f32 %v507_v51, %v506_v50 }
 0x25c   : > { %509 = vadd.xlane.f32.xlu1 %v508_v52 }
 0x28a   : > { %v536_v53 = vpop.xlane.xlu0 %535 }
 0x28b   : > { %v537_v54 = vrot.slane %v536_v53, 4 }
 0x28d   : > { %v538_v55 = vadd.f32 %v537_v54, %v536_v53 }
 0x28f   : > { %v539_v57 = vrot.slane %v538_v55, 2 }
 0x291   : > { %v540_v60 = vadd.f32 %v539_v57, %v538_v55 }
 0x293   : > { %v541_v63 = vrot.slane %v540_v60, 1 }
 0x295   : > { %v542_v2 = vadd.f32 %v541_v63, %v540_v60 }
 0x2e5   : > { %v510_v56 = vpop.xlane.xlu1 %509 }
 0x2e6   : > { %v511_v58 = vrot.slane %v510_v56, 4 }
 0x2e8   : > { %v512_v59 = vadd.f32 %v511_v58, %v510_v56 }
 0x2ea   : > { %v513_v61 = vrot.slane %v512_v59, 2 }
 0x2ec   : > { %v514_v62 = vadd.f32 %v513_v61, %v512_v59 }
 0x2ee   : > { %v515_v0 = vrot.slane %v514_v62, 1 }
 0x2f0   : > { %v516_v1 = vadd.f32 %v515_v0, %v514_v62 }
 0x2f2   : > { %3464 = vpush %v516_v1 }
 0x2f3   : > { %3466 = vpush %v542_v2 }
 0x323   : > { %s3994_s21 = spop %3464 }
 0x324   : > { %s3467_s22 = spop %3466  ;;  %v518_v38 = vstv %s3994_s21 }
 0x325   : > { %v544_v3 = vstv %s3467_s22  ;;  %v519_v39 = vmul.f32 0.0078125, %v518_v38  ;;  %s3790_s22 = smov 64  }
 0x326   : > { %v545_v4 = vmul.f32 0.0078125, %v544_v3 }
 0x327   : > { %v520_v40 = vadd.f32 1e-05, %v519_v39 }
 0x328   : > { %v546_v5 = vsub.f32 %v3970_v28, %v545_v4  ;;  %v547_v6 = vsub.f32 %v3968_v26, %v545_v4 }
 0x329   : > { %3555 = vrsqrt.f32 %v520_v40  ;;  %v712_v40 = vld [vmem:[%s5123_s3 + $0x50] sm:$0xff] }
 0x32a   : > { %v549_v7 = vmul.f32 %v547_v6, %v547_v6  ;;  %v548_v8 = vmul.f32 %v546_v5, %v546_v5  ;;  %757 = vmatprep.subr.mxu1 %v712_v40  ;;  %v357_v40 = vld [vmem:[%s5127_s7 + $0x10] sm:$0xff] }
 0x32c   : > { %554 = vrot.lane.b32.xlu1 %v549_v7, %s3786_s19  ;;  %552 = vrot.lane.b32.xlu0 %v548_v8, %s3786_s19 }
 0x330   : > { %576 = vrot.lane.b32.xlu0 %v3970_v28, %s3787_s24 }
 0x334   : > { %578 = vrot.lane.b32.xlu0 %v3968_v26, %s3787_s24 }
 0x336   : > { %v3556_v52 = vpop.eup %3555 }
 0x337   : > { %v522_v54 = vmul.f32 %v3556_v52, %v3983_v46  ;;  %v523_v55 = vmul.f32 %v3556_v52, %v3986_v47  ;;  %v702_v52 = vld [vmem:[%s5123_s3] sm:$0xff] }
 0x39e   : > { %v555_v9 = vpop.permute.xlu1 %554  ;;  %v553_v10 = vpop.permute.xlu0 %552 }
 0x39f   : > { %v559_v11 = vsel %vm5137_vm4, %v555_v9, 0.0  ;;  %v558_v12 = vsel %vm5137_vm4, %v553_v10, 0.0 }
 0x3a0   : > { %v560_v13 = vadd.f32 %v559_v11, %v558_v12 }
 0x3a2   : > { %561 = vadd.xlane.f32.xlu1 %v560_v13  ;;  %v577_v14 = vpop.permute.xlu0 %576 }
 0x3a3   : > { %v582_v16 = vsel %vm5137_vm4, %v577_v14, 0.0 }
 0x3a6   : > { %v579_v15 = vpop.permute.xlu0 %578 }
 0x3a7   : > { %v583_v17 = vsel %vm5137_vm4, %v579_v15, 0.0 }
 0x3a8   : > { %v584_v18 = vadd.f32 %v583_v17, %v582_v16 }
 0x3aa   : > { %585 = vadd.xlane.f32.xlu0 %v584_v18 }
 0x42b   : > { %v562_v19 = vpop.xlane.xlu1 %561 }
 0x42c   : > { %v563_v20 = vrot.slane %v562_v19, 4 }
 0x42e   : > { %v564_v24 = vadd.f32 %v563_v20, %v562_v19 }
 0x430   : > { %v565_v25 = vrot.slane %v564_v24, 2 }
 0x432   : > { %v566_v27 = vadd.f32 %v565_v25, %v564_v24 }
 0x433   : > { %v586_v29 = vpop.xlane.xlu0 %585 }
 0x434   : > { %v587_v30 = vrot.slane %v586_v29, 4  ;;  %v567_v31 = vrot.slane %v566_v27, 1 }
 0x436   : > { %v588_v32 = vadd.f32 %v587_v30, %v586_v29  ;;  %v568_v33 = vadd.f32 %v567_v31, %v566_v27 }
 0x438   : > { %3468 = vpush %v568_v33  ;;  %v589_v34 = vrot.slane %v588_v32, 2 }
 0x43a   : > { %v590_v35 = vadd.f32 %v589_v34, %v588_v32 }
 0x43c   : > { %v591_v36 = vrot.slane %v590_v35, 1 }
 0x43e   : > { %v592_v37 = vadd.f32 %v591_v36, %v590_v35 }
 0x440   : > { %3470 = vpush %v592_v37 }
 0x469   : > { %s3469_s25 = spop %3468 }
 0x46a   : > { %v570_v41 = vstv %s3469_s25  ;;  %s3792_s25 = smov 32  }
 0x46b   : > { %v571_v42 = vmul.f32 0.0078125, %v570_v41  ;;  %v711_v41 = vld [vmem:[%s5123_s3 + $0x48] sm:$0xff] }
 0x46c   : > { %758 = vmatpush1.msra.mxu1 %v711_v41 }
 0x46d   : > { %v572_v43 = vadd.f32 1e-05, %v571_v42  ;;  %v713_v42 = vld [vmem:[%s5123_s3 + $0x58] sm:$0xff] }
 0x46e   : > { %3397 = vmatprep.subr.mxu0 %v713_v42 }
 0x46f   : > { %3557 = vrsqrt.f32 %v572_v43  ;;  %v709_v43 = vld [vmem:[%s5123_s3 + $0x38] sm:$0xff]  ;;  %3398 = vmatpush3.msra.mxu0 %v713_v42 }
 0x470   : > { %759 = vmatprep.subr.mxu1 %v709_v43 }
 0x471   : > { %s3471_s26 = spop %3470 }
 0x472   : > { %v594_v44 = vstv %s3471_s26 }
 0x473   : > { %v595_v45 = vmul.f32 0.0078125, %v594_v44  ;;  %v708_v44 = vld [vmem:[%s5123_s3 + $0x30] sm:$0xff] }
 0x474   : > { %760 = vmatpush1.msra.mxu1 %v708_v44 }
 0x475   : > { %v596_v48 = vsub.f32 %v3970_v28, %v595_v45  ;;  %v597_v49 = vsub.f32 %v3968_v26, %v595_v45  ;;  %v710_v45 = vld [vmem:[%s5123_s3 + $0x40] sm:$0xff] }
 0x476   : > { %3399 = vmatprep.subr.mxu0 %v710_v45 }
 0x477   : > { %v599_v50 = vmul.f32 %v597_v49, %v597_v49  ;;  %v598_v51 = vmul.f32 %v596_v48, %v596_v48  ;;  %3400 = vmatpush3.msra.mxu0 %v710_v45 }
 0x479   : > { %604 = vrot.lane.b32.xlu1 %v599_v50, %s3787_s24  ;;  %602 = vrot.lane.b32.xlu0 %v598_v51, %s3787_s24  ;;  %v705_v50 = vld [vmem:[%s5123_s3 + $0x18] sm:$0xff]  ;;  %v703_v51 = vld [vmem:[%s5123_s3 + $0x8] sm:$0xff] }
 0x47c   : > { %v3558_v53 = vpop.eup %3557 }
 0x47d   : > { %v574_v56 = vmul.f32 %v3558_v53, %v546_v5  ;;  %v575_v57 = vmul.f32 %v3558_v53, %v547_v6  ;;  %626 = vrot.lane.b32.xlu1 %v3970_v28, %s3788_s12  ;;  %628 = vrot.lane.b32.xlu0 %v3968_v26, %s3788_s12  ;;  %v704_v53 = vld [vmem:[%s5123_s3 + $0x10] sm:$0xff] }
 0x47f   : > { %v676_v58 = vsel %vm5137_vm4, %v522_v54, %v574_v56  ;;  %v677_v59 = vsel %vm5137_vm4, %v523_v55, %v575_v57  ;;  %v3789_v54 = vmov 0.0   ;;  %v4085_v55 = vld [vmem:[%s5124_s4 + $0x78] sm:$0xff] }
 0x480   : > { %797 = vmatprep.mubr.f32.mxu1 %v3789_v54 }
 0x4eb   : > { %v605_v60 = vpop.permute.xlu1 %604  ;;  %v603_v61 = vpop.permute.xlu0 %602 }
 0x4ec   : > { %v609_v62 = vsel %vm5137_vm4, %v605_v60, 0.0  ;;  %v608_v46 = vsel %vm5137_vm4, %v603_v61, 0.0 }
 0x4ed   : > { %v610_v47 = vadd.f32 %v609_v62, %v608_v46 }
 0x4ef   : > { %v627_v63 = vpop.permute.xlu1 %626  ;;  %611 = vadd.xlane.f32.xlu1 %v610_v47  ;;  %v629_v0 = vpop.permute.xlu0 %628 }
 0x4f0   : > { %v632_v1 = vsel %vm5137_vm4, %v627_v63, 0.0  ;;  %v633_v2 = vsel %vm5137_vm4, %v629_v0, 0.0  ;;  %v686_v0 = vsub.s32 1, %v3957_v21 }
 0x4f1   : > { %v634_v3 = vadd.f32 %v633_v2, %v632_v1  ;;  %v692_v1 = vsub.s32 2, %v3957_v21 }
 0x4f3   : > { %635 = vadd.xlane.f32.xlu0 %v634_v3  ;;  %v687_v3 = vrot.slane %v3963_v23, %v686_v0 }
 0x578   : > { %v612_v4 = vpop.xlane.xlu1 %611 }
 0x579   : > { %v613_v5 = vrot.slane %v612_v4, 4 }
 0x57b   : > { %v614_v6 = vadd.f32 %v613_v5, %v612_v4 }
 0x57c   : > { %v636_v7 = vpop.xlane.xlu0 %635 }
 0x57d   : > { %v615_v8 = vrot.slane %v614_v6, 2  ;;  %v637_v9 = vrot.slane %v636_v7, 4 }
 0x57f   : > { %v638_v10 = vadd.f32 %v637_v9, %v636_v7  ;;  %v616_v11 = vadd.f32 %v615_v8, %v614_v6  ;;  %v693_v6 = vrot.slane %v3963_v23, %v692_v1 }
 0x581   : > { %v617_v12 = vrot.slane %v616_v11, 1  ;;  %v639_v13 = vrot.slane %v638_v10, 2 }
 0x583   : > { %v618_v14 = vadd.f32 %v617_v12, %v616_v11  ;;  %v640_v15 = vadd.f32 %v639_v13, %v638_v10 }
 0x585   : > { %3472 = vpush %v618_v14  ;;  %v641_v16 = vrot.slane %v640_v15, 1 }
 0x587   : > { %v642_v17 = vadd.f32 %v641_v16, %v640_v15 }
 0x589   : > { %3474 = vpush %v642_v17  ;;  %v4106_v17 = vld [vmem:[%s5124_s4 + $0x70] sm:$0xff] }
 0x5b6   : > { %s3473_s18 = spop %3472 }
 0x5b7   : > { %v620_v18 = vstv %s3473_s18 }
 0x5b8   : > { %v621_v19 = vmul.f32 0.0078125, %v620_v18  ;;  %v4115_v18 = vld [vmem:[%s5124_s4 + $0x68] sm:$0xff] }
 0x5ba   : > { %v622_v20 = vadd.f32 1e-05, %v621_v19  ;;  %s3475_s15 = spop %3474  ;;  %v4124_v19 = vld [vmem:[%s5124_s4 + $0x60] sm:$0xff] }
 0x5bb   : > { %v644_v24 = vstv %s3475_s15 }
 0x5bc   : > { %3559 = vrsqrt.f32 %v622_v20  ;;  %v645_v25 = vmul.f32 0.0078125, %v644_v24  ;;  %v4131_v20 = vld [vmem:[%s5124_s4 + $0x58] sm:$0xff]  ;;  %v4139_v24 = vld [vmem:[%s5124_s4 + $0x50] sm:$0xff] }
 0x5be   : > { %v4026_v27 = vsub.f32 %v3970_v28, %v645_v25  ;;  %v4029_v29 = vsub.f32 %v3968_v26, %v645_v25  ;;  %v4146_v25 = vld [vmem:[%s5124_s4 + $0x48] sm:$0xff] }
 0x5c0   : > { %v649_v30 = vmul.f32 %v4029_v29, %v4029_v29  ;;  %v648_v31 = vmul.f32 %v4026_v27, %v4026_v27 }
 0x5c2   : > { %654 = vrot.lane.b32.xlu1 %v649_v30, %s3788_s12  ;;  %652 = vrot.lane.b32.xlu0 %v648_v31, %s3788_s12  ;;  %v4167_v30 = vld [vmem:[%s5124_s4 + $0x30] sm:$0xff]  ;;  %v4174_v31 = vld [vmem:[%s5124_s4 + $0x28] sm:$0xff] }
 0x5c9   : > { %v3560_v32 = vpop.eup %3559 }
 0x5ca   : > { %v624_v33 = vmul.f32 %v3560_v32, %v596_v48  ;;  %v625_v34 = vmul.f32 %v3560_v32, %v597_v49  ;;  %v706_v48 = vld [vmem:[%s5123_s3 + $0x20] sm:$0xff]  ;;  %v707_v49 = vld [vmem:[%s5123_s3 + $0x28] sm:$0xff] }
 0x5cb   : > { %761 = vmatprep.subr.mxu1 %v706_v48  ;;  %3401 = vmatprep.subr.mxu0 %v707_v49  ;;  %v4181_v32 = vld [vmem:[%s5124_s4 + $0x20] sm:$0xff] }
 0x5cc   : > { %v4038_v28 = vsel %vm5136_vm6, %v676_v58, %v624_v33  ;;  %v4041_v26 = vsel %vm5136_vm6, %v677_v59, %v625_v34  ;;  %762 = vmatpush1.msra.mxu1 %v705_v50  ;;  %3402 = vmatpush3.msra.mxu0 %v707_v49  ;;  %v4188_v33 = vld [vmem:[%s5124_s4 + $0x18] sm:$0xff]  ;;  %v4195_v34 = vld [vmem:[%s5124_s4 + $0x10] sm:$0xff]  ;;  %vm1258_vm6 = vcmask 256002  }
 0x5cd   : > { %763 = vmatprep.subr.mxu1 %v703_v51  ;;  %3403 = vmatprep.subr.mxu0 %v704_v53 }
 0x5ce   : > { %764 = vmatpush1.msra.mxu1 %v702_v52  ;;  %3404 = vmatpush3.msra.mxu0 %v704_v53 }
 0x5cf   : > { %935 = vmatprep.subr.mxu1 %v4085_v55  ;;  %1052 = vmatprep.subr.mxu0 %v4085_v55 }
 0x634   : > { %v655_v35 = vpop.permute.xlu1 %654  ;;  %v653_v36 = vpop.permute.xlu0 %652 }
 0x635   : > { %v659_v37 = vsel %vm5137_vm4, %v655_v35, 0.0  ;;  %v658_v38 = vsel %vm5137_vm4, %v653_v36, 0.0  ;;  %v4214_v35 = vld [vmem:[%s3929_s16] sm:$0x1]  ;;  %v356_v36 = vld [vmem:[%s5127_s7 + $0x8] sm:$0xff]  ;;  %vm1260_vm4 = vcmask 518402  }
 0x636   : > { %v660_v39 = vadd.f32 %v659_v37, %v658_v38  ;;  %v716_v37 = vsub.s32 7, %v3957_v21  ;;  %s3791_s16 = smov 96  }
 0x638   : > { %661 = vadd.xlane.f32.xlu1 %v660_v39  ;;  %v721_v38 = vrot.slane %v356_v36, %v716_v37  ;;  %v717_v42 = vrot.slane %v3963_v23, %v716_v37  ;;  %v4253_v45 = vrot.slane %v357_v40, %v716_v37 }
 0x6c1   : > { %v662_v56 = vpop.xlane.xlu1 %661 }
 0x6c2   : > { %v663_v57 = vrot.slane %v662_v56, 4 }
 0x6c4   : > { %v664_v58 = vadd.f32 %v663_v57, %v662_v56 }
 0x6c6   : > { %v665_v59 = vrot.slane %v664_v58, 2 }
 0x6c8   : > { %v666_v60 = vadd.f32 %v665_v59, %v664_v58  ;;  %v4273_v59 = vld [vmem:[%s5127_s7 + $0x18] sm:$0x1] }
 0x6ca   : > { %v667_v61 = vrot.slane %v666_v60, 1 }
 0x6cc   : > { %v668_v62 = vadd.f32 %v667_v61, %v666_v60 }
 0x6ce   : > { %3476 = vpush %v668_v62 }
 0x6ff   : > { %s3477_s27 = spop %3476 }
 0x700   : > { %v670_v46 = vstv %s3477_s27 }
 0x701   : > { %v671_v47 = vmul.f32 0.0078125, %v670_v46 }
 0x703   : > { %v672_v63 = vadd.f32 1e-05, %v671_v47 }
 0x705   : > { %3561 = vrsqrt.f32 %v672_v63 }
 0x712   : > { %v3562_v2 = vpop.eup %3561 }
 0x713   : > { %v675_v4 = vmul.f32 %v3562_v2, %v4029_v29  ;;  %v674_v5 = vmul.f32 %v3562_v2, %v4026_v27  ;;  %v4153_v27 = vld [vmem:[%s5124_s4 + $0x40] sm:$0xff]  ;;  %v4160_v29 = vld [vmem:[%s5124_s4 + $0x38] sm:$0xff] }
 0x715   : > { %v682_v7 = vsel %vm5135_vm7, %v4038_v28, %v674_v5  ;;  %v683_v8 = vsel %vm5135_vm7, %v4041_v26, %v675_v4  ;;  %v4202_v28 = vld [vmem:[%s5124_s4 + $0x8] sm:$0xff]  ;;  %v4209_v26 = vld [vmem:[%s5124_s4] sm:$0xff]  ;;  %vm1821_vm7 = vcmask 523527  }
 0x716   : > { %v688_v9 = vmul.f32 %v687_v3, %v682_v7  ;;  %v689_v10 = vmul.f32 %v687_v3, %v683_v8  ;;  %v4286_v4 = vld [vmem:[%s5127_s7 + $0x20] sm:$0x1] }
 0x718   : > { %v694_v11 = vadd.f32 %v693_v6, %v688_v9  ;;  %v695_v12 = vadd.f32 %v693_v6, %v689_v10 }
 0x71a   : > { %vm696_vm9 = vcmp.ge.f32.partialorder %v694_v11, 0.0  ;;  %v698_v13 = vmul.f32 0.01, %v694_v11  ;;  %vm697_vm10 = vcmp.ge.f32.partialorder %v695_v12, 0.0  ;;  %v699_v14 = vmul.f32 0.01, %v695_v12 }
 0x71c   : > { %v4099_v15 = vsel %vm696_vm9, %v694_v11, %v698_v13  ;;  %v4101_v16 = vsel %vm697_vm10, %v695_v12, %v699_v14  ;;  %v1009_v12 = vrot.slane %v4214_v35, %v400_v22  ;;  %vm1599_vm9 = vcmask 259077  }
 0x71d   : > { %3308 = vmatmul.mubr.msk.f32.vlgmr.msra.gmra.mxu1 %vm5139_vm8, %v4099_v15  ;;  %3405 = vmatprep.mubr.msk.f32.mxu0 %vm5139_vm8, %v4099_v15  ;;  %vm1601_vm10 = vcmask 521477  }
 0x71e   : > { %3406 = vmatmul.mubr.msk.f32.vlgmr.msra.gmra.mxu0 %vm5139_vm8, %v4101_v16  ;;  %803 = vmatprep.mubr.f32.mxu1 %v3789_v54 }
 0x71f   : > { %936 = vmatpush1.msra.mxu1 %v4106_v17  ;;  %1053 = vmatpush1.msra.mxu0 %v4106_v17 }
 0x720   : > { %937 = vmatprep.subr.mxu1 %v4115_v18  ;;  %1054 = vmatprep.subr.mxu0 %v4115_v18 }
 0x721   : > { %3309 = vmatmul.mubr.msk.f32.gmra.mxu1 %vm5139_vm8, %v4101_v16  ;;  %1055 = vmatpush1.msra.mxu0 %v4124_v19  ;;  %vm1491_vm8 = vcmask 520452  }
 0x722   : > { %938 = vmatpush1.msra.mxu1 %v4124_v19  ;;  %983 = vmatprep.mubr.f32.mxu1 %v3789_v54 }
 0x723   : > { %939 = vmatprep.subr.mxu1 %v4131_v20  ;;  %1056 = vmatprep.subr.mxu0 %v4131_v20 }
 0x724   : > { %940 = vmatpush1.msra.mxu1 %v4139_v24  ;;  %1057 = vmatpush1.msra.mxu0 %v4139_v24 }
 0x725   : > { %941 = vmatprep.subr.mxu1 %v4146_v25  ;;  %1058 = vmatprep.subr.mxu0 %v4146_v25 }
 0x726   : > { %942 = vmatpush1.msra.mxu1 %v4153_v27  ;;  %1059 = vmatpush1.msra.mxu0 %v4153_v27 }
 0x727   : > { %943 = vmatprep.subr.mxu1 %v4160_v29  ;;  %1060 = vmatprep.subr.mxu0 %v4160_v29 }
 0x728   : > { %944 = vmatpush1.msra.mxu1 %v4167_v30  ;;  %1061 = vmatpush1.msra.mxu0 %v4167_v30 }
 0x729   : > { %945 = vmatprep.subr.mxu1 %v4174_v31  ;;  %1062 = vmatprep.subr.mxu0 %v4174_v31 }
 0x72a   : > { %946 = vmatpush1.msra.mxu1 %v4181_v32  ;;  %1063 = vmatpush1.msra.mxu0 %v4181_v32 }
 0x72b   : > { %947 = vmatprep.subr.mxu1 %v4188_v33  ;;  %1064 = vmatprep.subr.mxu0 %v4188_v33 }
 0x72c   : > { %948 = vmatpush1.msra.mxu1 %v4195_v34  ;;  %1065 = vmatpush1.msra.mxu0 %v4195_v34 }
 0x72d   : > { %949 = vmatprep.subr.mxu1 %v4202_v28  ;;  %1066 = vmatprep.subr.mxu0 %v4202_v28 }
 0x72e   : > { %950 = vmatpush1.msra.mxu1 %v4209_v26  ;;  %1067 = vmatpush1.msra.mxu0 %v4209_v26 }
 0x72f   : > { %3312 = vmatmul.mubr.msk.f32.vlgmr.msra.gmra.mxu1 %vm5138_vm11, %v4214_v35  ;;  %1100 = vmatprep.mubr.f32.mxu0 %v3789_v54 }
 0x730   : > { %1173 = vmatprep.subr.mxu1 %v4085_v55  ;;  %1221 = vmatprep.mubr.f32.mxu1 %v3789_v54 }
 0x731   : > { %1174 = vmatpush1.msra.mxu1 %v4106_v17  ;;  %1294 = vmatprep.subr.mxu0 %v4085_v55 }
 0x732   : > { %1175 = vmatprep.subr.mxu1 %v4115_v18 }
 0x733   : > { %1176 = vmatpush1.msra.mxu1 %v4124_v19 }
 0x734   : > { %1177 = vmatprep.subr.mxu1 %v4131_v20 }
 0x735   : > { %1178 = vmatpush1.msra.mxu1 %v4139_v24 }
 0x736   : > { %1179 = vmatprep.subr.mxu1 %v4146_v25 }
 0x737   : > { %1180 = vmatpush1.msra.mxu1 %v4153_v27 }
 0x738   : > { %1181 = vmatprep.subr.mxu1 %v4160_v29 }
 0x739   : > { %1182 = vmatpush1.msra.mxu1 %v4167_v30 }
 0x73a   : > { %1183 = vmatprep.subr.mxu1 %v4174_v31 }
 0x73b   : > { %1184 = vmatpush1.msra.mxu1 %v4181_v32 }
 0x73c   : > { %1185 = vmatprep.subr.mxu1 %v4188_v33 }
 0x73d   : > { %1186 = vmatpush1.msra.mxu1 %v4195_v34 }
 0x73e   : > { %1187 = vmatprep.subr.mxu1 %v4202_v28 }
 0x73f   : > { %1188 = vmatpush1.msra.mxu1 %v4209_v26 }
 0x740   : > { %1404 = vmatprep.subr.mxu1 %v4085_v55 }
 0x7dd   : > { %v799_v39 = vpop.f32.mrf.mxu1 }
 0x7de   : > { %v3407_v49 = vpop.f32.mrf.mxu0  ;;  %v4275_v61 = vadd.f32 %v799_v39, %v717_v42 }
 0x7df   : > { %v801_v41 = vpop.f32.mrf.mxu1  ;;  %v4260_v52 = vadd.f32 %v3407_v49, %v4253_v45 }
 0x7e0   : > { %v4251_v43 = vadd.f32 %v801_v41, %v721_v38 }
 0x7e1   : > { %v805_v44 = vpop.f32.mrf.mxu1  ;;  %v1263_v23 = vrot.slane %v4260_v52, 1  ;;  %v905_v57 = vrot.slane %v4260_v52, 7  ;;  %v1024_v41 = vrot.slane %v4260_v52, 5 }
 0x7e2   : > { %v4255_v48 = vadd.f32 %v805_v44, %v717_v42  ;;  %v4323_v44 = vpop.f32.mrf.mxu0 }
 0x7e3   : > { %v807_v50 = vpop.f32.mrf.mxu1 }
 0x7e4   : > { %v4257_v51 = vadd.f32 %v807_v50, %v721_v38 }
 0x7e6   : > { %v1141_v53 = vrot.slane %v4257_v51, 3  ;;  %v904_v56 = vrot.slane %v4257_v51, 7  ;;  %v1023_v40 = vrot.slane %v4257_v51, 5 }
 0x7e8   : > { %1143 = vrot.lane.b32.xlu1 %v1141_v53, %s3790_s22  ;;  %906 = vrot.lane.b32.xlu0 %v904_v56, %s3790_s22 }
 0x7ec   : > { %1266 = vrot.lane.b32.xlu1 %v1263_v23, %s3790_s22  ;;  %908 = vrot.lane.b32.xlu0 %v905_v57, %s3790_s22 }
 0x7ef   : > { %v985_v60 = vpop.f32.mrf.mxu1 }
 0x7f0   : > { %v986_v62 = vadd.f32 %v985_v60, %v4273_v59 }
 0x7f1   : > { %v987_v5 = vpop.f32.mrf.mxu1 }
 0x7f2   : > { %v988_v6 = vadd.f32 %v987_v5, %v4286_v4 }
 0x85a   : > { %v907_v58 = vpop.permute.xlu0 %906 }
 0x85e   : > { %v909_v46 = vpop.permute.xlu0 %908 }
 0x85f   : > { %v911_v47 = vsel %vm5138_vm11, %v907_v58, %v909_v46  ;;  %v4290_v8 = vadd.f32 %v909_v46, %v4251_v43 }
 0x860   : > { %v4280_v63 = vadd.f32 %v911_v47, %v4275_v61 }
 0x862   : > { %v990_v0 = vadd.f32 %v986_v62, %v4280_v63 }
 0x864   : > { %v3313_v1 = vmul.f32 -1.442695, %v990_v0 }
 0x866   : > { %3563 = vpow2.f32 %v3313_v1 }
 0x873   : > { %v3564_v2 = vpop.eup %3563 }
 0x874   : > { %v994_v3 = vadd.f32 1.0, %v3564_v2 }
 0x876   : > { %3565 = vrcp.f32 %v994_v3 }
 0x883   : > { %v3566_v7 = vpop.eup %3565 }
 0x884   : > { %v997_v9 = vmul.f32 %v3566_v7, %v988_v6  ;;  %v1000_v14 = vsub.f32 1.0, %v3566_v7 }
 0x886   : > { %v998_v10 = vadd.f32 %v997_v9, %v4290_v8 }
 0x888   : > { %3567 = vtanh.f32 %v998_v10 }
 0x895   : > { %v3568_v11 = vpop.eup %3567 }
 0x896   : > { %1002 = vrot.lane.b32.xlu0 %v3568_v11, %s3790_s22 }
 0x89a   : > { %1010 = vrot.lane.b32.xlu0 %v1009_v12, %s3790_s22 }
 0x908   : > { %v1003_v13 = vpop.permute.xlu0 %1002 }
 0x909   : > { %v1005_v37 = vmul.f32 %v1003_v13, %v1000_v14 }
 0x90c   : > { %v1011_v36 = vpop.permute.xlu0 %1010 }
 0x90d   : > { %v1013_v38 = vmul.f32 %v3566_v7, %v1011_v36  ;;  %v1142_v36 = vrot.slane %v4260_v52, 3 }
 0x90f   : > { %v1014_v39 = vadd.f32 %v1013_v38, %v1005_v37  ;;  %v1144_v38 = vpop.permute.xlu1 %1143 }
 0x911   : > { %1016 = vrot.lane.b32.xlu0 %v1014_v39, %s3790_s22  ;;  %v1129_v0 = vrot.slane %v1014_v39, 7 }
 0x915   : > { %1025 = vrot.lane.b32.xlu0 %v1023_v40, %s3790_s22 }
 0x919   : > { %1027 = vrot.lane.b32.xlu0 %v1024_v41, %s3790_s22 }
 0x983   : > { %v1017_v22 = vpop.permute.xlu0 %1016 }
 0x984   : > { %1020 = vst.msk [vmem:[#allocation2] sm:$0x1] %vm1019_vm12, %v1017_v22  ;;  %3314 = vmatmul.mubr.msk.f32.vlgmr.msra.gmra.mxu0 %vm5138_vm11, %v1017_v22 }
 0x985   : > { %1022 = vst.msk [vmem:[#allocation2 + $0xf] sm:$0x1] %vm1021_vm13, %v1017_v22  ;;  %1295 = vmatpush1.msra.mxu0 %v4106_v17  ;;  %1342 = vmatprep.mubr.f32.mxu0 %v3789_v54 }
 0x986   : > { %1296 = vmatprep.subr.mxu0 %v4115_v18 }
 0x987   : > { %1297 = vmatpush1.msra.mxu0 %v4124_v19  ;;  %v1026_v35 = vpop.permute.xlu0 %1025 }
 0x988   : > { %1298 = vmatprep.subr.mxu0 %v4131_v20 }
 0x989   : > { %1299 = vmatpush1.msra.mxu0 %v4139_v24 }
 0x98a   : > { %1300 = vmatprep.subr.mxu0 %v4146_v25 }
 0x98b   : > { %1301 = vmatpush1.msra.mxu0 %v4153_v27  ;;  %v1028_v42 = vpop.permute.xlu0 %1027 }
 0x98c   : > { %1302 = vmatprep.subr.mxu0 %v4160_v29  ;;  %v1029_v49 = vsel %vm5138_vm11, %v1026_v35, %v1028_v42  ;;  %v4333_v3 = vadd.f32 %v1028_v42, %v4251_v43 }
 0x98d   : > { %1303 = vmatpush1.msra.mxu0 %v4167_v30  ;;  %v4328_v56 = vadd.f32 %v1029_v49, %v4275_v61 }
 0x98e   : > { %1304 = vmatprep.subr.mxu0 %v4174_v31 }
 0x98f   : > { %1305 = vmatpush1.msra.mxu0 %v4181_v32 }
 0x990   : > { %1306 = vmatprep.subr.mxu0 %v4188_v33 }
 0x991   : > { %1307 = vmatpush1.msra.mxu0 %v4195_v34 }
 0x992   : > { %1308 = vmatprep.subr.mxu0 %v4202_v28 }
 0x993   : > { %1309 = vmatpush1.msra.mxu0 %v4209_v26 }
 0x994   : > { %1514 = vmatprep.subr.mxu0 %v4085_v55 }
 0xa44   : > { %v1102_v50 = vpop.f32.mrf.mxu0 }
 0xa45   : > { %v1103_v53 = vadd.f32 %v1102_v50, %v4273_v59 }
 0xa46   : > { %v1104_v46 = vpop.f32.mrf.mxu0 }
 0xa47   : > { %v1108_v23 = vrot.slane %v1103_v53, 7  ;;  %v1105_v47 = vadd.f32 %v1104_v46, %v4286_v4 }
 0xa49   : > { %v1110_v57 = vadd.f32 %v1108_v23, %v4328_v56  ;;  %v1118_v1 = vrot.slane %v1105_v47, 7 }
 0xa4b   : > { %v3315_v58 = vmul.f32 -1.442695, %v1110_v57 }
 0xa4d   : > { %3569 = vpow2.f32 %v3315_v58 }
 0xa5a   : > { %v3570_v60 = vpop.eup %3569 }
 0xa5b   : > { %v1114_v62 = vadd.f32 1.0, %v3570_v60 }
 0xa5d   : > { %3571 = vrcp.f32 %v1114_v62 }
 0xa6a   : > { %v3572_v2 = vpop.eup %3571 }
 0xa6b   : > { %v1120_v5 = vmul.f32 %v3572_v2, %v1118_v1  ;;  %v1131_v6 = vmul.f32 %v3572_v2, %v1129_v0  ;;  %v1123_v10 = vsub.f32 1.0, %v3572_v2 }
 0xa6d   : > { %v1121_v7 = vadd.f32 %v1120_v5, %v4333_v3 }
 0xa6f   : > { %3573 = vtanh.f32 %v1121_v7 }
 0xa7c   : > { %v3574_v9 = vpop.eup %3573 }
 0xa7d   : > { %1125 = vrot.lane.b32.xlu0 %v3574_v9, %s3790_s22 }
 0xaef   : > { %v1126_v11 = vpop.permute.xlu0 %1125 }
 0xaf0   : > { %v1128_v12 = vmul.f32 %v1126_v11, %v1123_v10  ;;  %v1262_v11 = vrot.slane %v4257_v51, 1 }
 0xaf2   : > { %v4337_v13 = vadd.f32 %v1131_v6, %v1128_v12 }
 0xaf4   : > { %v1152_v14 = vrot.slane %v4337_v13, 1  ;;  %v1250_v2 = vrot.slane %v4337_v13, 7 }
 0xaf6   : > { %1153 = vrot.lane.b32.xlu0 %v1152_v14, %s3790_s22 }
 0xafa   : > { %1145 = vrot.lane.b32.xlu0 %v1142_v36, %s3790_s22  ;;  %v1267_v36 = vpop.permute.xlu1 %1266 }
 0xb68   : > { %v1154_v37 = vpop.permute.xlu0 %1153 }
 0xb69   : > { %3316 = vmatmul.mubr.msk.f32.vlgmr.msra.gmra.mxu1 %vm5138_vm11, %v1154_v37 }
 0xb6a   : > { %1405 = vmatpush1.msra.mxu1 %v4106_v17  ;;  %1452 = vmatprep.mubr.f32.mxu1 %v3789_v54 }
 0xb6b   : > { %1406 = vmatprep.subr.mxu1 %v4115_v18 }
 0xb6c   : > { %1407 = vmatpush1.msra.mxu1 %v4124_v19  ;;  %v1146_v52 = vpop.permute.xlu0 %1145 }
 0xb6d   : > { %1408 = vmatprep.subr.mxu1 %v4131_v20  ;;  %v1147_v39 = vsel %vm5138_vm11, %v1144_v38, %v1146_v52  ;;  %v4369_v62 = vadd.f32 %v1146_v52, %v4251_v43 }
 0xb6e   : > { %1409 = vmatpush1.msra.mxu1 %v4139_v24  ;;  %v4364_v22 = vadd.f32 %v1147_v39, %v4275_v61 }
 0xb6f   : > { %1410 = vmatprep.subr.mxu1 %v4146_v25 }
 0xb70   : > { %1411 = vmatpush1.msra.mxu1 %v4153_v27 }
 0xb71   : > { %1412 = vmatprep.subr.mxu1 %v4160_v29 }
 0xb72   : > { %1413 = vmatpush1.msra.mxu1 %v4167_v30 }
 0xb73   : > { %1414 = vmatprep.subr.mxu1 %v4174_v31 }
 0xb74   : > { %1415 = vmatpush1.msra.mxu1 %v4181_v32 }
 0xb75   : > { %1416 = vmatprep.subr.mxu1 %v4188_v33 }
 0xb76   : > { %1417 = vmatpush1.msra.mxu1 %v4195_v34 }
 0xb77   : > { %1418 = vmatprep.subr.mxu1 %v4202_v28 }
 0xb78   : > { %1419 = vmatpush1.msra.mxu1 %v4209_v26 }
 0xb79   : > { %1624 = vmatprep.subr.mxu1 %v4085_v55 }
 0xc29   : > { %v1223_v40 = vpop.f32.mrf.mxu1 }
 0xc2a   : > { %v1224_v41 = vadd.f32 %v1223_v40, %v4273_v59 }
 0xc2b   : > { %v1225_v23 = vpop.f32.mrf.mxu1 }
 0xc2c   : > { %v1229_v35 = vrot.slane %v1224_v41, 6  ;;  %v1226_v57 = vadd.f32 %v1225_v23, %v4286_v4 }
 0xc2e   : > { %v1231_v42 = vadd.f32 %v1229_v35, %v4364_v22  ;;  %v1239_v58 = vrot.slane %v1226_v57, 6 }
 0xc30   : > { %v3317_v49 = vmul.f32 -1.442695, %v1231_v42 }
 0xc32   : > { %3575 = vpow2.f32 %v3317_v49 }
 0xc3f   : > { %v3576_v50 = vpop.eup %3575 }
 0xc40   : > { %v1235_v53 = vadd.f32 1.0, %v3576_v50 }
 0xc42   : > { %3577 = vrcp.f32 %v1235_v53 }
 0xc4f   : > { %v3578_v60 = vpop.eup %3577 }
 0xc50   : > { %v1241_v46 = vmul.f32 %v3578_v60, %v1239_v58  ;;  %v1244_v1 = vsub.f32 1.0, %v3578_v60  ;;  %v1252_v6 = vmul.f32 %v3578_v60, %v1250_v2  ;;  %v4406_v58 = vadd.f32 %v1267_v36, %v4251_v43 }
 0xc52   : > { %v1242_v47 = vadd.f32 %v1241_v46, %v4369_v62 }
 0xc54   : > { %3579 = vtanh.f32 %v1242_v47 }
 0xc61   : > { %v3580_v0 = vpop.eup %3579 }
 0xc62   : > { %1246 = vrot.lane.b32.xlu0 %v3580_v0, %s3790_s22 }
 0xcd4   : > { %v1247_v5 = vpop.permute.xlu0 %1246 }
 0xcd5   : > { %v1249_v7 = vmul.f32 %v1247_v5, %v1244_v1 }
 0xcd7   : > { %v4374_v9 = vadd.f32 %v1252_v6, %v1249_v7 }
 0xcd9   : > { %v1273_v10 = vrot.slane %v4374_v9, 2  ;;  %v1371_v0 = vrot.slane %v4374_v9, 7 }
 0xcdb   : > { %1274 = vrot.lane.b32.xlu0 %v1273_v10, %s3790_s22 }
 0xcdf   : > { %1264 = vrot.lane.b32.xlu0 %v1262_v11, %s3790_s22 }
 0xd4d   : > { %v1275_v12 = vpop.permute.xlu0 %1274 }
 0xd4e   : > { %3318 = vmatmul.mubr.msk.f32.vlgmr.msra.gmra.mxu0 %vm5138_vm11, %v1275_v12 }
 0xd4f   : > { %1515 = vmatpush1.msra.mxu0 %v4106_v17  ;;  %1562 = vmatprep.mubr.f32.mxu0 %v3789_v54 }
 0xd50   : > { %1516 = vmatprep.subr.mxu0 %v4115_v18 }
 0xd51   : > { %1517 = vmatpush1.msra.mxu0 %v4124_v19  ;;  %v1265_v14 = vpop.permute.xlu0 %1264 }
 0xd52   : > { %1518 = vmatprep.subr.mxu0 %v4131_v20  ;;  %v1268_v37 = vsel %vm5138_vm11, %v1265_v14, %v1267_v36 }
 0xd53   : > { %1519 = vmatpush1.msra.mxu0 %v4139_v24  ;;  %v4401_v39 = vadd.f32 %v1268_v37, %v4275_v61 }
 0xd54   : > { %1520 = vmatprep.subr.mxu0 %v4146_v25 }
 0xd55   : > { %1521 = vmatpush1.msra.mxu0 %v4153_v27 }
 0xd56   : > { %1522 = vmatprep.subr.mxu0 %v4160_v29 }
 0xd57   : > { %1523 = vmatpush1.msra.mxu0 %v4167_v30 }
 0xd58   : > { %1524 = vmatprep.subr.mxu0 %v4174_v31 }
 0xd59   : > { %1525 = vmatpush1.msra.mxu0 %v4181_v32 }
 0xd5a   : > { %1526 = vmatprep.subr.mxu0 %v4188_v33 }
 0xd5b   : > { %1527 = vmatpush1.msra.mxu0 %v4195_v34 }
 0xd5c   : > { %1528 = vmatprep.subr.mxu0 %v4202_v28 }
 0xd5d   : > { %1529 = vmatpush1.msra.mxu0 %v4209_v26 }
 0xd5e   : > { %1734 = vmatprep.subr.mxu0 %v4085_v55 }
 0xe0e   : > { %v1344_v52 = vpop.f32.mrf.mxu0 }
 0xe0f   : > { %v1345_v38 = vadd.f32 %v1344_v52, %v4273_v59 }
 0xe10   : > { %v1346_v50 = vpop.f32.mrf.mxu0 }
 0xe11   : > { %v1350_v40 = vrot.slane %v1345_v38, 5  ;;  %v1347_v53 = vadd.f32 %v1346_v50, %v4286_v4 }
 0xe13   : > { %v1352_v41 = vadd.f32 %v1350_v40, %v4401_v39  ;;  %v1360_v23 = vrot.slane %v1347_v53, 5 }
 0xe15   : > { %v3319_v35 = vmul.f32 -1.442695, %v1352_v41 }
 0xe17   : > { %3581 = vpow2.f32 %v3319_v35 }
 0xe24   : > { %v3582_v42 = vpop.eup %3581 }
 0xe25   : > { %v1356_v49 = vadd.f32 1.0, %v3582_v42 }
 0xe27   : > { %3583 = vrcp.f32 %v1356_v49 }
 0xe34   : > { %v3584_v57 = vpop.eup %3583 }
 0xe35   : > { %v1362_v60 = vmul.f32 %v3584_v57, %v1360_v23  ;;  %v1365_v47 = vsub.f32 1.0, %v3584_v57  ;;  %v1373_v2 = vmul.f32 %v3584_v57, %v1371_v0 }
 0xe37   : > { %v1363_v61 = vadd.f32 %v1362_v60, %v4406_v58 }
 0xe39   : > { %3585 = vtanh.f32 %v1363_v61 }
 0xe46   : > { %v3586_v46 = vpop.eup %3585 }
 0xe47   : > { %1367 = vrot.lane.b32.xlu0 %v3586_v46, %s3790_s22 }
 0xeb9   : > { %v1368_v1 = vpop.permute.xlu0 %1367 }
 0xeba   : > { %v1370_v5 = vmul.f32 %v1368_v1, %v1365_v47 }
 0xebc   : > { %v4411_v6 = vadd.f32 %v1373_v2, %v1370_v5 }
 0xebe   : > { %v1383_v7 = vrot.slane %v4411_v6, 3 }
 0xec0   : > { %1384 = vrot.lane.b32.xlu1 %v1383_v7, %s3790_s22 }
 0xf32   : > { %v1385_v10 = vpop.permute.xlu1 %1384 }
 0xf33   : > { %3320 = vmatmul.mubr.msk.f32.vlgmr.msra.gmra.mxu1 %vm5138_vm11, %v1385_v10 }
 0xf34   : > { %1625 = vmatpush1.msra.mxu1 %v4106_v17  ;;  %1672 = vmatprep.mubr.f32.mxu1 %v3789_v54 }
 0xf35   : > { %1626 = vmatprep.subr.mxu1 %v4115_v18 }
 0xf36   : > { %1627 = vmatpush1.msra.mxu1 %v4124_v19 }
 0xf37   : > { %1628 = vmatprep.subr.mxu1 %v4131_v20 }
 0xf38   : > { %1629 = vmatpush1.msra.mxu1 %v4139_v24 }
 0xf39   : > { %1630 = vmatprep.subr.mxu1 %v4146_v25 }
 0xf3a   : > { %1631 = vmatpush1.msra.mxu1 %v4153_v27 }
 0xf3b   : > { %1632 = vmatprep.subr.mxu1 %v4160_v29 }
 0xf3c   : > { %1633 = vmatpush1.msra.mxu1 %v4167_v30 }
 0xf3d   : > { %1634 = vmatprep.subr.mxu1 %v4174_v31 }
 0xf3e   : > { %1635 = vmatpush1.msra.mxu1 %v4181_v32 }
 0xf3f   : > { %1636 = vmatprep.subr.mxu1 %v4188_v33 }
 0xf40   : > { %1637 = vmatpush1.msra.mxu1 %v4195_v34 }
 0xf41   : > { %1638 = vmatprep.subr.mxu1 %v4202_v28 }
 0xf42   : > { %1639 = vmatpush1.msra.mxu1 %v4209_v26 }
 0xf43   : > { %1857 = vmatprep.subr.mxu1 %v4085_v55 }
 0xff3   : > { %v1454_v11 = vpop.f32.mrf.mxu1 }
 0xff4   : > { %v1455_v12 = vadd.f32 %v1454_v11, %v4273_v59 }
 0xff5   : > { %v1456_v40 = vpop.f32.mrf.mxu1 }
 0xff6   : > { %v1460_v14 = vrot.slane %v1455_v12, 4  ;;  %v1457_v41 = vadd.f32 %v1456_v40, %v4286_v4 }
 0xff8   : > { %v1462_v36 = vadd.f32 %v1460_v14, %v4280_v63  ;;  %v1470_v35 = vrot.slane %v1457_v41, 4  ;;  %v1481_v63 = vrot.slane %v4411_v6, 7 }
 0xffa   : > { %v3321_v37 = vmul.f32 -1.442695, %v1462_v36 }
 0xffc   : > { %3587 = vpow2.f32 %v3321_v37 }
0x1009   : > { %v3588_v52 = vpop.eup %3587 }
0x100a   : > { %v1466_v38 = vadd.f32 1.0, %v3588_v52 }
0x100c   : > { %3589 = vrcp.f32 %v1466_v38 }
0x1019   : > { %v3590_v42 = vpop.eup %3589 }
0x101a   : > { %v1472_v49 = vmul.f32 %v3590_v42, %v1470_v35  ;;  %v1475_v23 = vsub.f32 1.0, %v3590_v42  ;;  %v1483_v60 = vmul.f32 %v3590_v42, %v1481_v63 }
0x101c   : > { %v1473_v50 = vadd.f32 %v1472_v49, %v4290_v8 }
0x101e   : > { %3591 = vtanh.f32 %v1473_v50 }
0x102b   : > { %v3592_v53 = vpop.eup %3591 }
0x102c   : > { %1477 = vrot.lane.b32.xlu0 %v3592_v53, %s3790_s22 }
0x109e   : > { %v1478_v57 = vpop.permute.xlu0 %1477 }
0x109f   : > { %v1480_v61 = vmul.f32 %v1478_v57, %v1475_v23 }
0x10a1   : > { %v4439_v46 = vadd.f32 %v1483_v60, %v1480_v61 }
0x10a3   : > { %v1493_v47 = vrot.slane %v4439_v46, 4 }
0x10a5   : > { %1494 = vrot.lane.b32.xlu1 %v1493_v47, %s3790_s22 }
0x1117   : > { %v1495_v0 = vpop.permute.xlu1 %1494 }
0x1118   : > { %3322 = vmatmul.mubr.msk.f32.vlgmr.msra.gmra.mxu0 %vm5138_vm11, %v1495_v0 }
0x1119   : > { %1735 = vmatpush1.msra.mxu0 %v4106_v17  ;;  %1782 = vmatprep.mubr.f32.mxu0 %v3789_v54 }
0x111a   : > { %1736 = vmatprep.subr.mxu0 %v4115_v18 }
0x111b   : > { %1737 = vmatpush1.msra.mxu0 %v4124_v19 }
0x111c   : > { %1738 = vmatprep.subr.mxu0 %v4131_v20 }
0x111d   : > { %1739 = vmatpush1.msra.mxu0 %v4139_v24 }
0x111e   : > { %1740 = vmatprep.subr.mxu0 %v4146_v25 }
0x111f   : > { %1741 = vmatpush1.msra.mxu0 %v4153_v27 }
0x1120   : > { %1742 = vmatprep.subr.mxu0 %v4160_v29 }
0x1121   : > { %1743 = vmatpush1.msra.mxu0 %v4167_v30 }
0x1122   : > { %1744 = vmatprep.subr.mxu0 %v4174_v31 }
0x1123   : > { %1745 = vmatpush1.msra.mxu0 %v4181_v32 }
0x1124   : > { %1746 = vmatprep.subr.mxu0 %v4188_v33 }
0x1125   : > { %1747 = vmatpush1.msra.mxu0 %v4195_v34 }
0x1126   : > { %1748 = vmatprep.subr.mxu0 %v4202_v28 }
0x1127   : > { %1749 = vmatpush1.msra.mxu0 %v4209_v26 }
0x1128   : > { %1966 = vmatprep.subr.mxu0 %v4085_v55 }
0x11d8   : > { %v1564_v8 = vpop.f32.mrf.mxu0 }
0x11d9   : > { %v1565_v1 = vadd.f32 %v1564_v8, %v4273_v59 }
0x11da   : > { %v1566_v12 = vpop.f32.mrf.mxu0 }
0x11db   : > { %v1570_v2 = vrot.slane %v1565_v1, 3  ;;  %v1567_v14 = vadd.f32 %v1566_v12, %v4286_v4 }
0x11dd   : > { %v1572_v5 = vadd.f32 %v1570_v2, %v4328_v56  ;;  %v1580_v36 = vrot.slane %v1567_v14, 3  ;;  %v1591_v56 = vrot.slane %v4439_v46, 7 }
0x11df   : > { %v3323_v7 = vmul.f32 -1.442695, %v1572_v5 }
0x11e1   : > { %3593 = vpow2.f32 %v3323_v7 }
0x11ee   : > { %v3594_v10 = vpop.eup %3593 }
0x11ef   : > { %v1576_v11 = vadd.f32 1.0, %v3594_v10 }
0x11f1   : > { %3595 = vrcp.f32 %v1576_v11 }
0x11fe   : > { %v3596_v37 = vpop.eup %3595 }
0x11ff   : > { %v1582_v52 = vmul.f32 %v3596_v37, %v1580_v36  ;;  %v1585_v41 = vsub.f32 1.0, %v3596_v37  ;;  %v1593_v42 = vmul.f32 %v3596_v37, %v1591_v56 }
0x1201   : > { %v1583_v38 = vadd.f32 %v1582_v52, %v4333_v3 }
0x1203   : > { %3597 = vtanh.f32 %v1583_v38 }
0x1210   : > { %v3598_v40 = vpop.eup %3597 }
0x1211   : > { %1587 = vrot.lane.b32.xlu0 %v3598_v40, %s3790_s22 }
0x1283   : > { %v1588_v35 = vpop.permute.xlu0 %1587 }
0x1284   : > { %v1590_v49 = vmul.f32 %v1588_v35, %v1585_v41 }
0x1286   : > { %v4467_v50 = vadd.f32 %v1593_v42, %v1590_v49 }
0x1288   : > { %v1603_v53 = vrot.slane %v4467_v50, 5 }
0x128a   : > { %1604 = vrot.lane.b32.xlu1 %v1603_v53, %s3790_s22 }
0x12fc   : > { %v1605_v23 = vpop.permute.xlu1 %1604 }
0x12fd   : > { %3324 = vmatmul.mubr.msk.f32.vlgmr.msra.gmra.mxu1 %vm5138_vm11, %v1605_v23 }
0x12fe   : > { %1858 = vmatpush1.msra.mxu1 %v4106_v17  ;;  %1905 = vmatprep.mubr.f32.mxu1 %v3789_v54 }
0x12ff   : > { %1859 = vmatprep.subr.mxu1 %v4115_v18 }
0x1300   : > { %1860 = vmatpush1.msra.mxu1 %v4124_v19 }
0x1301   : > { %1861 = vmatprep.subr.mxu1 %v4131_v20 }
0x1302   : > { %1862 = vmatpush1.msra.mxu1 %v4139_v24 }
0x1303   : > { %1863 = vmatprep.subr.mxu1 %v4146_v25 }
0x1304   : > { %1864 = vmatpush1.msra.mxu1 %v4153_v27 }
0x1305   : > { %1865 = vmatprep.subr.mxu1 %v4160_v29 }
0x1306   : > { %1866 = vmatpush1.msra.mxu1 %v4167_v30 }
0x1307   : > { %1867 = vmatprep.subr.mxu1 %v4174_v31 }
0x1308   : > { %1868 = vmatpush1.msra.mxu1 %v4181_v32 }
0x1309   : > { %1869 = vmatprep.subr.mxu1 %v4188_v33 }
0x130a   : > { %1870 = vmatpush1.msra.mxu1 %v4195_v34 }
0x130b   : > { %1871 = vmatprep.subr.mxu1 %v4202_v28 }
0x130c   : > { %1872 = vmatpush1.msra.mxu1 %v4209_v26 }
0x130d   : > { %2085 = vmatprep.subr.mxu1 %v4085_v55 }
0x13bd   : > { %v1674_v3 = vpop.f32.mrf.mxu1 }
0x13be   : > { %v1675_v63 = vadd.f32 %v1674_v3, %v4273_v59 }
0x13bf   : > { %v1676_v8 = vpop.f32.mrf.mxu1 }
0x13c0   : > { %v1680_v57 = vrot.slane %v1675_v63, 2  ;;  %v1677_v1 = vadd.f32 %v1676_v8, %v4286_v4 }
0x13c2   : > { %v1682_v60 = vadd.f32 %v1680_v57, %v4364_v22  ;;  %v1690_v2 = vrot.slane %v1677_v1, 2  ;;  %v1701_v22 = vrot.slane %v4467_v50, 7 }
0x13c4   : > { %v3325_v61 = vmul.f32 -1.442695, %v1682_v60 }
0x13c6   : > { %3599 = vpow2.f32 %v3325_v61 }
0x13d3   : > { %v3600_v47 = vpop.eup %3599 }
0x13d4   : > { %v1686_v0 = vadd.f32 1.0, %v3600_v47  ;;  %v1825_v47 = vrot.slane %v4251_v43, 7 }
0x13d6   : > { %3601 = vrcp.f32 %v1686_v0 }
0x13e3   : > { %v3602_v5 = vpop.eup %3601 }
0x13e4   : > { %v1692_v7 = vmul.f32 %v3602_v5, %v1690_v2  ;;  %v1695_v12 = vsub.f32 1.0, %v3602_v5  ;;  %v1703_v36 = vmul.f32 %v3602_v5, %v1701_v22 }
0x13e6   : > { %v1693_v10 = vadd.f32 %v1692_v7, %v4369_v62  ;;  %v4529_v7 = vadd.f32 %v4323_v44, %v4253_v45 }
0x13e8   : > { %3603 = vtanh.f32 %v1693_v10  ;;  %v1826_v10 = vrot.slane %v4529_v7, 7 }
0x13f5   : > { %v3604_v11 = vpop.eup %3603 }
0x13f6   : > { %1697 = vrot.lane.b32.xlu0 %v3604_v11, %s3790_s22 }
0x1468   : > { %v1698_v14 = vpop.permute.xlu0 %1697 }
0x1469   : > { %v1700_v37 = vmul.f32 %v1698_v14, %v1695_v12 }
0x146b   : > { %v4495_v52 = vadd.f32 %v1703_v36, %v1700_v37 }
0x146d   : > { %v1713_v38 = vrot.slane %v4495_v52, 6  ;;  %v1811_v0 = vrot.slane %v4495_v52, 7 }
0x146f   : > { %1714 = vrot.lane.b32.xlu1 %v1713_v38, %s3790_s22 }
0x14e1   : > { %v1715_v40 = vpop.permute.xlu1 %1714 }
0x14e2   : > { %3326 = vmatmul.mubr.msk.f32.vlgmr.msra.gmra.mxu0 %vm5138_vm11, %v1715_v40  ;;  %v1937_v40 = vrot.slane %v4251_v43, 5 }
0x14e3   : > { %1967 = vmatpush1.msra.mxu0 %v4106_v17  ;;  %2014 = vmatprep.mubr.f32.mxu0 %v3789_v54 }
0x14e4   : > { %1968 = vmatprep.subr.mxu0 %v4115_v18 }
0x14e5   : > { %1969 = vmatpush1.msra.mxu0 %v4124_v19 }
0x14e6   : > { %1970 = vmatprep.subr.mxu0 %v4131_v20 }
0x14e7   : > { %1971 = vmatpush1.msra.mxu0 %v4139_v24 }
0x14e8   : > { %1972 = vmatprep.subr.mxu0 %v4146_v25 }
0x14e9   : > { %1973 = vmatpush1.msra.mxu0 %v4153_v27 }
0x14ea   : > { %1974 = vmatprep.subr.mxu0 %v4160_v29 }
0x14eb   : > { %1975 = vmatpush1.msra.mxu0 %v4167_v30 }
0x14ec   : > { %1976 = vmatprep.subr.mxu0 %v4174_v31 }
0x14ed   : > { %1977 = vmatpush1.msra.mxu0 %v4181_v32 }
0x14ee   : > { %1978 = vmatprep.subr.mxu0 %v4188_v33 }
0x14ef   : > { %1979 = vmatpush1.msra.mxu0 %v4195_v34 }
0x14f0   : > { %1980 = vmatprep.subr.mxu0 %v4202_v28 }
0x14f1   : > { %1981 = vmatpush1.msra.mxu0 %v4209_v26 }
0x14f2   : > { %2204 = vmatprep.subr.mxu0 %v4085_v55 }
0x15a2   : > { %v1784_v62 = vpop.f32.mrf.mxu0 }
0x15a3   : > { %v1785_v41 = vadd.f32 %v1784_v62, %v4273_v59 }
0x15a4   : > { %v1786_v23 = vpop.f32.mrf.mxu0 }
0x15a5   : > { %v1790_v56 = vrot.slane %v1785_v41, 1  ;;  %v1787_v3 = vadd.f32 %v1786_v23, %v4286_v4  ;;  %v4582_v23 = vld [vmem:[%s5124_s4 + $0x70] sm:$0xff] }
0x15a7   : > { %v1792_v35 = vadd.f32 %v1790_v56, %v4401_v39  ;;  %v1800_v63 = vrot.slane %v1787_v3, 1  ;;  %v4589_v3 = vld [vmem:[%s5124_s4 + $0x68] sm:$0xff] }
0x15a9   : > { %v3327_v42 = vmul.f32 -1.442695, %v1792_v35 }
0x15ab   : > { %3605 = vpow2.f32 %v3327_v42 }
0x15b8   : > { %v3606_v49 = vpop.eup %3605 }
0x15b9   : > { %v1796_v53 = vadd.f32 1.0, %v3606_v49  ;;  %v1938_v49 = vrot.slane %v4529_v7, 5 }
0x15bb   : > { %3607 = vrcp.f32 %v1796_v53 }
0x15c8   : > { %v3608_v57 = vpop.eup %3607 }
0x15c9   : > { %v1802_v60 = vmul.f32 %v3608_v57, %v1800_v63  ;;  %v1805_v39 = vsub.f32 1.0, %v3608_v57  ;;  %v1813_v1 = vmul.f32 %v3608_v57, %v1811_v0  ;;  %v4595_v63 = vld [vmem:[%s5124_s4 + $0x60] sm:$0xff]  ;;  %v4601_v57 = vld [vmem:[%s5124_s4 + $0x58] sm:$0xff]  ;;  %v4637_v0 = vld [vmem:[%s5124_s4 + $0x28] sm:$0xff] }
0x15cb   : > { %v1803_v61 = vadd.f32 %v1802_v60, %v4406_v58  ;;  %v4607_v60 = vld [vmem:[%s5124_s4 + $0x50] sm:$0xff] }
0x15cd   : > { %3609 = vtanh.f32 %v1803_v61  ;;  %v4613_v61 = vld [vmem:[%s5124_s4 + $0x48] sm:$0xff] }
0x15da   : > { %v3610_v55 = vpop.eup %3609 }
0x15db   : > { %1807 = vrot.lane.b32.xlu0 %v3610_v55, %s3790_s22  ;;  %v4619_v55 = vld [vmem:[%s5124_s4 + $0x40] sm:$0xff] }
0x15df   : > { %1827 = vrot.lane.b32.xlu0 %v1825_v47, %s3790_s22  ;;  %v4625_v47 = vld [vmem:[%s5124_s4 + $0x38] sm:$0xff] }
0x164d   : > { %v1808_v8 = vpop.permute.xlu0 %1807 }
0x164e   : > { %v1810_v2 = vmul.f32 %v1808_v8, %v1805_v39  ;;  %v4631_v39 = vld [vmem:[%s5124_s4 + $0x30] sm:$0xff] }
0x1650   : > { %v4525_v5 = vadd.f32 %v1813_v1, %v1810_v2 }
0x1652   : > { %v1836_v58 = vrot.slane %v4525_v5, 7 }
0x1654   : > { %1837 = vrot.lane.b32.xlu1 %v1836_v58, %s3790_s22 }
0x1658   : > { %1829 = vrot.lane.b32.xlu1 %v1826_v10, %s3790_s22 }
0x16c6   : > { %v1838_v11 = vpop.permute.xlu1 %1837 }
0x16c7   : > { %3328 = vmatmul.mubr.msk.f32.vlgmr.msra.gmra.mxu1 %vm5138_vm11, %v1838_v11 }
0x16c8   : > { %2086 = vmatpush1.msra.mxu1 %v4106_v17  ;;  %2133 = vmatprep.mubr.f32.mxu1 %v3789_v54  ;;  %v4555_v17 = vld [vmem:[%s5124_s4 + $0x78] sm:$0xff] }
0x16c9   : > { %2087 = vmatprep.subr.mxu1 %v4115_v18 }
0x16ca   : > { %2088 = vmatpush1.msra.mxu1 %v4124_v19  ;;  %v1830_v18 = vpop.permute.xlu1 %1829  ;;  %v1828_v19 = vpop.permute.xlu0 %1827 }
0x16cb   : > { %2089 = vmatprep.subr.mxu1 %v4131_v20  ;;  %v1831_v20 = vsel %vm5138_vm11, %v1828_v19, %v1830_v18  ;;  %v4566_v14 = vadd.f32 %v1830_v18, %v4257_v51 }
0x16cc   : > { %2090 = vmatpush1.msra.mxu1 %v4139_v24 }
0x16cd   : > { %2091 = vmatprep.subr.mxu1 %v4146_v25  ;;  %v4560_v25 = vadd.f32 %v1831_v20, %v4255_v48 }
0x16ce   : > { %2092 = vmatpush1.msra.mxu1 %v4153_v27 }
0x16cf   : > { %2093 = vmatprep.subr.mxu1 %v4160_v29 }
0x16d0   : > { %2094 = vmatpush1.msra.mxu1 %v4167_v30 }
0x16d1   : > { %2095 = vmatprep.subr.mxu1 %v4174_v31 }
0x16d2   : > { %2096 = vmatpush1.msra.mxu1 %v4181_v32 }
0x16d3   : > { %2097 = vmatprep.subr.mxu1 %v4188_v33 }
0x16d4   : > { %2098 = vmatpush1.msra.mxu1 %v4195_v34 }
0x16d5   : > { %2099 = vmatprep.subr.mxu1 %v4202_v28 }
0x16d6   : > { %2100 = vmatpush1.msra.mxu1 %v4209_v26 }
0x16d7   : > { %2312 = vmatprep.subr.mxu1 %v4555_v17 }
0x1787   : > { %v1907_v24 = vpop.f32.mrf.mxu1 }
0x1788   : > { %v1908_v27 = vadd.f32 %v1907_v24, %v4273_v59 }
0x1789   : > { %v1909_v44 = vpop.f32.mrf.mxu1 }
0x178a   : > { %v1912_v29 = vadd.f32 %v1908_v27, %v4560_v25  ;;  %v1910_v12 = vadd.f32 %v1909_v44, %v4286_v4 }
0x178c   : > { %v3329_v30 = vmul.f32 -1.442695, %v1912_v29 }
0x178e   : > { %3611 = vpow2.f32 %v3329_v30 }
0x179b   : > { %v3612_v31 = vpop.eup %3611 }
0x179c   : > { %v1916_v45 = vadd.f32 1.0, %v3612_v31 }
0x179e   : > { %3613 = vrcp.f32 %v1916_v45 }
0x17ab   : > { %v3614_v22 = vpop.eup %3613 }
0x17ac   : > { %v1919_v36 = vmul.f32 %v3614_v22, %v1910_v12  ;;  %v1922_v62 = vsub.f32 1.0, %v3614_v22  ;;  %v1929_v56 = vmul.f32 %v3614_v22, %v1836_v58  ;;  %v2053_v12 = vrot.slane %v4251_v43, 3 }
0x17ae   : > { %v1920_v37 = vadd.f32 %v1919_v36, %v4566_v14 }
0x17b0   : > { %3615 = vtanh.f32 %v1920_v37 }
0x17bd   : > { %v3616_v38 = vpop.eup %3615 }
0x17be   : > { %1924 = vrot.lane.b32.xlu0 %v3616_v38, %s3790_s22 }
0x17c2   : > { %1939 = vrot.lane.b32.xlu0 %v1937_v40, %s3790_s22 }
0x1830   : > { %v1925_v41 = vpop.permute.xlu0 %1924 }
0x1831   : > { %v1927_v35 = vmul.f32 %v1925_v41, %v1922_v62  ;;  %v2054_v62 = vrot.slane %v4529_v7, 3 }
0x1833   : > { %v1930_v42 = vadd.f32 %v1929_v56, %v1927_v35  ;;  %v4681_v56 = vld [vmem:[%s5124_s4 + $0x20] sm:$0xff]  ;;  %v4687_v35 = vld [vmem:[%s5124_s4 + $0x18] sm:$0xff] }
0x1834   : > { %v1940_v1 = vpop.permute.xlu0 %1939 }
0x1835   : > { %1932 = vrot.lane.b32.xlu1 %v1930_v42, %s3790_s22  ;;  %v2043_v20 = vrot.slane %v1930_v42, 7  ;;  %v4693_v42 = vld [vmem:[%s5124_s4 + $0x10] sm:$0xff] }
0x1839   : > { %1941 = vrot.lane.b32.xlu1 %v1938_v49, %s3790_s22  ;;  %v4699_v49 = vld [vmem:[%s5124_s4 + $0x8] sm:$0xff] }
0x18a7   : > { %v4575_v53 = vpop.permute.xlu1 %1932 }
0x18a8   : > { %3330 = vmatmul.mubr.msk.f32.vlgmr.msra.gmra.mxu0 %vm5138_vm11, %v4575_v53 }
0x18a9   : > { %2205 = vmatpush1.msra.mxu0 %v4582_v23  ;;  %2252 = vmatprep.mubr.f32.mxu0 %v3789_v54 }
0x18aa   : > { %2206 = vmatprep.subr.mxu0 %v4589_v3 }
0x18ab   : > { %2207 = vmatpush1.msra.mxu0 %v4595_v63  ;;  %v1942_v8 = vpop.permute.xlu1 %1941 }
0x18ac   : > { %2208 = vmatprep.subr.mxu0 %v4601_v57  ;;  %v1943_v2 = vsel %vm5138_vm11, %v1940_v1, %v1942_v8  ;;  %v4654_v29 = vadd.f32 %v1942_v8, %v4257_v51  ;;  %v4705_v8 = vld [vmem:[%s5124_s4] sm:$0xff] }
0x18ad   : > { %2209 = vmatpush1.msra.mxu0 %v4607_v60  ;;  %v4649_v11 = vadd.f32 %v1943_v2, %v4255_v48 }
0x18ae   : > { %2210 = vmatprep.subr.mxu0 %v4613_v61 }
0x18af   : > { %2211 = vmatpush1.msra.mxu0 %v4619_v55 }
0x18b0   : > { %2212 = vmatprep.subr.mxu0 %v4625_v47 }
0x18b1   : > { %2213 = vmatpush1.msra.mxu0 %v4631_v39 }
0x18b2   : > { %2214 = vmatprep.subr.mxu0 %v4637_v0 }
0x18b3   : > { %2215 = vmatpush1.msra.mxu0 %v4181_v32 }
0x18b4   : > { %2216 = vmatprep.subr.mxu0 %v4188_v33 }
0x18b5   : > { %2217 = vmatpush1.msra.mxu0 %v4195_v34 }
0x18b6   : > { %2218 = vmatprep.subr.mxu0 %v4202_v28 }
0x18b7   : > { %2219 = vmatpush1.msra.mxu0 %v4209_v26 }
0x18b8   : > { %2420 = vmatprep.subr.mxu0 %v4555_v17 }
0x1968   : > { %v2016_v58 = vpop.f32.mrf.mxu0 }
0x1969   : > { %v2017_v10 = vadd.f32 %v2016_v58, %v4273_v59 }
0x196a   : > { %v2018_v26 = vpop.f32.mrf.mxu0 }
0x196b   : > { %v2022_v32 = vrot.slane %v2017_v10, 7  ;;  %v2019_v19 = vadd.f32 %v2018_v26, %v4286_v4 }
0x196d   : > { %v2024_v33 = vadd.f32 %v2022_v32, %v4649_v11  ;;  %v2032_v24 = vrot.slane %v2019_v19, 7 }
0x196f   : > { %v3331_v34 = vmul.f32 -1.442695, %v2024_v33 }
0x1971   : > { %3617 = vpow2.f32 %v3331_v34 }
0x197e   : > { %v3618_v28 = vpop.eup %3617 }
0x197f   : > { %v2028_v18 = vadd.f32 1.0, %v3618_v28 }
0x1981   : > { %3619 = vrcp.f32 %v2028_v18 }
0x198e   : > { %v3620_v27 = vpop.eup %3619 }
0x198f   : > { %v2034_v30 = vmul.f32 %v3620_v27, %v2032_v24  ;;  %v2045_v31 = vmul.f32 %v3620_v27, %v2043_v20  ;;  %v2037_v22 = vsub.f32 1.0, %v3620_v27 }
0x1991   : > { %v2035_v45 = vadd.f32 %v2034_v30, %v4654_v29 }
0x1993   : > { %3621 = vtanh.f32 %v2035_v45 }
0x19a0   : > { %v3622_v44 = vpop.eup %3621 }
0x19a1   : > { %2039 = vrot.lane.b32.xlu0 %v3622_v44, %s3790_s22 }
0x19a5   : > { %2055 = vrot.lane.b32.xlu0 %v2053_v12, %s3790_s22  ;;  %v2172_v12 = vrot.slane %v4251_v43, 1 }
0x1a13   : > { %v2040_v36 = vpop.permute.xlu0 %2039 }
0x1a14   : > { %v2042_v37 = vmul.f32 %v2040_v36, %v2037_v22 }
0x1a16   : > { %v4660_v38 = vadd.f32 %v2045_v31, %v2042_v37 }
0x1a17   : > { %v2056_v2 = vpop.permute.xlu0 %2055 }
0x1a18   : > { %v2064_v40 = vrot.slane %v4660_v38, 1  ;;  %v2162_v36 = vrot.slane %v4660_v38, 7 }
0x1a1a   : > { %2065 = vrot.lane.b32.xlu1 %v2064_v40, %s3790_s22 }
0x1a1e   : > { %2057 = vrot.lane.b32.xlu1 %v2054_v62, %s3790_s22 }
0x1a8c   : > { %v2066_v41 = vpop.permute.xlu1 %2065 }
0x1a8d   : > { %3332 = vmatmul.mubr.msk.f32.vlgmr.msra.gmra.mxu1 %vm5138_vm11, %v2066_v41 }
0x1a8e   : > { %2313 = vmatpush1.msra.mxu1 %v4582_v23  ;;  %2360 = vmatprep.mubr.f32.mxu1 %v3789_v54 }
0x1a8f   : > { %2314 = vmatprep.subr.mxu1 %v4589_v3 }
0x1a90   : > { %2315 = vmatpush1.msra.mxu1 %v4595_v63  ;;  %v2058_v1 = vpop.permute.xlu1 %2057 }
0x1a91   : > { %2316 = vmatprep.subr.mxu1 %v4601_v57  ;;  %v2059_v58 = vsel %vm5138_vm11, %v2056_v2, %v2058_v1  ;;  %v4717_v31 = vadd.f32 %v2058_v1, %v4257_v51  ;;  %v2173_v1 = vrot.slane %v4529_v7, 1 }
0x1a92   : > { %2317 = vmatpush1.msra.mxu1 %v4607_v60  ;;  %v4712_v33 = vadd.f32 %v2059_v58, %v4255_v48 }
0x1a93   : > { %2318 = vmatprep.subr.mxu1 %v4613_v61 }
0x1a94   : > { %2319 = vmatpush1.msra.mxu1 %v4619_v55 }
0x1a95   : > { %2320 = vmatprep.subr.mxu1 %v4625_v47 }
0x1a96   : > { %2321 = vmatpush1.msra.mxu1 %v4631_v39 }
0x1a97   : > { %2322 = vmatprep.subr.mxu1 %v4637_v0 }
0x1a98   : > { %2323 = vmatpush1.msra.mxu1 %v4681_v56 }
0x1a99   : > { %2324 = vmatprep.subr.mxu1 %v4687_v35 }
0x1a9a   : > { %2325 = vmatpush1.msra.mxu1 %v4693_v42 }
0x1a9b   : > { %2326 = vmatprep.subr.mxu1 %v4699_v49 }
0x1a9c   : > { %2327 = vmatpush1.msra.mxu1 %v4705_v8 }
0x1a9d   : > { %2528 = vmatprep.subr.mxu1 %v4555_v17 }
0x1b4d   : > { %v2135_v10 = vpop.f32.mrf.mxu1 }
0x1b4e   : > { %v2136_v32 = vadd.f32 %v2135_v10, %v4273_v59 }
0x1b4f   : > { %v2137_v20 = vpop.f32.mrf.mxu1 }
0x1b50   : > { %v2141_v34 = vrot.slane %v2136_v32, 6  ;;  %v2138_v24 = vadd.f32 %v2137_v20, %v4286_v4  ;;  %v4752_v32 = vld [vmem:[%s5127_s7 + $0x18] sm:$0x1] }
0x1b52   : > { %v2143_v28 = vadd.f32 %v2141_v34, %v4712_v33  ;;  %v2151_v27 = vrot.slane %v2138_v24, 6 }
0x1b54   : > { %v3333_v18 = vmul.f32 -1.442695, %v2143_v28 }
0x1b56   : > { %3623 = vpow2.f32 %v3333_v18 }
0x1b63   : > { %v3624_v26 = vpop.eup %3623 }
0x1b64   : > { %v2147_v19 = vadd.f32 1.0, %v3624_v26 }
0x1b66   : > { %3625 = vrcp.f32 %v2147_v19 }
0x1b73   : > { %v3626_v30 = vpop.eup %3625 }
0x1b74   : > { %v2153_v59 = vmul.f32 %v3626_v30, %v2151_v27  ;;  %v2156_v22 = vsub.f32 1.0, %v3626_v30  ;;  %v2164_v37 = vmul.f32 %v3626_v30, %v2162_v36  ;;  %v4762_v27 = vld [vmem:[%s5127_s7 + $0x20] sm:$0x1] }
0x1b76   : > { %v2154_v45 = vadd.f32 %v2153_v59, %v4717_v31 }
0x1b78   : > { %3627 = vtanh.f32 %v2154_v45 }
0x1b85   : > { %v3628_v44 = vpop.eup %3627 }
0x1b86   : > { %2158 = vrot.lane.b32.xlu0 %v3628_v44, %s3790_s22 }
0x1b8a   : > { %2174 = vrot.lane.b32.xlu0 %v2172_v12, %s3790_s22 }
0x1bf8   : > { %v2159_v4 = vpop.permute.xlu0 %2158 }
0x1bf9   : > { %v2161_v40 = vmul.f32 %v2159_v4, %v2156_v22 }
0x1bfb   : > { %v4724_v62 = vadd.f32 %v2164_v37, %v2161_v40 }
0x1bfc   : > { %v2175_v7 = vpop.permute.xlu0 %2174 }
0x1bfd   : > { %v2183_v41 = vrot.slane %v4724_v62, 2  ;;  %v2281_v4 = vrot.slane %v4724_v62, 7 }
0x1bff   : > { %2184 = vrot.lane.b32.xlu1 %v2183_v41, %s3790_s22 }
0x1c03   : > { %2176 = vrot.lane.b32.xlu1 %v2173_v1, %s3790_s22 }
0x1c71   : > { %v2185_v2 = vpop.permute.xlu1 %2184 }
0x1c72   : > { %3334 = vmatmul.mubr.msk.f32.vlgmr.msra.gmra.mxu0 %vm5138_vm11, %v2185_v2 }
0x1c73   : > { %2421 = vmatpush1.msra.mxu0 %v4582_v23  ;;  %2468 = vmatprep.mubr.f32.mxu0 %v3789_v54 }
0x1c74   : > { %2422 = vmatprep.subr.mxu0 %v4589_v3 }
0x1c75   : > { %2423 = vmatpush1.msra.mxu0 %v4595_v63  ;;  %v2177_v43 = vpop.permute.xlu1 %2176 }
0x1c76   : > { %2424 = vmatprep.subr.mxu0 %v4601_v57  ;;  %v2178_v58 = vsel %vm5138_vm11, %v2175_v7, %v2177_v43 }
0x1c77   : > { %2425 = vmatpush1.msra.mxu0 %v4607_v60  ;;  %v4756_v28 = vadd.f32 %v2178_v58, %v4255_v48  ;;  %v4766_v48 = vadd.f32 %v2177_v43, %v4257_v51 }
0x1c78   : > { %2426 = vmatprep.subr.mxu0 %v4613_v61 }
0x1c79   : > { %2427 = vmatpush1.msra.mxu0 %v4619_v55 }
0x1c7a   : > { %2428 = vmatprep.subr.mxu0 %v4625_v47 }
0x1c7b   : > { %2429 = vmatpush1.msra.mxu0 %v4631_v39 }
0x1c7c   : > { %2430 = vmatprep.subr.mxu0 %v4637_v0 }
0x1c7d   : > { %2431 = vmatpush1.msra.mxu0 %v4681_v56 }
0x1c7e   : > { %2432 = vmatprep.subr.mxu0 %v4687_v35 }
0x1c7f   : > { %2433 = vmatpush1.msra.mxu0 %v4693_v42 }
0x1c80   : > { %2434 = vmatprep.subr.mxu0 %v4699_v49 }
0x1c81   : > { %2435 = vmatpush1.msra.mxu0 %v4705_v8 }
0x1c82   : > { %2636 = vmatprep.subr.mxu0 %v4555_v17 }
0x1d32   : > { %v2254_v10 = vpop.f32.mrf.mxu0 }
0x1d33   : > { %v2255_v34 = vadd.f32 %v4752_v32, %v2254_v10 }
0x1d34   : > { %v2256_v24 = vpop.f32.mrf.mxu0 }
0x1d35   : > { %v2260_v18 = vrot.slane %v2255_v34, 5  ;;  %v2257_v30 = vadd.f32 %v4762_v27, %v2256_v24 }
0x1d37   : > { %v2262_v26 = vadd.f32 %v2260_v18, %v4756_v28  ;;  %v2270_v59 = vrot.slane %v2257_v30, 5 }
0x1d39   : > { %v3335_v19 = vmul.f32 -1.442695, %v2262_v26 }
0x1d3b   : > { %3629 = vpow2.f32 %v3335_v19 }
0x1d48   : > { %v3630_v17 = vpop.eup %3629 }
0x1d49   : > { %v2266_v20 = vadd.f32 1.0, %v3630_v17 }
0x1d4b   : > { %3631 = vrcp.f32 %v2266_v20 }
0x1d58   : > { %v3632_v45 = vpop.eup %3631 }
0x1d59   : > { %v2272_v44 = vmul.f32 %v3632_v45, %v2270_v59  ;;  %v2275_v36 = vsub.f32 1.0, %v3632_v45  ;;  %v2283_v40 = vmul.f32 %v3632_v45, %v2281_v4 }
0x1d5b   : > { %v2273_v12 = vadd.f32 %v2272_v44, %v4766_v48 }
0x1d5d   : > { %3633 = vtanh.f32 %v2273_v12 }
0x1d6a   : > { %v3634_v22 = vpop.eup %3633 }
0x1d6b   : > { %2277 = vrot.lane.b32.xlu0 %v3634_v22, %s3790_s22 }
0x1ddd   : > { %v2278_v37 = vpop.permute.xlu0 %2277 }
0x1dde   : > { %v2280_v41 = vmul.f32 %v2278_v37, %v2275_v36 }
0x1de0   : > { %v4771_v1 = vadd.f32 %v2283_v40, %v2280_v41 }
0x1de2   : > { %v2291_v2 = vrot.slane %v4771_v1, 3 }
0x1de4   : > { %2292 = vrot.lane.b32.xlu1 %v2291_v2, %s3790_s22 }
0x1e56   : > { %v2293_v51 = vpop.permute.xlu1 %2292 }
0x1e57   : > { %3336 = vmatmul.mubr.msk.f32.vlgmr.msra.gmra.mxu1 %vm5138_vm11, %v2293_v51 }
0x1e58   : > { %2529 = vmatpush1.msra.mxu1 %v4582_v23  ;;  %2576 = vmatprep.mubr.f32.mxu1 %v3789_v54 }
0x1e59   : > { %2530 = vmatprep.subr.mxu1 %v4589_v3 }
0x1e5a   : > { %2531 = vmatpush1.msra.mxu1 %v4595_v63 }
0x1e5b   : > { %2532 = vmatprep.subr.mxu1 %v4601_v57 }
0x1e5c   : > { %2533 = vmatpush1.msra.mxu1 %v4607_v60 }
0x1e5d   : > { %2534 = vmatprep.subr.mxu1 %v4613_v61 }
0x1e5e   : > { %2535 = vmatpush1.msra.mxu1 %v4619_v55 }
0x1e5f   : > { %2536 = vmatprep.subr.mxu1 %v4625_v47 }
0x1e60   : > { %2537 = vmatpush1.msra.mxu1 %v4631_v39 }
0x1e61   : > { %2538 = vmatprep.subr.mxu1 %v4637_v0 }
0x1e62   : > { %2539 = vmatpush1.msra.mxu1 %v4681_v56 }
0x1e63   : > { %2540 = vmatprep.subr.mxu1 %v4687_v35 }
0x1e64   : > { %2541 = vmatpush1.msra.mxu1 %v4693_v42 }
0x1e65   : > { %2542 = vmatprep.subr.mxu1 %v4699_v49 }
0x1e66   : > { %2543 = vmatpush1.msra.mxu1 %v4705_v8 }
0x1f17   : > { %v2362_v43 = vpop.f32.mrf.mxu1 }
0x1f18   : > { %v2363_v7 = vadd.f32 %v4752_v32, %v2362_v43 }
0x1f19   : > { %v2364_v19 = vpop.f32.mrf.mxu1 }
0x1f1a   : > { %v2368_v58 = vrot.slane %v2363_v7, 4  ;;  %v2365_v17 = vadd.f32 %v4762_v27, %v2364_v19 }
0x1f1c   : > { %v2370_v10 = vadd.f32 %v2368_v58, %v4560_v25  ;;  %v2378_v20 = vrot.slane %v2365_v17, 4  ;;  %v2389_v25 = vrot.slane %v4771_v1, 7 }
0x1f1e   : > { %v3337_v34 = vmul.f32 -1.442695, %v2370_v10 }
0x1f20   : > { %3635 = vpow2.f32 %v3337_v34 }
0x1f2d   : > { %v3636_v18 = vpop.eup %3635 }
0x1f2e   : > { %v2374_v26 = vadd.f32 1.0, %v3636_v18 }
0x1f30   : > { %3637 = vrcp.f32 %v2374_v26 }
0x1f3d   : > { %v3638_v24 = vpop.eup %3637 }
0x1f3e   : > { %v2380_v30 = vmul.f32 %v3638_v24, %v2378_v20  ;;  %v2383_v44 = vsub.f32 1.0, %v3638_v24  ;;  %v2391_v22 = vmul.f32 %v3638_v24, %v2389_v25 }
0x1f40   : > { %v2381_v59 = vadd.f32 %v2380_v30, %v4566_v14 }
0x1f42   : > { %3639 = vtanh.f32 %v2381_v59 }
0x1f4f   : > { %v3640_v45 = vpop.eup %3639 }
0x1f50   : > { %2385 = vrot.lane.b32.xlu0 %v3640_v45, %s3790_s22 }
0x1fc2   : > { %v2386_v12 = vpop.permute.xlu0 %2385 }
0x1fc3   : > { %v2388_v36 = vmul.f32 %v2386_v12, %v2383_v44 }
0x1fc5   : > { %v4798_v4 = vadd.f32 %v2391_v22, %v2388_v36 }
0x1fc7   : > { %v2399_v37 = vrot.slane %v4798_v4, 4 }
0x1fc9   : > { %2400 = vrot.lane.b32.xlu1 %v2399_v37, %s3790_s22 }
0x203b   : > { %v2401_v40 = vpop.permute.xlu1 %2400 }
0x203c   : > { %3338 = vmatmul.mubr.msk.f32.vlgmr.msra.gmra.mxu0 %vm5138_vm11, %v2401_v40 }
0x203d   : > { %2637 = vmatpush1.msra.mxu0 %v4582_v23  ;;  %2684 = vmatprep.mubr.f32.mxu0 %v3789_v54 }
0x203e   : > { %2638 = vmatprep.subr.mxu0 %v4589_v3 }
0x203f   : > { %2639 = vmatpush1.msra.mxu0 %v4595_v63 }
0x2040   : > { %2640 = vmatprep.subr.mxu0 %v4601_v57 }
0x2041   : > { %2641 = vmatpush1.msra.mxu0 %v4607_v60 }
0x2042   : > { %2642 = vmatprep.subr.mxu0 %v4613_v61 }
0x2043   : > { %2643 = vmatpush1.msra.mxu0 %v4619_v55 }
0x2044   : > { %2644 = vmatprep.subr.mxu0 %v4625_v47 }
0x2045   : > { %2645 = vmatpush1.msra.mxu0 %v4631_v39 }
0x2046   : > { %2646 = vmatprep.subr.mxu0 %v4637_v0 }
0x2047   : > { %2647 = vmatpush1.msra.mxu0 %v4681_v56 }
0x2048   : > { %2648 = vmatprep.subr.mxu0 %v4687_v35 }
0x2049   : > { %2649 = vmatpush1.msra.mxu0 %v4693_v42 }
0x204a   : > { %2650 = vmatprep.subr.mxu0 %v4699_v49 }
0x204b   : > { %2651 = vmatpush1.msra.mxu0 %v4705_v8 }
0x20fc   : > { %v2470_v54 = vpop.f32.mrf.mxu0 }
0x20fd   : > { %v2471_v14 = vadd.f32 %v4752_v32, %v2470_v54 }
0x20fe   : > { %v2472_v61 = vpop.f32.mrf.mxu0 }
0x20ff   : > { %v2476_v23 = vrot.slane %v2471_v14, 3  ;;  %v2473_v55 = vadd.f32 %v4762_v27, %v2472_v61 }
0x2101   : > { %v2478_v3 = vadd.f32 %v2476_v23, %v4649_v11  ;;  %v2486_v47 = vrot.slane %v2473_v55, 3  ;;  %v2497_v11 = vrot.slane %v4798_v4, 7 }
0x2103   : > { %v3339_v63 = vmul.f32 -1.442695, %v2478_v3 }
0x2105   : > { %3641 = vpow2.f32 %v3339_v63 }
0x2112   : > { %v3642_v57 = vpop.eup %3641 }
0x2113   : > { %v2482_v60 = vadd.f32 1.0, %v3642_v57 }
0x2115   : > { %3643 = vrcp.f32 %v2482_v60 }
0x2122   : > { %v3644_v39 = vpop.eup %3643 }
0x2123   : > { %v2488_v0 = vmul.f32 %v3644_v39, %v2486_v47  ;;  %v2491_v42 = vsub.f32 1.0, %v3644_v39  ;;  %v2499_v8 = vmul.f32 %v3644_v39, %v2497_v11 }
0x2125   : > { %v2489_v56 = vadd.f32 %v2488_v0, %v4654_v29 }
0x2127   : > { %3645 = vtanh.f32 %v2489_v56 }
0x2134   : > { %v3646_v35 = vpop.eup %3645 }
0x2135   : > { %2493 = vrot.lane.b32.xlu0 %v3646_v35, %s3790_s22 }
0x21a7   : > { %v2494_v49 = vpop.permute.xlu0 %2493 }
0x21a8   : > { %v2496_v41 = vmul.f32 %v2494_v49, %v2491_v42 }
0x21aa   : > { %v4825_v2 = vadd.f32 %v2499_v8, %v2496_v41  ;;  %v2776_v8 = vld [vmem:[%s5125_s5 + $0x58] sm:$0xff]  ;;  %v2775_v41 = vld [vmem:[%s5125_s5 + $0x50] sm:$0xff] }
0x21ab   : > { %3408 = vmatprep.subr.mxu1 %v2776_v8 }
0x21ac   : > { %v2507_v51 = vrot.slane %v4825_v2, 5 }
0x21ae   : > { %2508 = vrot.lane.b32.xlu1 %v2507_v51, %s3790_s22  ;;  %v2773_v51 = vld [vmem:[%s5125_s5 + $0x40] sm:$0xff] }
0x2220   : > { %v2509_v43 = vpop.permute.xlu1 %2508 }
0x2221   : > { %3340 = vmatmul.mubr.msk.f32.vlgmr.msra.gmra.mxu1 %vm5138_vm11, %v2509_v43 }
0x2222   : > { %3409 = vmatpush3.msra.mxu1 %v2776_v8 }
0x2223   : > { %3410 = vmatprep.subr.mxu1 %v2775_v41 }
0x2224   : > { %3411 = vmatpush3.msra.mxu1 %v2775_v41 }
0x22e1   : > { %v2578_v29 = vpop.f32.mrf.mxu1 }
0x22e2   : > { %v2579_v7 = vadd.f32 %v4752_v32, %v2578_v29 }
0x22e3   : > { %v2580_v19 = vpop.f32.mrf.mxu1 }
0x22e4   : > { %v2584_v58 = vrot.slane %v2579_v7, 2  ;;  %v2581_v17 = vadd.f32 %v4762_v27, %v2580_v19  ;;  %v2772_v7 = vld [vmem:[%s5125_s5 + $0x38] sm:$0xff]  ;;  %v2766_v19 = vld [vmem:[%s5125_s5 + $0x8] sm:$0xff] }
0x22e6   : > { %v2586_v10 = vadd.f32 %v2584_v58, %v4712_v33  ;;  %v2594_v20 = vrot.slane %v2581_v17, 2  ;;  %v2605_v33 = vrot.slane %v4825_v2, 7  ;;  %v2771_v58 = vld [vmem:[%s5125_s5 + $0x30] sm:$0xff]  ;;  %v2765_v17 = vld [vmem:[%s5125_s5] sm:$0xff] }
0x22e8   : > { %v3341_v34 = vmul.f32 -1.442695, %v2586_v10  ;;  %v2770_v10 = vld [vmem:[%s5125_s5 + $0x28] sm:$0xff] }
0x22ea   : > { %3647 = vpow2.f32 %v3341_v34  ;;  %v2769_v34 = vld [vmem:[%s5125_s5 + $0x20] sm:$0xff] }
0x22f7   : > { %v3648_v18 = vpop.eup %3647 }
0x22f8   : > { %v2590_v26 = vadd.f32 1.0, %v3648_v18  ;;  %v2768_v18 = vld [vmem:[%s5125_s5 + $0x18] sm:$0xff] }
0x22fa   : > { %3649 = vrcp.f32 %v2590_v26  ;;  %v2767_v26 = vld [vmem:[%s5125_s5 + $0x10] sm:$0xff] }
0x2307   : > { %v3650_v24 = vpop.eup %3649 }
0x2308   : > { %v2596_v30 = vmul.f32 %v3650_v24, %v2594_v20  ;;  %v2599_v44 = vsub.f32 1.0, %v3650_v24  ;;  %v2607_v12 = vmul.f32 %v3650_v24, %v2605_v33 }
0x230a   : > { %v2597_v59 = vadd.f32 %v2596_v30, %v4717_v31 }
0x230c   : > { %3651 = vtanh.f32 %v2597_v59 }
0x2319   : > { %v3652_v45 = vpop.eup %3651 }
0x231a   : > { %2601 = vrot.lane.b32.xlu0 %v3652_v45, %s3790_s22 }
0x238c   : > { %v2602_v25 = vpop.permute.xlu0 %2601 }
0x238d   : > { %v2604_v22 = vmul.f32 %v2602_v25, %v2599_v44 }
0x238f   : > { %v4836_v36 = vadd.f32 %v2607_v12, %v2604_v22 }
0x2391   : > { %v2615_v37 = vrot.slane %v4836_v36, 6  ;;  %v2713_v47 = vrot.slane %v4836_v36, 7 }
0x2393   : > { %2616 = vrot.lane.b32.xlu1 %v2615_v37, %s3790_s22 }
0x2397   : > { %1134 = vrot.lane.b32.xlu1 %v4337_v13, %s3790_s22 }
0x239b   : > { %1376 = vrot.lane.b32.xlu1 %v4411_v6, %s3790_s22 }
0x239f   : > { %1596 = vrot.lane.b32.xlu1 %v4467_v50, %s3790_s22 }
0x23a3   : > { %1816 = vrot.lane.b32.xlu1 %v4525_v5, %s3790_s22 }
0x23a7   : > { %2167 = vrot.lane.b32.xlu1 %v4724_v62, %s3790_s22 }
0x23ab   : > { %2394 = vrot.lane.b32.xlu1 %v4798_v4, %s3790_s22 }
0x23af   : > { %2610 = vrot.lane.b32.xlu1 %v4836_v36, %s3790_s22 }
0x2405   : > { %v2617_v31 = vpop.permute.xlu1 %2616 }
0x2406   : > { %3342 = vmatmul.mubr.msk.f32.vlgmr.msra.gmra.mxu0 %vm5138_vm11, %v2617_v31  ;;  %vm1489_vm11 = vcmask 258052  }
0x2409   : > { %v1135_v13 = vpop.permute.xlu1 %1134 }
0x240a   : > { %1138 = vst.msk [vmem:[#allocation2] sm:$0x2] %vm1137_vm14, %v1135_v13 }
0x240b   : > { %1140 = vst.msk [vmem:[#allocation2 + $0xd] sm:$0x2] %vm1139_vm15, %v1135_v13 }
0x240d   : > { %v1377_v6 = vpop.permute.xlu1 %1376 }
0x240e   : > { %1380 = vst.msk [vmem:[#allocation2] sm:$0x8] %vm1379_vm0, %v1377_v6 }
0x240f   : > { %1382 = vst.msk [vmem:[#allocation2 + $0x9] sm:$0x8] %vm1381_vm5, %v1377_v6 }
0x2411   : > { %v1597_v50 = vpop.permute.xlu1 %1596 }
0x2412   : > { %1600 = vst.msk [vmem:[#allocation2] sm:$0x20] %vm1599_vm9, %v1597_v50 }
0x2413   : > { %1602 = vst.msk [vmem:[#allocation2 + $0x5] sm:$0x20] %vm1601_vm10, %v1597_v50 }
0x2415   : > { %v1817_v5 = vpop.permute.xlu1 %1816 }
0x2416   : > { %1820 = vst.msk [vmem:[#allocation2] sm:$0x80] %vm1819_vm3, %v1817_v5 }
0x2417   : > { %1822 = vst.msk [vmem:[#allocation2 + $0x1] sm:$0x80] %vm1821_vm7, %v1817_v5 }
0x2418   : > { %1935 = vst.msk [vmem:[#allocation2 + $0x8] sm:$0x1] %vm1019_vm12, %v4575_v53 }
0x2419   : > { %1936 = vst.msk [vmem:[#allocation2 + $0x7] sm:$0x1] %vm1021_vm13, %v4575_v53  ;;  %v2168_v62 = vpop.permute.xlu1 %2167  ;;  %vm5159_vm13 = vcmask 64512  }
0x241a   : > { %2170 = vst.msk [vmem:[#allocation2 + $0x8] sm:$0x4] %vm1258_vm6, %v2168_v62 }
0x241b   : > { %2171 = vst.msk [vmem:[#allocation2 + $0x3] sm:$0x4] %vm1260_vm4, %v2168_v62 }
0x241d   : > { %v2395_v4 = vpop.permute.xlu1 %2394 }
0x241e   : > { %2397 = vst.msk [vmem:[#allocation2 + $0x8] sm:$0x10] %vm1489_vm11, %v2395_v4 }
0x241f   : > { %2398 = vst.msk [vmem:[#allocation2 - $0x1] sm:$0x10] %vm1491_vm8, %v2395_v4 }
0x2421   : > { %v2611_v40 = vpop.permute.xlu1 %2610 }
0x2422   : > { %2613 = vst.msk [vmem:[#allocation2 + $0x8] sm:$0x40] %vm1709_vm2, %v2611_v40 }
0x2423   : > { %2614 = vst.msk [vmem:[#allocation2 - $0x5] sm:$0x40] %vm1711_vm1, %v2611_v40 }
0x24c6   : > { %v2686_v53 = vpop.f32.mrf.mxu0 }
0x24c7   : > { %v2687_v54 = vadd.f32 %v4752_v32, %v2686_v53  ;;  %v2779_v53 = vsub.s32 3, %v3957_v21 }
0x24c8   : > { %v2688_v60 = vpop.f32.mrf.mxu0 }
0x24c9   : > { %v2692_v14 = vrot.slane %v2687_v54, 1  ;;  %v2689_v61 = vadd.f32 %v4762_v27, %v2688_v60  ;;  %v4970_v54 = vld [vmem:[%s5127_s7] sm:$0xff] }
0x24cb   : > { %v2694_v23 = vadd.f32 %v2692_v14, %v4756_v28  ;;  %v2702_v55 = vrot.slane %v2689_v61, 1  ;;  %v2780_v14 = vrot.slane %v4970_v54, %v2779_v53 }
0x24cd   : > { %v3343_v3 = vmul.f32 -1.442695, %v2694_v23 }
0x24cf   : > { %3653 = vpow2.f32 %v3343_v3 }
0x24dc   : > { %v3654_v63 = vpop.eup %3653 }
0x24dd   : > { %v2698_v57 = vadd.f32 1.0, %v3654_v63 }
0x24df   : > { %3655 = vrcp.f32 %v2698_v57 }
0x24ec   : > { %v3656_v39 = vpop.eup %3655 }
0x24ed   : > { %v2704_v0 = vmul.f32 %v3656_v39, %v2702_v55  ;;  %v2715_v56 = vmul.f32 %v3656_v39, %v2713_v47  ;;  %v2707_v28 = vsub.f32 1.0, %v3656_v39 }
0x24ef   : > { %v2705_v35 = vadd.f32 %v2704_v0, %v4766_v48 }
0x24f1   : > { %3657 = vtanh.f32 %v2705_v35 }
0x24fe   : > { %v3658_v32 = vpop.eup %3657 }
0x24ff   : > { %2709 = vrot.lane.b32.xlu0 %v3658_v32, %s3790_s22 }
0x2503   : > { %1255 = vrot.lane.b32.xlu0 %v4374_v9, %s3790_s22 }
0x2507   : > { %1486 = vrot.lane.b32.xlu0 %v4439_v46, %s3790_s22 }
0x250b   : > { %1706 = vrot.lane.b32.xlu0 %v4495_v52, %s3790_s22 }
0x250f   : > { %2048 = vrot.lane.b32.xlu0 %v4660_v38, %s3790_s22 }
0x2513   : > { %2286 = vrot.lane.b32.xlu0 %v4771_v1, %s3790_s22 }
0x2517   : > { %2502 = vrot.lane.b32.xlu0 %v4825_v2, %s3790_s22  ;;  %v2774_v2 = vld [vmem:[%s5125_s5 + $0x48] sm:$0xff] }
0x2518   : > { %3412 = vmatprep.subr.mxu1 %v2774_v2 }
0x2519   : > { %3413 = vmatpush3.msra.mxu1 %v2774_v2 }
0x251a   : > { %3414 = vmatprep.subr.mxu1 %v2773_v51 }
0x251b   : > { %3415 = vmatpush3.msra.mxu1 %v2773_v51 }
0x251c   : > { %3416 = vmatprep.subr.mxu1 %v2772_v7 }
0x251d   : > { %3417 = vmatpush3.msra.mxu1 %v2772_v7 }
0x251e   : > { %3418 = vmatprep.subr.mxu1 %v2771_v58 }
0x251f   : > { %3419 = vmatpush3.msra.mxu1 %v2771_v58 }
0x2520   : > { %3420 = vmatprep.subr.mxu1 %v2770_v10 }
0x2521   : > { %3421 = vmatpush3.msra.mxu1 %v2770_v10 }
0x2522   : > { %3422 = vmatprep.subr.mxu1 %v2769_v34 }
0x2523   : > { %3423 = vmatpush3.msra.mxu1 %v2769_v34 }
0x2524   : > { %3424 = vmatprep.subr.mxu1 %v2768_v18 }
0x2525   : > { %3425 = vmatpush3.msra.mxu1 %v2768_v18 }
0x2526   : > { %3426 = vmatprep.subr.mxu1 %v2767_v26 }
0x2527   : > { %3427 = vmatpush3.msra.mxu1 %v2767_v26 }
0x2528   : > { %3428 = vmatprep.subr.mxu1 %v2766_v19 }
0x2529   : > { %3429 = vmatpush3.msra.mxu1 %v2766_v19 }
0x252a   : > { %3430 = vmatprep.subr.mxu1 %v2765_v17 }
0x252b   : > { %3431 = vmatpush3.msra.mxu1 %v2765_v17 }
0x2571   : > { %v2710_v27 = vpop.permute.xlu0 %2709 }
0x2572   : > { %v2712_v48 = vmul.f32 %v2710_v27, %v2707_v28 }
0x2574   : > { %v2716_v42 = vadd.f32 %v2715_v56, %v2712_v48 }
0x2575   : > { %v1256_v9 = vpop.permute.xlu0 %1255 }
0x2576   : > { %1259 = vst.msk [vmem:[#allocation2] sm:$0x4] %vm1258_vm6, %v1256_v9  ;;  %2718 = vrot.lane.b32.xlu0 %v2716_v42, %s3790_s22  ;;  %vm2781_vm6 = vcmask 785408  }
0x2577   : > { %1261 = vst.msk [vmem:[#allocation2 + $0xb] sm:$0x4] %vm1260_vm4, %v1256_v9 }
0x2579   : > { %v1487_v46 = vpop.permute.xlu0 %1486 }
0x257a   : > { %1490 = vst.msk [vmem:[#allocation2] sm:$0x10] %vm1489_vm11, %v1487_v46  ;;  %vm5157_vm11 = vcmask 523264  }
0x257b   : > { %1492 = vst.msk [vmem:[#allocation2 + $0x7] sm:$0x10] %vm1491_vm8, %v1487_v46  ;;  %vm5158_vm12 = vmmov %vm5157_vm11 }
0x257d   : > { %v1707_v52 = vpop.permute.xlu0 %1706 }
0x257e   : > { %1710 = vst.msk [vmem:[#allocation2] sm:$0x40] %vm1709_vm2, %v1707_v52 }
0x257f   : > { %1712 = vst.msk [vmem:[#allocation2 + $0x3] sm:$0x40] %vm1711_vm1, %v1707_v52  ;;  %vm5151_vm1 = vcmask 1046528  }
0x2580   : > { %vm5152_vm2 = vmmov %vm5151_vm1 }
0x2581   : > { %v2049_v38 = vpop.permute.xlu0 %2048 }
0x2582   : > { %2051 = vst.msk [vmem:[#allocation2 + $0x8] sm:$0x2] %vm1137_vm14, %v2049_v38  ;;  %vm5160_vm14 = vmmov %vm5159_vm13 }
0x2583   : > { %2052 = vst.msk [vmem:[#allocation2 + $0x5] sm:$0x2] %vm1139_vm15, %v2049_v38  ;;  %vm5161_vm15 = vmmov %vm5159_vm13 }
0x2585   : > { %v2287_v1 = vpop.permute.xlu0 %2286 }
0x2586   : > { %2289 = vst.msk [vmem:[#allocation2 + $0x8] sm:$0x8] %vm1379_vm0, %v2287_v1  ;;  %vm5162_vm0 = vmmov %vm5159_vm13 }
0x2587   : > { %2290 = vst.msk [vmem:[#allocation2 + $0x1] sm:$0x8] %vm1381_vm5, %v2287_v1  ;;  %vm5163_vm5 = vmmov %vm5162_vm0 }
0x2589   : > { %v2503_v11 = vpop.permute.xlu0 %2502 }
0x258a   : > { %2505 = vst.msk [vmem:[#allocation2 + $0x8] sm:$0x20] %vm1599_vm9, %v2503_v11  ;;  %vm5164_vm9 = vmmov %vm5162_vm0 }
0x258b   : > { %2506 = vst.msk [vmem:[#allocation2 - $0x3] sm:$0x20] %vm1601_vm10, %v2503_v11  ;;  %vm5165_vm10 = vmmov %vm5162_vm0 }
0x25e8   : > { %v2719_v49 = vpop.permute.xlu0 %2718 }
0x25e9   : > { %2721 = vst.msk [vmem:[#allocation2 + $0x8] sm:$0x80] %vm1819_vm3, %v2719_v49  ;;  %vm5153_vm3 = vcmask 1040384  }
0x25ea   : > { %2722 = vst.msk [vmem:[#allocation2 - $0x7] sm:$0x80] %vm1821_vm7, %v2719_v49  ;;  %vm5154_vm4 = vmmov %vm5153_vm3  ;;  %vm5155_vm7 = vcmask 261120  }
0x25eb   : > { %vm5156_vm8 = vmmov %vm5155_vm7 }
0x25f0   : > { %v2724_v29 = vld [vmem:[#allocation2 + $0x8] sm:$0xff] }
0x25f1   : > { %v2723_v43 = vld [vmem:[#allocation2] sm:$0xff]  ;;  %2729 = vrot.lane.b32.xlu0 %v2724_v29, %s3791_s16 }
0x25f2   : > { %2727 = vrot.lane.b32.xlu1 %v2723_v43, %s3791_s16 }
0x2663   : > { %v2730_v24 = vpop.permute.xlu0 %2729 }
0x2664   : > { %v2728_v20 = vpop.permute.xlu1 %2727  ;;  %v4944_v59 = vadd.f32 %v2730_v24, %v2724_v29 }
0x2665   : > { %v4942_v30 = vadd.f32 %v2728_v20, %v2723_v43 }
0x2666   : > { %2750 = vrot.lane.b32.xlu0 %v4944_v59, %s3792_s25  ;;  %v2744_v45 = vrot.slane %v4944_v59, 1  ;;  %v2738_v25 = vrot.slane %v4944_v59, 7 }
0x2667   : > { %2748 = vrot.lane.b32.xlu1 %v4942_v30, %s3792_s25  ;;  %v2743_v44 = vrot.slane %v4942_v30, 1  ;;  %v2737_v33 = vrot.slane %v4942_v30, 7 }
0x2668   : > { %v2747_v12 = vsel %vm5151_vm1, %v2744_v45, 0.0  ;;  %vm5166_vm1 = vmmov %vm5162_vm0 }
0x2669   : > { %v2745_v22 = vsel %vm5152_vm2, %v2743_v44, %v2744_v45  ;;  %v2739_v36 = vsel %vm5153_vm3, %v2737_v33, %v2738_v25  ;;  %v2742_v13 = vsel %vm5154_vm4, 0.0, %v2737_v33  ;;  %vm5167_vm2 = vmmov %vm5162_vm0 }
0x266a   : > { %2757 = vrot.lane.b32.xlu0 %v2747_v12, %s3790_s22  ;;  %vm5168_vm3 = vmmov %vm5162_vm0 }
0x266b   : > { %2755 = vrot.lane.b32.xlu1 %v2745_v22, %s3790_s22  ;;  %vm5169_vm4 = vmmov %vm5162_vm0 }
0x26d8   : > { %v2751_v31 = vpop.permute.xlu0 %2750 }
0x26d9   : > { %v2749_v37 = vpop.permute.xlu1 %2748  ;;  %v2762_v50 = vsel %vm5156_vm8, %v2739_v36, %v2751_v31  ;;  %vm5171_vm8 = vmmov %vm5162_vm0 }
0x26da   : > { %v2761_v6 = vsel %vm5155_vm7, %v2742_v13, %v2749_v37  ;;  %vm5170_vm7 = vmmov %vm5162_vm0 }
0x26dc   : > { %v2758_v5 = vpop.permute.xlu0 %2757 }
0x26dd   : > { %v2756_v62 = vpop.permute.xlu1 %2755  ;;  %v2764_v4 = vsel %vm5157_vm11, %v2762_v50, %v2758_v5  ;;  %vm5172_vm11 = vmmov %vm5162_vm0 }
0x26de   : > { %v2763_v40 = vsel %vm5158_vm12, %v2761_v6, %v2756_v62  ;;  %vm5173_vm12 = vmmov %vm5162_vm0 }
0x26df   : > { %3432 = vmatprep.mubr.msk.f32.mxu1 %vm2781_vm6, %v2763_v40 }
0x26e0   : > { %3433 = vmatmul.mubr.msk.f32.vlgmr.msra.gmra.mxu1 %vm2781_vm6, %v2764_v4 }
0x27a0   : > { %v3434_v23 = vpop.f32.mrf.mxu1 }
0x27a1   : > { %v4973_v3 = vadd.f32 %v3434_v23, %v2780_v14 }
0x27a2   : > { %v2854_v63 = vpop.f32.mrf.mxu1 }
0x27a3   : > { %v4975_v57 = vadd.f32 %v2854_v63, %v2780_v14  ;;  %v2864_v61 = vsel %vm5160_vm14, %v4973_v3, 0.0  ;;  %vm5175_vm14 = vcmask 130048  }
0x27a5   : > { %2901 = vrot.lane.b32.xlu0 %v4975_v57, %s3786_s19  ;;  %v2863_v60 = vsel %vm5159_vm13, %v4975_v57, 0.0  ;;  %vm5174_vm13 = vmmov %vm5162_vm0 }
0x27a6   : > { %v2865_v55 = vadd.f32 %v2864_v61, %v2863_v60 }
0x27a8   : > { %2866 = vadd.xlane.f32.xlu1 %v2865_v55 }
0x27a9   : > { %2903 = vrot.lane.b32.xlu0 %v4973_v3, %s3786_s19 }
0x2817   : > { %v2902_v47 = vpop.permute.xlu0 %2901 }
0x2818   : > { %v2907_v0 = vsel %vm5161_vm15, %v2902_v47, 0.0  ;;  %vm5176_vm15 = vmmov %vm5175_vm14 }
0x281b   : > { %v2904_v39 = vpop.permute.xlu0 %2903 }
0x281c   : > { %v2908_v56 = vsel %vm5162_vm0, %v2904_v39, 0.0 }
0x281d   : > { %v2909_v35 = vadd.f32 %v2908_v56, %v2907_v0 }
0x281f   : > { %2910 = vadd.xlane.f32.xlu1 %v2909_v35 }
0x2831   : > { %v2867_v32 = vpop.xlane.xlu1 %2866 }
0x2832   : > { %v2868_v28 = vrot.slane %v2867_v32, 4 }
0x2834   : > { %v2869_v27 = vadd.f32 %v2868_v28, %v2867_v32 }
0x2836   : > { %v2870_v48 = vrot.slane %v2869_v27, 2 }
0x2838   : > { %v2871_v42 = vadd.f32 %v2870_v48, %v2869_v27 }
0x283a   : > { %v2872_v9 = vrot.slane %v2871_v42, 1 }
0x283c   : > { %v2873_v46 = vadd.f32 %v2872_v9, %v2871_v42 }
0x283e   : > { %3478 = vpush %v2873_v46 }
0x286f   : > { %s3479_s15 = spop %3478 }
0x2870   : > { %v2875_v52 = vstv %s3479_s15 }
0x2871   : > { %v2876_v38 = vmul.f32 0.0078125, %v2875_v52 }
0x2873   : > { %v4988_v1 = vsub.f32 %v4975_v57, %v2876_v38  ;;  %v4991_v11 = vsub.f32 %v4973_v3, %v2876_v38 }
0x2875   : > { %v2879_v49 = vmul.f32 %v4988_v1, %v4988_v1  ;;  %v2880_v8 = vmul.f32 %v4991_v11, %v4991_v11 }
0x2877   : > { %v2881_v41 = vsel %vm5163_vm5, %v2879_v49, 0.0  ;;  %v2882_v2 = vsel %vm5164_vm9, %v2880_v8, 0.0  ;;  %vm5177_vm5 = vmmov %vm5162_vm0  ;;  %vm5178_vm9 = vcmask 195584  }
0x2878   : > { %v2883_v51 = vadd.f32 %v2882_v2, %v2881_v41 }
0x287a   : > { %2884 = vadd.xlane.f32.xlu0 %v2883_v51 }
0x28a8   : > { %v2911_v43 = vpop.xlane.xlu1 %2910 }
0x28a9   : > { %v2912_v29 = vrot.slane %v2911_v43, 4 }
0x28ab   : > { %v2913_v7 = vadd.f32 %v2912_v29, %v2911_v43 }
0x28ad   : > { %v2914_v58 = vrot.slane %v2913_v7, 2 }
0x28af   : > { %v2915_v26 = vadd.f32 %v2914_v58, %v2913_v7 }
0x28b1   : > { %v2916_v20 = vrot.slane %v2915_v26, 1 }
0x28b3   : > { %v2917_v44 = vadd.f32 %v2916_v20, %v2915_v26 }
0x2903   : > { %v2885_v10 = vpop.xlane.xlu0 %2884 }
0x2904   : > { %v2886_v34 = vrot.slane %v2885_v10, 4 }
0x2906   : > { %v2887_v18 = vadd.f32 %v2886_v34, %v2885_v10 }
0x2908   : > { %v2888_v19 = vrot.slane %v2887_v18, 2 }
0x290a   : > { %v2889_v17 = vadd.f32 %v2888_v19, %v2887_v18 }
0x290c   : > { %v2890_v24 = vrot.slane %v2889_v17, 1 }
0x290e   : > { %v2891_v45 = vadd.f32 %v2890_v24, %v2889_v17 }
0x2910   : > { %3480 = vpush %v2891_v45 }
0x2911   : > { %3482 = vpush %v2917_v44 }
0x2941   : > { %s4999_s27 = spop %3480 }
0x2942   : > { %s3483_s10 = spop %3482  ;;  %v2893_v42 = vstv %s4999_s27 }
0x2943   : > { %v2919_v33 = vstv %s3483_s10  ;;  %v2894_v9 = vmul.f32 0.0078125, %v2893_v42  ;;  %s354_s10 = scalar_lea.vmem %s5128_s8, %s3350_s11 }
0x2944   : > { %v2920_v25 = vmul.f32 0.0078125, %v2919_v33 }
0x2945   : > { %v2895_v46 = vadd.f32 1e-05, %v2894_v9 }
0x2946   : > { %v2921_v12 = vsub.f32 %v4975_v57, %v2920_v25  ;;  %v2922_v22 = vsub.f32 %v4973_v3, %v2920_v25 }
0x2947   : > { %3659 = vrsqrt.f32 %v2895_v46 }
0x2948   : > { %v2924_v36 = vmul.f32 %v2922_v22, %v2922_v22  ;;  %v2923_v37 = vmul.f32 %v2921_v12, %v2921_v12 }
0x294a   : > { %2929 = vrot.lane.b32.xlu0 %v2924_v36, %s3786_s19  ;;  %2927 = vrot.lane.b32.xlu1 %v2923_v37, %s3786_s19 }
0x294e   : > { %2951 = vrot.lane.b32.xlu1 %v4975_v57, %s3787_s24 }
0x2952   : > { %2953 = vrot.lane.b32.xlu1 %v4973_v3, %s3787_s24 }
0x2954   : > { %v3660_v7 = vpop.eup %3659 }
0x2955   : > { %v2897_v10 = vmul.f32 %v3660_v7, %v4988_v1  ;;  %v2898_v34 = vmul.f32 %v3660_v7, %v4991_v11 }
0x29bc   : > { %v2930_v31 = vpop.permute.xlu0 %2929  ;;  %v2928_v13 = vpop.permute.xlu1 %2927 }
0x29bd   : > { %v2934_v6 = vsel %vm5165_vm10, %v2930_v31, 0.0  ;;  %v2933_v50 = vsel %vm5166_vm1, %v2928_v13, 0.0  ;;  %vm5179_vm10 = vmmov %vm5178_vm9 }
0x29be   : > { %v2935_v5 = vadd.f32 %v2934_v6, %v2933_v50 }
0x29c0   : > { %2936 = vadd.xlane.f32.xlu0 %v2935_v5  ;;  %v2952_v62 = vpop.permute.xlu1 %2951 }
0x29c1   : > { %v2957_v40 = vsel %vm5167_vm2, %v2952_v62, 0.0 }
0x29c4   : > { %v2954_v4 = vpop.permute.xlu1 %2953 }
0x29c5   : > { %v2958_v53 = vsel %vm5168_vm3, %v2954_v4, 0.0  ;;  %vm5180_vm3 = vcmask 1046528  }
0x29c6   : > { %v2959_v14 = vadd.f32 %v2958_v53, %v2957_v40 }
0x29c8   : > { %2960 = vadd.xlane.f32.xlu1 %v2959_v14 }
0x2a49   : > { %v2937_v23 = vpop.xlane.xlu0 %2936 }
0x2a4a   : > { %v2938_v63 = vrot.slane %v2937_v23, 4 }
0x2a4c   : > { %v2939_v60 = vadd.f32 %v2938_v63, %v2937_v23 }
0x2a4e   : > { %v2940_v61 = vrot.slane %v2939_v60, 2 }
0x2a50   : > { %v2941_v55 = vadd.f32 %v2940_v61, %v2939_v60 }
0x2a51   : > { %v2961_v47 = vpop.xlane.xlu1 %2960 }
0x2a52   : > { %v2962_v39 = vrot.slane %v2961_v47, 4  ;;  %v2942_v0 = vrot.slane %v2941_v55, 1 }
0x2a54   : > { %v2963_v56 = vadd.f32 %v2962_v39, %v2961_v47  ;;  %v2943_v35 = vadd.f32 %v2942_v0, %v2941_v55 }
0x2a56   : > { %v2964_v32 = vrot.slane %v2963_v56, 2  ;;  %3484 = vpush %v2943_v35 }
0x2a58   : > { %v2965_v28 = vadd.f32 %v2964_v32, %v2963_v56 }
0x2a5a   : > { %v2966_v27 = vrot.slane %v2965_v28, 1 }
0x2a5c   : > { %v2967_v48 = vadd.f32 %v2966_v27, %v2965_v28 }
0x2a5e   : > { %3486 = vpush %v2967_v48 }
0x2a87   : > { %s3485_s19 = spop %3484 }
0x2a88   : > { %v2945_v52 = vstv %s3485_s19 }
0x2a89   : > { %v2946_v38 = vmul.f32 0.0078125, %v2945_v52 }
0x2a8b   : > { %v2947_v49 = vadd.f32 1e-05, %v2946_v38 }
0x2a8d   : > { %3661 = vrsqrt.f32 %v2947_v49  ;;  %v3120_v49 = vld [vmem:[%s5126_s6 + $0x58] sm:$0xff] }
0x2a8e   : > { %3435 = vmatprep.subr.mxu0 %v3120_v49 }
0x2a8f   : > { %s3487_s13 = spop %3486  ;;  %3436 = vmatpush3.msra.mxu0 %v3120_v49 }
0x2a90   : > { %v2969_v8 = vstv %s3487_s13 }
0x2a91   : > { %v2970_v41 = vmul.f32 0.0078125, %v2969_v8  ;;  %v3119_v8 = vld [vmem:[%s5126_s6 + $0x50] sm:$0xff] }
0x2a92   : > { %3437 = vmatprep.subr.mxu0 %v3119_v8 }
0x2a93   : > { %v2971_v2 = vsub.f32 %v4975_v57, %v2970_v41  ;;  %v2972_v51 = vsub.f32 %v4973_v3, %v2970_v41  ;;  %v3118_v41 = vld [vmem:[%s5126_s6 + $0x48] sm:$0xff]  ;;  %3438 = vmatpush3.msra.mxu0 %v3119_v8 }
0x2a94   : > { %3439 = vmatprep.subr.mxu0 %v3118_v41 }
0x2a95   : > { %v2973_v43 = vmul.f32 %v2971_v2, %v2971_v2  ;;  %v2974_v29 = vmul.f32 %v2972_v51, %v2972_v51  ;;  %3440 = vmatpush3.msra.mxu0 %v3118_v41 }
0x2a97   : > { %2979 = vrot.lane.b32.xlu1 %v2974_v29, %s3787_s24  ;;  %2977 = vrot.lane.b32.xlu0 %v2973_v43, %s3787_s24  ;;  %v3115_v43 = vld [vmem:[%s5126_s6 + $0x30] sm:$0xff] }
0x2a9a   : > { %v3662_v58 = vpop.eup %3661 }
0x2a9b   : > { %v2949_v18 = vmul.f32 %v3662_v58, %v2921_v12  ;;  %v2950_v26 = vmul.f32 %v3662_v58, %v2922_v22  ;;  %3003 = vrot.lane.b32.xlu1 %v4973_v3, %s3788_s12  ;;  %3001 = vrot.lane.b32.xlu0 %v4975_v57, %s3788_s12 }
0x2a9d   : > { %v3051_v19 = vsel %vm5169_vm4, %v2897_v10, %v2949_v18  ;;  %v3052_v17 = vsel %vm5170_vm7, %v2898_v34, %v2950_v26  ;;  %vm5181_vm4 = vcmask 1040384   ;;  %vm5182_vm7 = vmmov %vm5180_vm3 }
0x2b09   : > { %v2980_v20 = vpop.permute.xlu1 %2979  ;;  %v2978_v24 = vpop.permute.xlu0 %2977 }
0x2b0a   : > { %v2984_v45 = vsel %vm5171_vm8, %v2980_v20, 0.0  ;;  %v2983_v1 = vsel %vm5172_vm11, %v2978_v24, 0.0  ;;  %v3059_v24 = vsub.s32 4, %v3957_v21  ;;  %vm5183_vm8 = vmmov %vm5181_vm4  ;;  %vm5184_vm11 = vcmask 261120  }
0x2b0b   : > { %v2985_v44 = vadd.f32 %v2984_v45, %v2983_v1  ;;  %v3065_v45 = vsub.s32 5, %v3957_v21 }
0x2b0d   : > { %v3004_v11 = vpop.permute.xlu1 %3003  ;;  %2986 = vadd.xlane.f32.xlu0 %v2985_v44  ;;  %v3002_v33 = vpop.permute.xlu0 %3001  ;;  %v3060_v44 = vrot.slane %v4970_v54, %v3059_v24 }
0x2b0e   : > { %v3008_v25 = vsel %vm5173_vm12, %v3004_v11, 0.0  ;;  %v3007_v12 = vsel %vm5174_vm13, %v3002_v33, 0.0  ;;  %v3114_v11 = vld [vmem:[%s5126_s6 + $0x28] sm:$0xff]  ;;  %v3113_v33 = vld [vmem:[%s5126_s6 + $0x20] sm:$0xff]  ;;  %vm5185_vm12 = vcmask 523264   ;;  %vm5186_vm13 = vmmov %vm5184_vm11 }
0x2b0f   : > { %v3009_v22 = vadd.f32 %v3008_v25, %v3007_v12 }
0x2b11   : > { %3010 = vadd.xlane.f32.xlu1 %v3009_v22  ;;  %v3066_v22 = vrot.slane %v4970_v54, %v3065_v45 }
0x2b96   : > { %v2987_v36 = vpop.xlane.xlu0 %2986 }
0x2b97   : > { %v2988_v37 = vrot.slane %v2987_v36, 4 }
0x2b99   : > { %v2989_v31 = vadd.f32 %v2988_v37, %v2987_v36 }
0x2b9a   : > { %v3011_v13 = vpop.xlane.xlu1 %3010 }
0x2b9b   : > { %v2990_v6 = vrot.slane %v2989_v31, 2  ;;  %v3012_v50 = vrot.slane %v3011_v13, 4 }
0x2b9d   : > { %v3013_v5 = vadd.f32 %v3012_v50, %v3011_v13  ;;  %v2991_v62 = vadd.f32 %v2990_v6, %v2989_v31  ;;  %v3112_v6 = vld [vmem:[%s5126_s6 + $0x18] sm:$0xff]  ;;  %v3111_v50 = vld [vmem:[%s5126_s6 + $0x10] sm:$0xff] }
0x2b9f   : > { %v3014_v4 = vrot.slane %v3013_v5, 2  ;;  %v2992_v40 = vrot.slane %v2991_v62, 1 }
0x2ba1   : > { %v2993_v53 = vadd.f32 %v2992_v40, %v2991_v62  ;;  %v3015_v14 = vadd.f32 %v3014_v4, %v3013_v5 }
0x2ba3   : > { %3488 = vpush %v2993_v53  ;;  %v3016_v23 = vrot.slane %v3015_v14, 1  ;;  %v3075_v53 = vadd.f32 %v4942_v30, %v4099_v15 }
0x2ba5   : > { %v3017_v63 = vadd.f32 %v3016_v23, %v3015_v14  ;;  %v3076_v14 = vadd.f32 %v4944_v59, %v4101_v16  ;;  %v3110_v23 = vld [vmem:[%s5126_s6 + $0x8] sm:$0xff] }
0x2ba7   : > { %3490 = vpush %v3017_v63  ;;  %v3109_v63 = vld [vmem:[%s5126_s6] sm:$0xff] }
0x2bd4   : > { %s3489_s24 = spop %3488 }
0x2bd5   : > { %v2995_v60 = vstv %s3489_s24 }
0x2bd6   : > { %v2996_v61 = vmul.f32 0.0078125, %v2995_v60 }
0x2bd8   : > { %v2997_v55 = vadd.f32 1e-05, %v2996_v61  ;;  %s3491_s14 = spop %3490 }
0x2bd9   : > { %v3019_v47 = vstv %s3491_s14 }
0x2bda   : > { %3663 = vrsqrt.f32 %v2997_v55  ;;  %v3020_v39 = vmul.f32 0.0078125, %v3019_v47 }
0x2bdc   : > { %v3021_v0 = vsub.f32 %v4975_v57, %v3020_v39  ;;  %v3022_v56 = vsub.f32 %v4973_v3, %v3020_v39 }
0x2bde   : > { %v3023_v35 = vmul.f32 %v3021_v0, %v3021_v0  ;;  %v3024_v32 = vmul.f32 %v3022_v56, %v3022_v56 }
0x2be0   : > { %3029 = vrot.lane.b32.xlu1 %v3024_v32, %s3788_s12  ;;  %3027 = vrot.lane.b32.xlu0 %v3023_v35, %s3788_s12 }
0x2be7   : > { %v3664_v28 = vpop.eup %3663 }
0x2be8   : > { %v2999_v27 = vmul.f32 %v3664_v28, %v2971_v2  ;;  %v3000_v48 = vmul.f32 %v3664_v28, %v2972_v51  ;;  %v3117_v2 = vld [vmem:[%s5126_s6 + $0x40] sm:$0xff]  ;;  %v3116_v51 = vld [vmem:[%s5126_s6 + $0x38] sm:$0xff] }
0x2be9   : > { %3441 = vmatprep.subr.mxu0 %v3117_v2 }
0x2bea   : > { %v3053_v42 = vsel %vm5175_vm14, %v3051_v19, %v2999_v27  ;;  %v3054_v9 = vsel %vm5176_vm15, %v3052_v17, %v3000_v48  ;;  %3442 = vmatpush3.msra.mxu0 %v3117_v2  ;;  %vm5187_vm14 = vmmov %vm5185_vm12  ;;  %vm5188_vm15 = vcmask 31744  }
0x2beb   : > { %3443 = vmatprep.subr.mxu0 %v3116_v51 }
0x2bec   : > { %3444 = vmatpush3.msra.mxu0 %v3116_v51 }
0x2bed   : > { %3445 = vmatprep.subr.mxu0 %v3115_v43 }
0x2bee   : > { %3446 = vmatpush3.msra.mxu0 %v3115_v43 }
0x2bef   : > { %3447 = vmatprep.subr.mxu0 %v3114_v11 }
0x2bf0   : > { %3448 = vmatpush3.msra.mxu0 %v3114_v11 }
0x2bf1   : > { %3449 = vmatprep.subr.mxu0 %v3113_v33 }
0x2bf2   : > { %3450 = vmatpush3.msra.mxu0 %v3113_v33 }
0x2bf3   : > { %3451 = vmatprep.subr.mxu0 %v3112_v6 }
0x2bf4   : > { %3452 = vmatpush3.msra.mxu0 %v3112_v6 }
0x2bf5   : > { %3453 = vmatprep.subr.mxu0 %v3111_v50 }
0x2bf6   : > { %3454 = vmatpush3.msra.mxu0 %v3111_v50 }
0x2bf7   : > { %3455 = vmatprep.subr.mxu0 %v3110_v23 }
0x2bf8   : > { %3456 = vmatpush3.msra.mxu0 %v3110_v23 }
0x2bf9   : > { %3457 = vmatprep.subr.mxu0 %v3109_v63 }
0x2bfa   : > { %3458 = vmatpush3.msra.mxu0 %v3109_v63 }
0x2c52   : > { %v3030_v46 = vpop.permute.xlu1 %3029  ;;  %v3028_v52 = vpop.permute.xlu0 %3027 }
0x2c53   : > { %v3034_v38 = vsel %vm5162_vm0, %v3030_v46, 0.0  ;;  %v3033_v57 = vsel %vm5177_vm5, %v3028_v52, 0.0  ;;  %vm5189_vm0 = vmmov %vm5188_vm15 }
0x2c54   : > { %v3035_v3 = vadd.f32 %v3034_v38, %v3033_v57  ;;  %v3123_v38 = vsub.s32 6, %v3957_v21 }
0x2c56   : > { %3036 = vadd.xlane.f32.xlu0 %v3035_v3  ;;  %v3124_v57 = vrot.slane %v4970_v54, %v3123_v38 }
0x2cdf   : > { %v3037_v29 = vpop.xlane.xlu0 %3036 }
0x2ce0   : > { %v3038_v7 = vrot.slane %v3037_v29, 4 }
0x2ce2   : > { %v3039_v58 = vadd.f32 %v3038_v7, %v3037_v29 }
0x2ce4   : > { %v3040_v10 = vrot.slane %v3039_v58, 2 }
0x2ce6   : > { %v3041_v34 = vadd.f32 %v3040_v10, %v3039_v58 }
0x2ce8   : > { %v3042_v18 = vrot.slane %v3041_v34, 1 }
0x2cea   : > { %v3043_v26 = vadd.f32 %v3042_v18, %v3041_v34 }
0x2cec   : > { %3492 = vpush %v3043_v26 }
0x2d1d   : > { %s3493_s13 = spop %3492 }
0x2d1e   : > { %v3045_v19 = vstv %s3493_s13 }
0x2d1f   : > { %v3046_v17 = vmul.f32 0.0078125, %v3045_v19 }
0x2d21   : > { %v3047_v20 = vadd.f32 1e-05, %v3046_v17 }
0x2d23   : > { %3665 = vrsqrt.f32 %v3047_v20 }
0x2d30   : > { %v3666_v1 = vpop.eup %3665 }
0x2d31   : > { %v3049_v25 = vmul.f32 %v3666_v1, %v3021_v0  ;;  %v3050_v12 = vmul.f32 %v3666_v1, %v3022_v56 }
0x2d33   : > { %v3055_v36 = vsel %vm5178_vm9, %v3053_v42, %v3049_v25  ;;  %v3056_v37 = vsel %vm5179_vm10, %v3054_v9, %v3050_v12 }
0x2d34   : > { %v3061_v31 = vmul.f32 %v3060_v44, %v3055_v36  ;;  %v3062_v13 = vmul.f32 %v3060_v44, %v3056_v37 }
0x2d36   : > { %v3067_v5 = vadd.f32 %v3066_v22, %v3061_v31  ;;  %v3068_v62 = vadd.f32 %v3066_v22, %v3062_v13 }
0x2d38   : > { %vm3069_vm1 = vcmp.ge.f32.partialorder %v3067_v5, 0.0  ;;  %v3071_v4 = vmul.f32 0.01, %v3067_v5  ;;  %vm3070_vm2 = vcmp.ge.f32.partialorder %v3068_v62, 0.0  ;;  %v3072_v40 = vmul.f32 0.01, %v3068_v62 }
0x2d3a   : > { %v3073_v60 = vsel %vm3069_vm1, %v3067_v5, %v3071_v4  ;;  %v3074_v61 = vsel %vm3070_vm2, %v3068_v62, %v3072_v40 }
0x2d3b   : > { %v3077_v55 = vadd.f32 %v3075_v53, %v3073_v60  ;;  %v3078_v47 = vadd.f32 %v3076_v14, %v3074_v61 }
0x2d3d   : > { %3092 = vrot.lane.b32.xlu1 %v3077_v55, %s3792_s25  ;;  %v3087_v15 = vrot.slane %v3077_v55, 1  ;;  %v3088_v30 = vrot.slane %v3078_v47, 1  ;;  %v3081_v16 = vrot.slane %v3077_v55, 7  ;;  %v3082_v59 = vrot.slane %v3078_v47, 7 }
0x2d3f   : > { %v3089_v39 = vsel %vm5180_vm3, %v3087_v15, %v3088_v30  ;;  %v3083_v0 = vsel %vm5181_vm4, %v3081_v16, %v3082_v59  ;;  %v3091_v56 = vsel %vm5182_vm7, %v3088_v30, 0.0  ;;  %v3086_v28 = vsel %vm5183_vm8, 0.0, %v3081_v16 }
0x2d41   : > { %3094 = vrot.lane.b32.xlu1 %v3078_v47, %s3792_s25 }
0x2d45   : > { %3099 = vrot.lane.b32.xlu1 %v3089_v39, %s3790_s22 }
0x2d49   : > { %3101 = vrot.lane.b32.xlu1 %v3091_v56, %s3790_s22 }
0x2daf   : > { %v3093_v35 = vpop.permute.xlu1 %3092 }
0x2db0   : > { %v3105_v27 = vsel %vm5184_vm11, %v3086_v28, %v3093_v35 }
0x2db3   : > { %v3095_v32 = vpop.permute.xlu1 %3094 }
0x2db4   : > { %v3106_v9 = vsel %vm5186_vm13, %v3083_v0, %v3095_v32 }
0x2db7   : > { %v3100_v48 = vpop.permute.xlu1 %3099 }
0x2db8   : > { %v3107_v42 = vsel %vm5185_vm12, %v3105_v27, %v3100_v48 }
0x2db9   : > { %3459 = vmatprep.mubr.msk.f32.mxu0 %vm2781_vm6, %v3107_v42 }
0x2dbb   : > { %v3102_v46 = vpop.permute.xlu1 %3101 }
0x2dbc   : > { %v3108_v52 = vsel %vm5187_vm14, %v3106_v9, %v3102_v46 }
0x2dbd   : > { %3460 = vmatmul.mubr.msk.f32.vlgmr.msra.gmra.mxu0 %vm2781_vm6, %v3108_v52 }
0x2e7d   : > { %v3461_v3 = vpop.f32.mrf.mxu0 }
0x2e7e   : > { %v3203_v49 = vadd.f32 %v3461_v3, %v3124_v57 }
0x2e7f   : > { %v3197_v8 = vpop.f32.mrf.mxu0 }
0x2e80   : > { %3207 = vst.msk [vmem:[%s354_s10 + $0x8] sm:$0xff] %vm5188_vm15, %v3203_v49  ;;  %v3198_v41 = vadd.f32 %v3197_v8, %v3124_v57 }
0x2e82   : > { %3206 = vst.msk [vmem:[%s354_s10] sm:$0xff] %vm5189_vm0, %v3198_v41 }
0x2e83 PF: > { %s5190_s30 = sld [smem:[#allocation9_spill]]  ;;  %s5191_s27 = smov %s3770_s28 }
0x2e84   : > { %s5192_s28 = smov %s3774_s29  ;;  %s5193_s29 = smov %s3899_s23 }
0x2e89   : > { %p19_p7 = scmp.ge.s32.totalorder %s5190_s30, 4  }
0x2e8b   :  { %21 = sbr.rel (!%p19_p7) target bundleno = 4 (0x4), region = 99 }
0x2e90   :  { %3229 = vsyncpa [#allocation4], 1 }
0x2e91   :  { %3231 = vsyncpa [#allocation4 + $0x1], 1 }
0x2e92   :  { %3232 = vsyncpa [#allocation6], 1 }

</bundles_post_ra>
